<compile_context>
chip_gen: v6e
topology: v6e:2x2x1
jax: 0.10.0
libtpu: 0.0.40
codegen_flags: <defaults>
</compile_context>

<pallas_src>
import functools

import jax
import jax.numpy as jnp
from jax.experimental import pallas as pl
from jax.experimental.pallas import tpu as pltpu

LN_EPS = 1e-5


# ---------------------------------------------------------------------------
# In-kernel helpers (transposed orientation: E on sublanes, sequence on lanes)
# ---------------------------------------------------------------------------
def _layer_norm_t(xT, gamma_col, beta_col):
    """LayerNorm over the embedding axis of a transposed (E, X) activation."""
    mu = jnp.mean(xT, axis=0, keepdims=True)
    var = jnp.mean((xT - mu) ** 2, axis=0, keepdims=True)
    return (xT - mu) * jax.lax.rsqrt(var + LN_EPS) * gamma_col + beta_col


def _mha_transposed(hT_b, kvT_b, mask, wq_t, bq, wk_t, bk, wv_t, bv,
                    wo_t, bo, num_heads):
    """Multi-head attention, fully in the transposed domain.

      hT_b  : (E, T) bf16  transposed query-side input
      kvT_b : (E, S) bf16  transposed key/value-side input
      mask  : (T, S) f32   additive attention mask
      w*_t  : (E, E) bf16 pre-transposed projections; biases (E, 1) f32

    Returns (attnT (E, T) f32, kT (E, S) f32, vT (E, S) f32).
    """
    E, T = hT_b.shape
    S = kvT_b.shape[1]
    d_head = E // num_heads

    # Fused projections: (E,E)@(E,x) bf16 MXU matmuls with f32 accumulation.
    qT = (jnp.dot(wq_t, hT_b, preferred_element_type=jnp.float32) + bq) \
        * (d_head ** -0.5)
    kT = jnp.dot(wk_t, kvT_b, preferred_element_type=jnp.float32) + bk
    vT = jnp.dot(wv_t, kvT_b, preferred_element_type=jnp.float32) + bv

    # Head split = sublane-only reshape (lane/seq dim untouched; head-major
    # feature layout e = h*Dh + d).
    q_hdT = qT.reshape(num_heads, d_head, T).astype(jnp.bfloat16)
    k_hdS = kT.reshape(num_heads, d_head, S).astype(jnp.bfloat16)
    v_hdS = vT.reshape(num_heads, d_head, S).astype(jnp.bfloat16)

    # Single head-batched score matmul (batch H, contract Dh) -> (H, T, S).
    scores = jax.lax.dot_general(
        q_hdT, k_hdS, (((1,), (1,)), ((0,), (0,))),
        preferred_element_type=jnp.float32)
    scores = scores + mask[None, :, :]
    scores = scores - jnp.max(scores, axis=-1, keepdims=True)
    p = jnp.exp(scores)
    # NOTE: approx reciprocal (EUP slot) -> rows sum to 1 +/- ~1e-3; use
    # approx=False if strict softmax parity with PyTorch is required.
    inv_l = pl.reciprocal(jnp.sum(p, axis=-1, keepdims=True), approx=True)
    probs = (p * inv_l).astype(jnp.bfloat16)                     # (H, T, S)

    # Context stays transposed: (H, Dh, T) -> sublane merge (E, T).  The out
    # projection then contracts over the full E width (full MXU depth, no
    # per-head reduce).
    ctxT = jax.lax.dot_general(
        v_hdS, probs, (((2,), (2,)), ((0,), (0,))),
        preferred_element_type=jnp.float32)                      # (H, Dh, T)
    ctxT = ctxT.reshape(E, T).astype(jnp.bfloat16)
    attnT = jnp.dot(wo_t, ctxT, preferred_element_type=jnp.float32) + bo
    return attnT, kT, vT


# ---------------------------------------------------------------------------
# Fused decoder-layer kernel (one grid step per batch element)
# ---------------------------------------------------------------------------
def _decoder_layer_kernel(num_heads, num_channels,
                          cw_ref,                               # SMEM (C,) f32
                          hid_ref, enc_ref, smask_ref, cmask_ref,
                          sa_wq, sa_bq, sa_wk, sa_bk, sa_wv, sa_bv,
                          sa_wo, sa_bo, sa_g, sa_be,
                          ca_wq, ca_bq, ca_wk, ca_bk, ca_wv, ca_bv,
                          ca_wo, ca_bo, ca_g, ca_be,
                          w1t, b1, w2t, b2, f_g, f_be,
                          out_ref, ks_ref, vs_ref, kc_ref, vc_ref):
    # bf16 transpose at entry (half the XLU data), f32 residual stream.
    hT_b = hid_ref[0].T                                    # (E, T) bf16
    hT = hT_b.astype(jnp.float32)
    smask = smask_ref[0].astype(jnp.float32)               # (T, T) additive
    cmask = cmask_ref[0].astype(jnp.float32)               # (T, S) additive

    # ---- 1) self attention + residual + self_attn_layer_norm --------------
    attnT, kT, vT = _mha_transposed(
        hT_b, hT_b, smask,
        sa_wq[...], sa_bq[...], sa_wk[...], sa_bk[...],
        sa_wv[...], sa_bv[...], sa_wo[...], sa_bo[...], num_heads)
    ks_ref[0] = kT.astype(jnp.bfloat16).T      # cast BEFORE transpose (bf16)
    vs_ref[0] = vT.astype(jnp.bfloat16).T      # lane-dense (T, E) cache slabs
    h1T = _layer_norm_t(hT + attnT, sa_g[...], sa_be[...])

    # ---- 2) multi-channel cross attention (channel pooling fused) ---------
    enc = enc_ref[0]                                       # (C, S, E) bf16
    pooled = enc[0].astype(jnp.float32) * cw_ref[0]
    for c in range(1, num_channels):           # C is small & static
        pooled = pooled + enc[c].astype(jnp.float32) * cw_ref[c]
    pooledT_b = pooled.astype(jnp.bfloat16).T              # one bf16 transpose
    attn2T, kT2, vT2 = _mha_transposed(
        h1T.astype(jnp.bfloat16), pooledT_b, cmask,
        ca_wq[...], ca_bq[...], ca_wk[...], ca_bk[...],
        ca_wv[...], ca_bv[...], ca_wo[...], ca_bo[...], num_heads)
    kc_ref[0] = kT2.astype(jnp.bfloat16).T
    vc_ref[0] = vT2.astype(jnp.bfloat16).T
    h2T = _layer_norm_t(h1T + attn2T, ca_g[...], ca_be[...])

    # ---- 3) FFN + residual + final layer norm (full-width contractions) ---
    xT = jnp.dot(w1t[...], h2T.astype(jnp.bfloat16),
                 preferred_element_type=jnp.float32) + b1[...]      # (F, T)
    xT = jax.nn.gelu(xT, approximate=True)
    yT = jnp.dot(w2t[...], xT.astype(jnp.bfloat16),
                 preferred_element_type=jnp.float32) + b2[...]      # (E, T)
    h3T = _layer_norm_t(h2T + yT, f_g[...], f_be[...])
    out_ref[0] = h3T.astype(out_ref.dtype).T                        # (T, E)


# ---------------------------------------------------------------------------
# Parameter preparation (bf16 weights, transposed / column-bias layouts)
# ---------------------------------------------------------------------------
def _prepare_kernel_params(params):
    bf = lambda w: w.astype(jnp.bfloat16)
    col = lambda b: b.reshape(-1, 1).astype(jnp.float32)

    def attn(p):
        return [
            bf(p["wq"].T), col(p["bq"]),
            bf(p["wk"].T), col(p["bk"]),
            bf(p["wv"].T), col(p["bv"]),
            bf(p["wo"].T), col(p["bo"]),
            col(p["ln_g"]), col(p["ln_b"]),
        ]

    f = params["ffn"]
    ffn = [
        bf(f["w1"].T), col(f["b1"]),          # (F, E), (F, 1)
        bf(f["w2"].T), col(f["b2"]),          # (E, F), (E, 1)
        col(f["ln_g"]), col(f["ln_b"]),
    ]
    return {"self_attn": attn(params["self_attn"]),
            "cross_attn": attn(params["cross_attn"]),
            "ffn": ffn}


def _const_spec(shape):
    """Weight/bias spec: constant index map, single-buffered residency
    (Buffered(1) halves weight VMEM - critical on v7x's 64 MiB)."""
    n = len(shape)
    idx = lambda b, cw, n=n: (0,) * n
    try:
        return pl.BlockSpec(shape, idx, pipeline_mode=pl.Buffered(1))
    except TypeError:                      # older jax without pipeline_mode
        return pl.BlockSpec(shape, idx)


def _vmem_limit_bytes():
    """Per-chip scoped-VMEM limit: ~56 MiB on v7x, ~100 MiB on v5e/v6e."""
    try:
        cap = getattr(pltpu.get_tpu_info(), "vmem_capacity_bytes", None)
        if cap:
            return int(min(cap - 8 * 1024 * 1024, 100 * 1024 * 1024))
    except Exception:
        pass
    return 32 * 1024 * 1024                # conservative fallback


# ---------------------------------------------------------------------------
# Layer forward
# ---------------------------------------------------------------------------
def multi_channel_decoder_layer(hidden_states, attention_mask, channel_weight,
                                encoder_hidden_states, encoder_attention_mask,
                                params, num_heads, out_dtype=None):
    B, T, E = hidden_states.shape
    C, _, S, _ = encoder_hidden_states.shape
    d_head = E // num_heads
    F = params["ffn"]["w1"].shape[1]
    out_dtype = out_dtype or hidden_states.dtype

    kp = _prepare_kernel_params(params)

    # bf16 activations / masks -> half the per-step HBM traffic.  Encoder
    # states reordered to (B, C, S, E): one contiguous slab per grid step.
    hid_b = hidden_states.astype(jnp.bfloat16)
    enc_b = jnp.transpose(encoder_hidden_states, (1, 0, 2, 3)).astype(jnp.bfloat16)
    smask = attention_mask[:, 0].astype(jnp.bfloat16)              # (B, T, T)
    cmask = encoder_attention_mask[:, 0].astype(jnp.bfloat16)      # (B, T, S)
    cw = channel_weight.astype(jnp.float32)

    def attn_specs():
        return [
            _const_spec((E, E)), _const_spec((E, 1)),
            _const_spec((E, E)), _const_spec((E, 1)),
            _const_spec((E, E)), _const_spec((E, 1)),
            _const_spec((E, E)), _const_spec((E, 1)),
            _const_spec((E, 1)), _const_spec((E, 1)),
        ]

    in_specs = ([
        pl.BlockSpec((1, T, E), lambda b, cw: (b, 0, 0)),
        pl.BlockSpec((1, C, S, E), lambda b, cw: (b, 0, 0, 0)),
        pl.BlockSpec((1, T, T), lambda b, cw: (b, 0, 0)),
        pl.BlockSpec((1, T, S), lambda b, cw: (b, 0, 0)),
    ] + attn_specs() + attn_specs() + [
        _const_spec((F, E)), _const_spec((F, 1)),
        _const_spec((E, F)), _const_spec((E, 1)),
        _const_spec((E, 1)), _const_spec((E, 1)),
    ])
    out_specs = [
        pl.BlockSpec((1, T, E), lambda b, cw: (b, 0, 0)),
        pl.BlockSpec((1, T, E), lambda b, cw: (b, 0, 0)),
        pl.BlockSpec((1, T, E), lambda b, cw: (b, 0, 0)),
        pl.BlockSpec((1, S, E), lambda b, cw: (b, 0, 0)),
        pl.BlockSpec((1, S, E), lambda b, cw: (b, 0, 0)),
    ]
    out_shape = (
        jax.ShapeDtypeStruct((B, T, E), out_dtype),       # hidden out
        jax.ShapeDtypeStruct((B, T, E), jnp.bfloat16),    # self-attn K cache
        jax.ShapeDtypeStruct((B, T, E), jnp.bfloat16),    # self-attn V cache
        jax.ShapeDtypeStruct((B, S, E), jnp.bfloat16),    # cross-attn K cache
        jax.ShapeDtypeStruct((B, S, E), jnp.bfloat16),    # cross-attn V cache
    )

    kernel = functools.partial(_decoder_layer_kernel, num_heads, C)
    out, ks, vs, kc, vc = pl.pallas_call(
        kernel,
        grid_spec=pltpu.PrefetchScalarGridSpec(
            num_scalar_prefetch=1,          # channel_weight -> SMEM
            grid=(B,),
            in_specs=in_specs,
            out_specs=out_specs,
        ),
        out_shape=out_shape,
        compiler_params=pltpu.CompilerParams(
            dimension_semantics=("parallel",),
            vmem_limit_bytes=_vmem_limit_bytes()),
    )(cw, hid_b, enc_b, smask, cmask,
      *kp["self_attn"], *kp["cross_attn"], *kp["ffn"])

    # (B, n, E) -> (B, H, n, Dh) per-head cache view (BART layout).
    # TODO(synk): skip this relayout if the downstream consumer accepts (B,n,E).
    def to_cache(x):
        n = x.shape[1]
        return x.reshape(B, n, num_heads, d_head).transpose(0, 2, 1, 3)

    present_key_value = (to_cache(ks), to_cache(vs), to_cache(kc), to_cache(vc))
    return out, present_key_value


# ---------------------------------------------------------------------------
# Pure-JAX reference (same math & same bf16 cast points)
# ---------------------------------------------------------------------------
def _ref_ln(x, g, b):
    mu = jnp.mean(x, axis=-1, keepdims=True)
    var = jnp.mean((x - mu) ** 2, axis=-1, keepdims=True)
    return (x - mu) * jax.lax.rsqrt(var + LN_EPS) * g + b


def _ref_attention(hidden, kv, mask, p, num_heads):
    B, T, E = hidden.shape
    S = kv.shape[1]
    d_head = E // num_heads
    bf = jnp.bfloat16
    q = (jnp.dot(hidden.astype(bf), p["wq"].astype(bf),
                 preferred_element_type=jnp.float32) + p["bq"]) * d_head ** -0.5
    k = jnp.dot(kv.astype(bf), p["wk"].astype(bf),
                preferred_element_type=jnp.float32) + p["bk"]
    v = jnp.dot(kv.astype(bf), p["wv"].astype(bf),
                preferred_element_type=jnp.float32) + p["bv"]
    qh = q.reshape(B, T, num_heads, d_head).transpose(0, 2, 1, 3)
    kh = k.reshape(B, S, num_heads, d_head).transpose(0, 2, 1, 3)
    vh = v.reshape(B, S, num_heads, d_head).transpose(0, 2, 1, 3)
    scores = jnp.einsum("bhtd,bhsd->bhts", qh.astype(bf), kh.astype(bf),
                        preferred_element_type=jnp.float32) + mask[:, None]
    probs = jax.nn.softmax(scores, axis=-1)
    ctx = jnp.einsum("bhts,bhsd->bhtd", probs.astype(bf), vh.astype(bf),
                     preferred_element_type=jnp.float32)
    ctx = ctx.transpose(0, 2, 1, 3).reshape(B, T, E)
    out = jnp.dot(ctx.astype(bf), p["wo"].astype(bf),
                  preferred_element_type=jnp.float32) + p["bo"]
    return _ref_ln(hidden + out, p["ln_g"], p["ln_b"])


def _ref_layer(hidden, attn_mask, cw, enc, enc_mask, params, num_heads):
    bf = jnp.bfloat16
    h0 = hidden.astype(bf).astype(jnp.float32)     # kernel consumes bf16 hidden
    smask = attn_mask[:, 0].astype(bf).astype(jnp.float32)
    cmask = enc_mask[:, 0].astype(bf).astype(jnp.float32)
    h1 = _ref_attention(h0, h0, smask, params["self_attn"], num_heads)
    pooled = jnp.einsum("c,cbse->bse", cw, enc.astype(bf).astype(jnp.float32))
    h2 = _ref_attention(h1, pooled, cmask, params["cross_attn"], num_heads)
    f = params["ffn"]
    x = jax.nn.gelu(jnp.dot(h2.astype(bf), f["w1"].astype(bf),
                            preferred_element_type=jnp.float32) + f["b1"],
                    approximate=True)
    y = jnp.dot(x.astype(bf), f["w2"].astype(bf),
                preferred_element_type=jnp.float32) + f["b2"]
    return _ref_ln(h2 + y, f["ln_g"], f["ln_b"])


# ---------------------------------------------------------------------------
# Deterministic parameter construction (logical (in, out) f32 layout)
# ---------------------------------------------------------------------------
def _init_attn_params(key, E):
    ks = jax.random.split(key, 10)
    mk = lambda k, shape: jax.random.normal(k, shape, jnp.float32) * 0.02
    return {
        "wq": mk(ks[0], (E, E)), "bq": mk(ks[4], (E,)),
        "wk": mk(ks[1], (E, E)), "bk": mk(ks[5], (E,)),
        "wv": mk(ks[2], (E, E)), "bv": mk(ks[6], (E,)),
        "wo": mk(ks[3], (E, E)), "bo": mk(ks[7], (E,)),
        "ln_g": 1.0 + mk(ks[8], (E,)),
        "ln_b": mk(ks[9], (E,)),
    }


def _init_params(key, E, F):
    k1, k2, k3, k4, k5, k6, k7, k8 = jax.random.split(key, 8)
    mk = lambda k, shape: jax.random.normal(k, shape, jnp.float32) * 0.02
    return {
        "self_attn": _init_attn_params(k1, E),
        "cross_attn": _init_attn_params(k2, E),
        "ffn": {
            "w1": mk(k3, (E, F)), "b1": mk(k5, (F,)),
            "w2": mk(k4, (F, E)), "b2": mk(k6, (E,)),
            "ln_g": 1.0 + mk(k7, (E,)), "ln_b": mk(k8, (E,)),
        },
    }


if __name__ == "__main__":
    # Small but hardware-aligned shapes (E multiple of 128, T/S multiples of 8).
    B, T, S, E, H, F, C = 2, 16, 32, 128, 4, 256, 3

    key = jax.random.PRNGKey(0)
    k_h, k_e, k_w, k_p = jax.random.split(key, 4)

    hidden_states = jax.random.normal(k_h, (B, T, E), jnp.float32)
    encoder_hidden_states = jax.random.normal(k_e, (C, B, S, E), jnp.float32)
    channel_weight = jax.nn.softmax(jax.random.normal(k_w, (C,), jnp.float32))

    # causal self-attention mask (B, 1, T, T), additive large negatives
    causal = jnp.where(jnp.arange(T)[:, None] >= jnp.arange(T)[None, :],
                       0.0, -1e9)
    attention_mask = jnp.broadcast_to(causal, (B, 1, T, T)).astype(jnp.float32)
    # encoder attention mask (B, 1, T, S), no padding -> zeros
    encoder_attention_mask = jnp.zeros((B, 1, T, S), jnp.float32)

    params = _init_params(k_p, E, F)

    fwd = jax.jit(functools.partial(multi_channel_decoder_layer, num_heads=H))
    out, present_kv = fwd(hidden_states, attention_mask, channel_weight,
                          encoder_hidden_states, encoder_attention_mask, params)
    out = jax.block_until_ready(out)
    present_kv = jax.block_until_ready(present_kv)

    # correctness check against a pure-JAX reference of the same math
    ref = _ref_layer(hidden_states, attention_mask, channel_weight,
                     encoder_hidden_states, encoder_attention_mask, params, H)

    assert out.shape == (B, T, E) and out.dtype == jnp.float32
    assert present_kv[0].shape == (B, H, T, E // H)
    assert present_kv[2].shape == (B, H, S, E // H)
    max_err = float(jnp.max(jnp.abs(out - ref)))
    assert bool(jnp.allclose(out, ref, atol=2e-2, rtol=2e-2)), \
        f"mismatch vs reference (max abs err {max_err})"

    print("KERNEL_OK")
</pallas_src>

<mosaic_0001>
module attributes {stable_mosaic.version = 11 : i64} {
  func.func @_decoder_layer_kernel(%arg0: i32, %arg1: memref<3xf32, #tpu.memory_space<smem>>, %arg2: memref<1x16x128xbf16, #tpu.memory_space<vmem>>, %arg3: memref<1x3x32x128xbf16, #tpu.memory_space<vmem>>, %arg4: memref<1x16x16xbf16, #tpu.memory_space<vmem>>, %arg5: memref<1x16x32xbf16, #tpu.memory_space<vmem>>, %arg6: memref<128x128xbf16, #tpu.memory_space<vmem>>, %arg7: memref<128x1xf32, #tpu.memory_space<vmem>>, %arg8: memref<128x128xbf16, #tpu.memory_space<vmem>>, %arg9: memref<128x1xf32, #tpu.memory_space<vmem>>, %arg10: memref<128x128xbf16, #tpu.memory_space<vmem>>, %arg11: memref<128x1xf32, #tpu.memory_space<vmem>>, %arg12: memref<128x128xbf16, #tpu.memory_space<vmem>>, %arg13: memref<128x1xf32, #tpu.memory_space<vmem>>, %arg14: memref<128x1xf32, #tpu.memory_space<vmem>>, %arg15: memref<128x1xf32, #tpu.memory_space<vmem>>, %arg16: memref<128x128xbf16, #tpu.memory_space<vmem>>, %arg17: memref<128x1xf32, #tpu.memory_space<vmem>>, %arg18: memref<128x128xbf16, #tpu.memory_space<vmem>>, %arg19: memref<128x1xf32, #tpu.memory_space<vmem>>, %arg20: memref<128x128xbf16, #tpu.memory_space<vmem>>, %arg21: memref<128x1xf32, #tpu.memory_space<vmem>>, %arg22: memref<128x128xbf16, #tpu.memory_space<vmem>>, %arg23: memref<128x1xf32, #tpu.memory_space<vmem>>, %arg24: memref<128x1xf32, #tpu.memory_space<vmem>>, %arg25: memref<128x1xf32, #tpu.memory_space<vmem>>, %arg26: memref<256x128xbf16, #tpu.memory_space<vmem>>, %arg27: memref<256x1xf32, #tpu.memory_space<vmem>>, %arg28: memref<128x256xbf16, #tpu.memory_space<vmem>>, %arg29: memref<128x1xf32, #tpu.memory_space<vmem>>, %arg30: memref<128x1xf32, #tpu.memory_space<vmem>>, %arg31: memref<128x1xf32, #tpu.memory_space<vmem>>, %arg32: memref<1x16x128xf32, #tpu.memory_space<vmem>>, %arg33: memref<1x16x128xbf16, #tpu.memory_space<vmem>>, %arg34: memref<1x16x128xbf16, #tpu.memory_space<vmem>>, %arg35: memref<1x32x128xbf16, #tpu.memory_space<vmem>>, %arg36: memref<1x32x128xbf16, #tpu.memory_space<vmem>>) attributes {dimension_semantics = [#tpu.dimension_semantics<parallel>], iteration_bounds = array<i64: 2>, scalar_prefetch = 1 : i64, scratch_operands = 0 : i64, tpu.core_type = #tpu.core_type<tc>, window_params = [{transform_indices = @transform_0, window_bounds = array<i64: 1, 16, 128>}, {transform_indices = @transform_1, window_bounds = array<i64: 1, 3, 32, 128>}, {transform_indices = @transform_2, window_bounds = array<i64: 1, 16, 16>}, {transform_indices = @transform_3, window_bounds = array<i64: 1, 16, 32>}, {pipeline_mode = #tpu.pipeline_mode<synchronous>, transform_indices = @transform_4, window_bounds = array<i64: 128, 128>}, {pipeline_mode = #tpu.pipeline_mode<synchronous>, transform_indices = @transform_5, window_bounds = array<i64: 128, 1>}, {pipeline_mode = #tpu.pipeline_mode<synchronous>, transform_indices = @transform_6, window_bounds = array<i64: 128, 128>}, {pipeline_mode = #tpu.pipeline_mode<synchronous>, transform_indices = @transform_7, window_bounds = array<i64: 128, 1>}, {pipeline_mode = #tpu.pipeline_mode<synchronous>, transform_indices = @transform_8, window_bounds = array<i64: 128, 128>}, {pipeline_mode = #tpu.pipeline_mode<synchronous>, transform_indices = @transform_9, window_bounds = array<i64: 128, 1>}, {pipeline_mode = #tpu.pipeline_mode<synchronous>, transform_indices = @transform_10, window_bounds = array<i64: 128, 128>}, {pipeline_mode = #tpu.pipeline_mode<synchronous>, transform_indices = @transform_11, window_bounds = array<i64: 128, 1>}, {pipeline_mode = #tpu.pipeline_mode<synchronous>, transform_indices = @transform_12, window_bounds = array<i64: 128, 1>}, {pipeline_mode = #tpu.pipeline_mode<synchronous>, transform_indices = @transform_13, window_bounds = array<i64: 128, 1>}, {pipeline_mode = #tpu.pipeline_mode<synchronous>, transform_indices = @transform_14, window_bounds = array<i64: 128, 128>}, {pipeline_mode = #tpu.pipeline_mode<synchronous>, transform_indices = @transform_15, window_bounds = array<i64: 128, 1>}, {pipeline_mode = #tpu.pipeline_mode<synchronous>, transform_indices = @transform_16, window_bounds = array<i64: 128, 128>}, {pipeline_mode = #tpu.pipeline_mode<synchronous>, transform_indices = @transform_17, window_bounds = array<i64: 128, 1>}, {pipeline_mode = #tpu.pipeline_mode<synchronous>, transform_indices = @transform_18, window_bounds = array<i64: 128, 128>}, {pipeline_mode = #tpu.pipeline_mode<synchronous>, transform_indices = @transform_19, window_bounds = array<i64: 128, 1>}, {pipeline_mode = #tpu.pipeline_mode<synchronous>, transform_indices = @transform_20, window_bounds = array<i64: 128, 128>}, {pipeline_mode = #tpu.pipeline_mode<synchronous>, transform_indices = @transform_21, window_bounds = array<i64: 128, 1>}, {pipeline_mode = #tpu.pipeline_mode<synchronous>, transform_indices = @transform_22, window_bounds = array<i64: 128, 1>}, {pipeline_mode = #tpu.pipeline_mode<synchronous>, transform_indices = @transform_23, window_bounds = array<i64: 128, 1>}, {pipeline_mode = #tpu.pipeline_mode<synchronous>, transform_indices = @transform_24, window_bounds = array<i64: 256, 128>}, {pipeline_mode = #tpu.pipeline_mode<synchronous>, transform_indices = @transform_25, window_bounds = array<i64: 256, 1>}, {pipeline_mode = #tpu.pipeline_mode<synchronous>, transform_indices = @transform_26, window_bounds = array<i64: 128, 256>}, {pipeline_mode = #tpu.pipeline_mode<synchronous>, transform_indices = @transform_27, window_bounds = array<i64: 128, 1>}, {pipeline_mode = #tpu.pipeline_mode<synchronous>, transform_indices = @transform_28, window_bounds = array<i64: 128, 1>}, {pipeline_mode = #tpu.pipeline_mode<synchronous>, transform_indices = @transform_29, window_bounds = array<i64: 128, 1>}, {transform_indices = @transform_30, window_bounds = array<i64: 1, 16, 128>}, {transform_indices = @transform_31, window_bounds = array<i64: 1, 16, 128>}, {transform_indices = @transform_32, window_bounds = array<i64: 1, 16, 128>}, {transform_indices = @transform_33, window_bounds = array<i64: 1, 32, 128>}, {transform_indices = @transform_34, window_bounds = array<i64: 1, 32, 128>}]} {
    %c0 = arith.constant 0 : index
    %c0_0 = arith.constant 0 : index
    %c0_1 = arith.constant 0 : index
    %0 = vector.load %arg2[%c0, %c0_0, %c0_1] : memref<1x16x128xbf16, #tpu.memory_space<vmem>>, vector<1x16x128xbf16>
    %1 = vector.shape_cast %0 : vector<1x16x128xbf16> to vector<16x128xbf16>
    %2 = tpu.transpose %1, [1, 0] : vector<16x128xbf16> -> vector<128x16xbf16>
    %3 = arith.extf %2 : vector<128x16xbf16> to vector<128x16xf32>
    %c0_2 = arith.constant 0 : index
    %c0_3 = arith.constant 0 : index
    %c0_4 = arith.constant 0 : index
    %4 = vector.load %arg4[%c0_2, %c0_3, %c0_4] : memref<1x16x16xbf16, #tpu.memory_space<vmem>>, vector<1x16x16xbf16>
    %5 = vector.shape_cast %4 : vector<1x16x16xbf16> to vector<16x16xbf16>
    %6 = arith.extf %5 : vector<16x16xbf16> to vector<16x16xf32>
    %c0_5 = arith.constant 0 : index
    %c0_6 = arith.constant 0 : index
    %c0_7 = arith.constant 0 : index
    %7 = vector.load %arg5[%c0_5, %c0_6, %c0_7] : memref<1x16x32xbf16, #tpu.memory_space<vmem>>, vector<1x16x32xbf16>
    %8 = vector.shape_cast %7 : vector<1x16x32xbf16> to vector<16x32xbf16>
    %9 = arith.extf %8 : vector<16x32xbf16> to vector<16x32xf32>
    %c0_8 = arith.constant 0 : index
    %c0_9 = arith.constant 0 : index
    %10 = vector.load %arg6[%c0_8, %c0_9] : memref<128x128xbf16, #tpu.memory_space<vmem>>, vector<128x128xbf16>
    %c0_10 = arith.constant 0 : index
    %c0_11 = arith.constant 0 : index
    %11 = vector.load %arg7[%c0_10, %c0_11] : memref<128x1xf32, #tpu.memory_space<vmem>>, vector<128x1xf32>
    %c0_12 = arith.constant 0 : index
    %c0_13 = arith.constant 0 : index
    %12 = vector.load %arg8[%c0_12, %c0_13] : memref<128x128xbf16, #tpu.memory_space<vmem>>, vector<128x128xbf16>
    %c0_14 = arith.constant 0 : index
    %c0_15 = arith.constant 0 : index
    %13 = vector.load %arg9[%c0_14, %c0_15] : memref<128x1xf32, #tpu.memory_space<vmem>>, vector<128x1xf32>
    %c0_16 = arith.constant 0 : index
    %c0_17 = arith.constant 0 : index
    %14 = vector.load %arg10[%c0_16, %c0_17] : memref<128x128xbf16, #tpu.memory_space<vmem>>, vector<128x128xbf16>
    %c0_18 = arith.constant 0 : index
    %c0_19 = arith.constant 0 : index
    %15 = vector.load %arg11[%c0_18, %c0_19] : memref<128x1xf32, #tpu.memory_space<vmem>>, vector<128x1xf32>
    %c0_20 = arith.constant 0 : index
    %c0_21 = arith.constant 0 : index
    %16 = vector.load %arg12[%c0_20, %c0_21] : memref<128x128xbf16, #tpu.memory_space<vmem>>, vector<128x128xbf16>
    %c0_22 = arith.constant 0 : index
    %c0_23 = arith.constant 0 : index
    %17 = vector.load %arg13[%c0_22, %c0_23] : memref<128x1xf32, #tpu.memory_space<vmem>>, vector<128x1xf32>
    %cst = arith.constant dense<0.000000e+00> : vector<128x16xf32>
    %18 = tpu.matmul %10, %2, %cst {dimension_numbers = #tpu.dot_dimension_numbers<[1], [0], [0], [1], [0, 0, 1, 1], [], []>} : vector<128x128xbf16>, vector<128x16xbf16>, vector<128x16xf32> -> vector<128x16xf32>
    %19 = vector.broadcast %11 : vector<128x1xf32> to vector<128x16xf32>
    %20 = arith.addf %18, %19 : vector<128x16xf32>
    %cst_24 = arith.constant 0.176776692 : f32
    %21 = vector.broadcast %cst_24 : f32 to vector<128x16xf32>
    %22 = arith.mulf %20, %21 : vector<128x16xf32>
    %cst_25 = arith.constant dense<0.000000e+00> : vector<128x16xf32>
    %23 = tpu.matmul %12, %2, %cst_25 {dimension_numbers = #tpu.dot_dimension_numbers<[1], [0], [0], [1], [0, 0, 1, 1], [], []>} : vector<128x128xbf16>, vector<128x16xbf16>, vector<128x16xf32> -> vector<128x16xf32>
    %24 = vector.broadcast %13 : vector<128x1xf32> to vector<128x16xf32>
    %25 = arith.addf %23, %24 : vector<128x16xf32>
    %cst_26 = arith.constant dense<0.000000e+00> : vector<128x16xf32>
    %26 = tpu.matmul %14, %2, %cst_26 {dimension_numbers = #tpu.dot_dimension_numbers<[1], [0], [0], [1], [0, 0, 1, 1], [], []>} : vector<128x128xbf16>, vector<128x16xbf16>, vector<128x16xf32> -> vector<128x16xf32>
    %27 = vector.broadcast %15 : vector<128x1xf32> to vector<128x16xf32>
    %28 = arith.addf %26, %27 : vector<128x16xf32>
    %29 = vector.shape_cast %22 : vector<128x16xf32> to vector<4x32x16xf32>
    %30 = arith.truncf %29 : vector<4x32x16xf32> to vector<4x32x16xbf16>
    %31 = vector.shape_cast %25 : vector<128x16xf32> to vector<4x32x16xf32>
    %32 = arith.truncf %31 : vector<4x32x16xf32> to vector<4x32x16xbf16>
    %33 = vector.shape_cast %28 : vector<128x16xf32> to vector<4x32x16xf32>
    %34 = arith.truncf %33 : vector<4x32x16xf32> to vector<4x32x16xbf16>
    %cst_27 = arith.constant dense<0.000000e+00> : vector<4x16x16xf32>
    %35 = tpu.matmul %30, %32, %cst_27 {dimension_numbers = #tpu.dot_dimension_numbers<[1], [1], [2], [2], [0, 0, 0, 2, 1, 2], [0], [0]>} : vector<4x32x16xbf16>, vector<4x32x16xbf16>, vector<4x16x16xf32> -> vector<4x16x16xf32>
    %36 = vector.shape_cast %6 : vector<16x16xf32> to vector<1x16x16xf32>
    %37 = vector.broadcast %36 : vector<1x16x16xf32> to vector<4x16x16xf32>
    %38 = arith.addf %35, %37 : vector<4x16x16xf32>
    %cst_28 = arith.constant dense<0xFF800000> : vector<4x16xf32>
    %39 = vector.multi_reduction <maximumf>, %38, %cst_28 [2] : vector<4x16x16xf32> to vector<4x16xf32>
    %40 = vector.shape_cast %39 : vector<4x16xf32> to vector<4x16x1xf32>
    %41 = vector.broadcast %40 : vector<4x16x1xf32> to vector<4x16x16xf32>
    %42 = arith.subf %38, %41 : vector<4x16x16xf32>
    %43 = math.exp %42 : vector<4x16x16xf32>
    %cst_29 = arith.constant dense<0.000000e+00> : vector<4x16xf32>
    %44 = vector.multi_reduction <add>, %43, %cst_29 [2] : vector<4x16x16xf32> to vector<4x16xf32>
    %45 = vector.shape_cast %44 : vector<4x16xf32> to vector<4x16x1xf32>
    %46 = tpu.reciprocal %45 {approx = true} : vector<4x16x1xf32> -> vector<4x16x1xf32>
    %47 = vector.broadcast %46 : vector<4x16x1xf32> to vector<4x16x16xf32>
    %48 = arith.mulf %43, %47 : vector<4x16x16xf32>
    %49 = arith.truncf %48 : vector<4x16x16xf32> to vector<4x16x16xbf16>
    %cst_30 = arith.constant dense<0.000000e+00> : vector<4x32x16xf32>
    %50 = tpu.matmul %34, %49, %cst_30 {dimension_numbers = #tpu.dot_dimension_numbers<[2], [2], [1], [1], [0, 0, 0, 1, 1, 1], [0], [0]>} : vector<4x32x16xbf16>, vector<4x16x16xbf16>, vector<4x32x16xf32> -> vector<4x32x16xf32>
    %51 = vector.shape_cast %50 : vector<4x32x16xf32> to vector<128x16xf32>
    %52 = arith.truncf %51 : vector<128x16xf32> to vector<128x16xbf16>
    %cst_31 = arith.constant dense<0.000000e+00> : vector<128x16xf32>
    %53 = tpu.matmul %16, %52, %cst_31 {dimension_numbers = #tpu.dot_dimension_numbers<[1], [0], [0], [1], [0, 0, 1, 1], [], []>} : vector<128x128xbf16>, vector<128x16xbf16>, vector<128x16xf32> -> vector<128x16xf32>
    %54 = vector.broadcast %17 : vector<128x1xf32> to vector<128x16xf32>
    %55 = arith.addf %53, %54 : vector<128x16xf32>
    %56 = arith.truncf %25 : vector<128x16xf32> to vector<128x16xbf16>
    %57 = tpu.transpose %56, [1, 0] : vector<128x16xbf16> -> vector<16x128xbf16>
    %c0_32 = arith.constant 0 : index
    %c0_33 = arith.constant 0 : index
    %c0_34 = arith.constant 0 : index
    %58 = vector.load %arg33[%c0_32, %c0_33, %c0_34] : memref<1x16x128xbf16, #tpu.memory_space<vmem>>, vector<1x16x128xbf16>
    %59 = vector.shape_cast %58 : vector<1x16x128xbf16> to vector<16x128xbf16>
    %60 = vector.shape_cast %57 : vector<16x128xbf16> to vector<1x16x128xbf16>
    tpu.vector_store %arg33[%c0_32, %c0_33, %c0_34], %60 {strides = array<i32>} : memref<1x16x128xbf16, #tpu.memory_space<vmem>>, vector<1x16x128xbf16>,
    %61 = arith.truncf %28 : vector<128x16xf32> to vector<128x16xbf16>
    %62 = tpu.transpose %61, [1, 0] : vector<128x16xbf16> -> vector<16x128xbf16>
    %c0_35 = arith.constant 0 : index
    %c0_36 = arith.constant 0 : index
    %c0_37 = arith.constant 0 : index
    %63 = vector.load %arg34[%c0_35, %c0_36, %c0_37] : memref<1x16x128xbf16, #tpu.memory_space<vmem>>, vector<1x16x128xbf16>
    %64 = vector.shape_cast %63 : vector<1x16x128xbf16> to vector<16x128xbf16>
    %65 = vector.shape_cast %62 : vector<16x128xbf16> to vector<1x16x128xbf16>
    tpu.vector_store %arg34[%c0_35, %c0_36, %c0_37], %65 {strides = array<i32>} : memref<1x16x128xbf16, #tpu.memory_space<vmem>>, vector<1x16x128xbf16>,
    %66 = arith.addf %3, %55 : vector<128x16xf32>
    %c0_38 = arith.constant 0 : index
    %c0_39 = arith.constant 0 : index
    %67 = vector.load %arg14[%c0_38, %c0_39] : memref<128x1xf32, #tpu.memory_space<vmem>>, vector<128x1xf32>
    %c0_40 = arith.constant 0 : index
    %c0_41 = arith.constant 0 : index
    %68 = vector.load %arg15[%c0_40, %c0_41] : memref<128x1xf32, #tpu.memory_space<vmem>>, vector<128x1xf32>
    %cst_42 = arith.constant dense<0.000000e+00> : vector<16xf32>
    %69 = vector.multi_reduction <add>, %66, %cst_42 [0] : vector<128x16xf32> to vector<16xf32>
    %70 = vector.shape_cast %69 : vector<16xf32> to vector<1x16xf32>
    %cst_43 = arith.constant 1.280000e+02 : f32
    %71 = vector.broadcast %cst_43 : f32 to vector<1x16xf32>
    %72 = arith.divf %70, %71 : vector<1x16xf32>
    %73 = vector.broadcast %72 : vector<1x16xf32> to vector<128x16xf32>
    %74 = arith.subf %66, %73 : vector<128x16xf32>
    %75 = arith.mulf %74, %74 : vector<128x16xf32>
    %cst_44 = arith.constant dense<0.000000e+00> : vector<16xf32>
    %76 = vector.multi_reduction <add>, %75, %cst_44 [0] : vector<128x16xf32> to vector<16xf32>
    %77 = vector.shape_cast %76 : vector<16xf32> to vector<1x16xf32>
    %cst_45 = arith.constant 1.280000e+02 : f32
    %78 = vector.broadcast %cst_45 : f32 to vector<1x16xf32>
    %79 = arith.divf %77, %78 : vector<1x16xf32>
    %80 = vector.broadcast %72 : vector<1x16xf32> to vector<128x16xf32>
    %81 = arith.subf %66, %80 : vector<128x16xf32>
    %cst_46 = arith.constant 9.99999974E-6 : f32
    %82 = vector.broadcast %cst_46 : f32 to vector<1x16xf32>
    %83 = arith.addf %79, %82 : vector<1x16xf32>
    %84 = math.rsqrt %83 : vector<1x16xf32>
    %85 = vector.broadcast %84 : vector<1x16xf32> to vector<128x16xf32>
    %86 = arith.mulf %81, %85 : vector<128x16xf32>
    %87 = vector.broadcast %67 : vector<128x1xf32> to vector<128x16xf32>
    %88 = arith.mulf %86, %87 : vector<128x16xf32>
    %89 = vector.broadcast %68 : vector<128x1xf32> to vector<128x16xf32>
    %90 = arith.addf %88, %89 : vector<128x16xf32>
    %c0_47 = arith.constant 0 : index
    %c0_48 = arith.constant 0 : index
    %c0_49 = arith.constant 0 : index
    %c0_50 = arith.constant 0 : index
    %91 = vector.load %arg3[%c0_47, %c0_48, %c0_49, %c0_50] : memref<1x3x32x128xbf16, #tpu.memory_space<vmem>>, vector<1x3x32x128xbf16>
    %92 = vector.shape_cast %91 : vector<1x3x32x128xbf16> to vector<3x32x128xbf16>
    %93 = vector.extract_strided_slice %92 {offsets = [0, 0, 0], sizes = [1, 32, 128], strides = [1, 1, 1]} : vector<3x32x128xbf16> to vector<1x32x128xbf16>
    %94 = vector.shape_cast %93 : vector<1x32x128xbf16> to vector<32x128xbf16>
    %95 = arith.extf %94 : vector<32x128xbf16> to vector<32x128xf32>
    %c0_51 = arith.constant 0 : index
    %96 = memref.load %arg1[%c0_51] : memref<3xf32, #tpu.memory_space<smem>>
    %97 = vector.broadcast %96 : f32 to vector<32x128xf32>
    %98 = arith.mulf %95, %97 : vector<32x128xf32>
    %99 = vector.extract_strided_slice %92 {offsets = [1, 0, 0], sizes = [1, 32, 128], strides = [1, 1, 1]} : vector<3x32x128xbf16> to vector<1x32x128xbf16>
    %100 = vector.shape_cast %99 : vector<1x32x128xbf16> to vector<32x128xbf16>
    %101 = arith.extf %100 : vector<32x128xbf16> to vector<32x128xf32>
    %c1 = arith.constant 1 : index
    %102 = memref.load %arg1[%c1] : memref<3xf32, #tpu.memory_space<smem>>
    %103 = vector.broadcast %102 : f32 to vector<32x128xf32>
    %104 = arith.mulf %101, %103 : vector<32x128xf32>
    %105 = arith.addf %98, %104 : vector<32x128xf32>
    %106 = vector.extract_strided_slice %92 {offsets = [2, 0, 0], sizes = [1, 32, 128], strides = [1, 1, 1]} : vector<3x32x128xbf16> to vector<1x32x128xbf16>
    %107 = vector.shape_cast %106 : vector<1x32x128xbf16> to vector<32x128xbf16>
    %108 = arith.extf %107 : vector<32x128xbf16> to vector<32x128xf32>
    %c2 = arith.constant 2 : index
    %109 = memref.load %arg1[%c2] : memref<3xf32, #tpu.memory_space<smem>>
    %110 = vector.broadcast %109 : f32 to vector<32x128xf32>
    %111 = arith.mulf %108, %110 : vector<32x128xf32>
    %112 = arith.addf %105, %111 : vector<32x128xf32>
    %113 = arith.truncf %112 : vector<32x128xf32> to vector<32x128xbf16>
    %114 = tpu.transpose %113, [1, 0] : vector<32x128xbf16> -> vector<128x32xbf16>
    %115 = arith.truncf %90 : vector<128x16xf32> to vector<128x16xbf16>
    %c0_52 = arith.constant 0 : index
    %c0_53 = arith.constant 0 : index
    %116 = vector.load %arg16[%c0_52, %c0_53] : memref<128x128xbf16, #tpu.memory_space<vmem>>, vector<128x128xbf16>
    %c0_54 = arith.constant 0 : index
    %c0_55 = arith.constant 0 : index
    %117 = vector.load %arg17[%c0_54, %c0_55] : memref<128x1xf32, #tpu.memory_space<vmem>>, vector<128x1xf32>
    %c0_56 = arith.constant 0 : index
    %c0_57 = arith.constant 0 : index
    %118 = vector.load %arg18[%c0_56, %c0_57] : memref<128x128xbf16, #tpu.memory_space<vmem>>, vector<128x128xbf16>
    %c0_58 = arith.constant 0 : index
    %c0_59 = arith.constant 0 : index
    %119 = vector.load %arg19[%c0_58, %c0_59] : memref<128x1xf32, #tpu.memory_space<vmem>>, vector<128x1xf32>
    %c0_60 = arith.constant 0 : index
    %c0_61 = arith.constant 0 : index
    %120 = vector.load %arg20[%c0_60, %c0_61] : memref<128x128xbf16, #tpu.memory_space<vmem>>, vector<128x128xbf16>
    %c0_62 = arith.constant 0 : index
    %c0_63 = arith.constant 0 : index
    %121 = vector.load %arg21[%c0_62, %c0_63] : memref<128x1xf32, #tpu.memory_space<vmem>>, vector<128x1xf32>
    %c0_64 = arith.constant 0 : index
    %c0_65 = arith.constant 0 : index
    %122 = vector.load %arg22[%c0_64, %c0_65] : memref<128x128xbf16, #tpu.memory_space<vmem>>, vector<128x128xbf16>
    %c0_66 = arith.constant 0 : index
    %c0_67 = arith.constant 0 : index
    %123 = vector.load %arg23[%c0_66, %c0_67] : memref<128x1xf32, #tpu.memory_space<vmem>>, vector<128x1xf32>
    %cst_68 = arith.constant dense<0.000000e+00> : vector<128x16xf32>
    %124 = tpu.matmul %116, %115, %cst_68 {dimension_numbers = #tpu.dot_dimension_numbers<[1], [0], [0], [1], [0, 0, 1, 1], [], []>} : vector<128x128xbf16>, vector<128x16xbf16>, vector<128x16xf32> -> vector<128x16xf32>
    %125 = vector.broadcast %117 : vector<128x1xf32> to vector<128x16xf32>
    %126 = arith.addf %124, %125 : vector<128x16xf32>
    %cst_69 = arith.constant 0.176776692 : f32
    %127 = vector.broadcast %cst_69 : f32 to vector<128x16xf32>
    %128 = arith.mulf %126, %127 : vector<128x16xf32>
    %cst_70 = arith.constant dense<0.000000e+00> : vector<128x32xf32>
    %129 = tpu.matmul %118, %114, %cst_70 {dimension_numbers = #tpu.dot_dimension_numbers<[1], [0], [0], [1], [0, 0, 1, 1], [], []>} : vector<128x128xbf16>, vector<128x32xbf16>, vector<128x32xf32> -> vector<128x32xf32>
    %130 = vector.broadcast %119 : vector<128x1xf32> to vector<128x32xf32>
    %131 = arith.addf %129, %130 : vector<128x32xf32>
    %cst_71 = arith.constant dense<0.000000e+00> : vector<128x32xf32>
    %132 = tpu.matmul %120, %114, %cst_71 {dimension_numbers = #tpu.dot_dimension_numbers<[1], [0], [0], [1], [0, 0, 1, 1], [], []>} : vector<128x128xbf16>, vector<128x32xbf16>, vector<128x32xf32> -> vector<128x32xf32>
    %133 = vector.broadcast %121 : vector<128x1xf32> to vector<128x32xf32>
    %134 = arith.addf %132, %133 : vector<128x32xf32>
    %135 = vector.shape_cast %128 : vector<128x16xf32> to vector<4x32x16xf32>
    %136 = arith.truncf %135 : vector<4x32x16xf32> to vector<4x32x16xbf16>
    %137 = vector.shape_cast %131 : vector<128x32xf32> to vector<4x32x32xf32>
    %138 = arith.truncf %137 : vector<4x32x32xf32> to vector<4x32x32xbf16>
    %139 = vector.shape_cast %134 : vector<128x32xf32> to vector<4x32x32xf32>
    %140 = arith.truncf %139 : vector<4x32x32xf32> to vector<4x32x32xbf16>
    %cst_72 = arith.constant dense<0.000000e+00> : vector<4x16x32xf32>
    %141 = tpu.matmul %136, %138, %cst_72 {dimension_numbers = #tpu.dot_dimension_numbers<[1], [1], [2], [2], [0, 0, 0, 2, 1, 2], [0], [0]>} : vector<4x32x16xbf16>, vector<4x32x32xbf16>, vector<4x16x32xf32> -> vector<4x16x32xf32>
    %142 = vector.shape_cast %9 : vector<16x32xf32> to vector<1x16x32xf32>
    %143 = vector.broadcast %142 : vector<1x16x32xf32> to vector<4x16x32xf32>
    %144 = arith.addf %141, %143 : vector<4x16x32xf32>
    %cst_73 = arith.constant dense<0xFF800000> : vector<4x16xf32>
    %145 = vector.multi_reduction <maximumf>, %144, %cst_73 [2] : vector<4x16x32xf32> to vector<4x16xf32>
    %146 = vector.shape_cast %145 : vector<4x16xf32> to vector<4x16x1xf32>
    %147 = vector.broadcast %146 : vector<4x16x1xf32> to vector<4x16x32xf32>
    %148 = arith.subf %144, %147 : vector<4x16x32xf32>
    %149 = math.exp %148 : vector<4x16x32xf32>
    %cst_74 = arith.constant dense<0.000000e+00> : vector<4x16xf32>
    %150 = vector.multi_reduction <add>, %149, %cst_74 [2] : vector<4x16x32xf32> to vector<4x16xf32>
    %151 = vector.shape_cast %150 : vector<4x16xf32> to vector<4x16x1xf32>
    %152 = tpu.reciprocal %151 {approx = true} : vector<4x16x1xf32> -> vector<4x16x1xf32>
    %153 = vector.broadcast %152 : vector<4x16x1xf32> to vector<4x16x32xf32>
    %154 = arith.mulf %149, %153 : vector<4x16x32xf32>
    %155 = arith.truncf %154 : vector<4x16x32xf32> to vector<4x16x32xbf16>
    %cst_75 = arith.constant dense<0.000000e+00> : vector<4x32x16xf32>
    %156 = tpu.matmul %140, %155, %cst_75 {dimension_numbers = #tpu.dot_dimension_numbers<[2], [2], [1], [1], [0, 0, 0, 1, 1, 1], [0], [0]>} : vector<4x32x32xbf16>, vector<4x16x32xbf16>, vector<4x32x16xf32> -> vector<4x32x16xf32>
    %157 = vector.shape_cast %156 : vector<4x32x16xf32> to vector<128x16xf32>
    %158 = arith.truncf %157 : vector<128x16xf32> to vector<128x16xbf16>
    %cst_76 = arith.constant dense<0.000000e+00> : vector<128x16xf32>
    %159 = tpu.matmul %122, %158, %cst_76 {dimension_numbers = #tpu.dot_dimension_numbers<[1], [0], [0], [1], [0, 0, 1, 1], [], []>} : vector<128x128xbf16>, vector<128x16xbf16>, vector<128x16xf32> -> vector<128x16xf32>
    %160 = vector.broadcast %123 : vector<128x1xf32> to vector<128x16xf32>
    %161 = arith.addf %159, %160 : vector<128x16xf32>
    %162 = arith.truncf %131 : vector<128x32xf32> to vector<128x32xbf16>
    %163 = tpu.transpose %162, [1, 0] : vector<128x32xbf16> -> vector<32x128xbf16>
    %c0_77 = arith.constant 0 : index
    %c0_78 = arith.constant 0 : index
    %c0_79 = arith.constant 0 : index
    %164 = vector.load %arg35[%c0_77, %c0_78, %c0_79] : memref<1x32x128xbf16, #tpu.memory_space<vmem>>, vector<1x32x128xbf16>
    %165 = vector.shape_cast %164 : vector<1x32x128xbf16> to vector<32x128xbf16>
    %166 = vector.shape_cast %163 : vector<32x128xbf16> to vector<1x32x128xbf16>
    tpu.vector_store %arg35[%c0_77, %c0_78, %c0_79], %166 {strides = array<i32>} : memref<1x32x128xbf16, #tpu.memory_space<vmem>>, vector<1x32x128xbf16>,
    %167 = arith.truncf %134 : vector<128x32xf32> to vector<128x32xbf16>
    %168 = tpu.transpose %167, [1, 0] : vector<128x32xbf16> -> vector<32x128xbf16>
    %c0_80 = arith.constant 0 : index
    %c0_81 = arith.constant 0 : index
    %c0_82 = arith.constant 0 : index
    %169 = vector.load %arg36[%c0_80, %c0_81, %c0_82] : memref<1x32x128xbf16, #tpu.memory_space<vmem>>, vector<1x32x128xbf16>
    %170 = vector.shape_cast %169 : vector<1x32x128xbf16> to vector<32x128xbf16>
    %171 = vector.shape_cast %168 : vector<32x128xbf16> to vector<1x32x128xbf16>
    tpu.vector_store %arg36[%c0_80, %c0_81, %c0_82], %171 {strides = array<i32>} : memref<1x32x128xbf16, #tpu.memory_space<vmem>>, vector<1x32x128xbf16>,
    %172 = arith.addf %90, %161 : vector<128x16xf32>
    %c0_83 = arith.constant 0 : index
    %c0_84 = arith.constant 0 : index
    %173 = vector.load %arg24[%c0_83, %c0_84] : memref<128x1xf32, #tpu.memory_space<vmem>>, vector<128x1xf32>
    %c0_85 = arith.constant 0 : index
    %c0_86 = arith.constant 0 : index
    %174 = vector.load %arg25[%c0_85, %c0_86] : memref<128x1xf32, #tpu.memory_space<vmem>>, vector<128x1xf32>
    %cst_87 = arith.constant dense<0.000000e+00> : vector<16xf32>
    %175 = vector.multi_reduction <add>, %172, %cst_87 [0] : vector<128x16xf32> to vector<16xf32>
    %176 = vector.shape_cast %175 : vector<16xf32> to vector<1x16xf32>
    %cst_88 = arith.constant 1.280000e+02 : f32
    %177 = vector.broadcast %cst_88 : f32 to vector<1x16xf32>
    %178 = arith.divf %176, %177 : vector<1x16xf32>
    %179 = vector.broadcast %178 : vector<1x16xf32> to vector<128x16xf32>
    %180 = arith.subf %172, %179 : vector<128x16xf32>
    %181 = arith.mulf %180, %180 : vector<128x16xf32>
    %cst_89 = arith.constant dense<0.000000e+00> : vector<16xf32>
    %182 = vector.multi_reduction <add>, %181, %cst_89 [0] : vector<128x16xf32> to vector<16xf32>
    %183 = vector.shape_cast %182 : vector<16xf32> to vector<1x16xf32>
    %cst_90 = arith.constant 1.280000e+02 : f32
    %184 = vector.broadcast %cst_90 : f32 to vector<1x16xf32>
    %185 = arith.divf %183, %184 : vector<1x16xf32>
    %186 = vector.broadcast %178 : vector<1x16xf32> to vector<128x16xf32>
    %187 = arith.subf %172, %186 : vector<128x16xf32>
    %cst_91 = arith.constant 9.99999974E-6 : f32
    %188 = vector.broadcast %cst_91 : f32 to vector<1x16xf32>
    %189 = arith.addf %185, %188 : vector<1x16xf32>
    %190 = math.rsqrt %189 : vector<1x16xf32>
    %191 = vector.broadcast %190 : vector<1x16xf32> to vector<128x16xf32>
    %192 = arith.mulf %187, %191 : vector<128x16xf32>
    %193 = vector.broadcast %173 : vector<128x1xf32> to vector<128x16xf32>
    %194 = arith.mulf %192, %193 : vector<128x16xf32>
    %195 = vector.broadcast %174 : vector<128x1xf32> to vector<128x16xf32>
    %196 = arith.addf %194, %195 : vector<128x16xf32>
    %c0_92 = arith.constant 0 : index
    %c0_93 = arith.constant 0 : index
    %197 = vector.load %arg26[%c0_92, %c0_93] : memref<256x128xbf16, #tpu.memory_space<vmem>>, vector<256x128xbf16>
    %198 = arith.truncf %196 : vector<128x16xf32> to vector<128x16xbf16>
    %cst_94 = arith.constant dense<0.000000e+00> : vector<256x16xf32>
    %199 = tpu.matmul %197, %198, %cst_94 {dimension_numbers = #tpu.dot_dimension_numbers<[1], [0], [0], [1], [0, 0, 1, 1], [], []>} : vector<256x128xbf16>, vector<128x16xbf16>, vector<256x16xf32> -> vector<256x16xf32>
    %c0_95 = arith.constant 0 : index
    %c0_96 = arith.constant 0 : index
    %200 = vector.load %arg27[%c0_95, %c0_96] : memref<256x1xf32, #tpu.memory_space<vmem>>, vector<256x1xf32>
    %201 = vector.broadcast %200 : vector<256x1xf32> to vector<256x16xf32>
    %202 = arith.addf %199, %201 : vector<256x16xf32>
    %203 = arith.mulf %202, %202 : vector<256x16xf32>
    %204 = arith.mulf %202, %203 : vector<256x16xf32>
    %cst_97 = arith.constant 4.471500e-02 : f32
    %205 = vector.broadcast %cst_97 : f32 to vector<256x16xf32>
    %206 = arith.mulf %205, %204 : vector<256x16xf32>
    %207 = arith.addf %202, %206 : vector<256x16xf32>
    %cst_98 = arith.constant 0.797884583 : f32
    %208 = vector.broadcast %cst_98 : f32 to vector<256x16xf32>
    %209 = arith.mulf %208, %207 : vector<256x16xf32>
    %210 = math.tanh %209 : vector<256x16xf32>
    %cst_99 = arith.constant 1.000000e+00 : f32
    %211 = vector.broadcast %cst_99 : f32 to vector<256x16xf32>
    %212 = arith.addf %211, %210 : vector<256x16xf32>
    %cst_100 = arith.constant 5.000000e-01 : f32
    %213 = vector.broadcast %cst_100 : f32 to vector<256x16xf32>
    %214 = arith.mulf %213, %212 : vector<256x16xf32>
    %215 = arith.mulf %202, %214 : vector<256x16xf32>
    %c0_101 = arith.constant 0 : index
    %c0_102 = arith.constant 0 : index
    %216 = vector.load %arg28[%c0_101, %c0_102] : memref<128x256xbf16, #tpu.memory_space<vmem>>, vector<128x256xbf16>
    %217 = arith.truncf %215 : vector<256x16xf32> to vector<256x16xbf16>
    %cst_103 = arith.constant dense<0.000000e+00> : vector<128x16xf32>
    %218 = tpu.matmul %216, %217, %cst_103 {dimension_numbers = #tpu.dot_dimension_numbers<[1], [0], [0], [1], [0, 0, 1, 1], [], []>} : vector<128x256xbf16>, vector<256x16xbf16>, vector<128x16xf32> -> vector<128x16xf32>
    %c0_104 = arith.constant 0 : index
    %c0_105 = arith.constant 0 : index
    %219 = vector.load %arg29[%c0_104, %c0_105] : memref<128x1xf32, #tpu.memory_space<vmem>>, vector<128x1xf32>
    %220 = vector.broadcast %219 : vector<128x1xf32> to vector<128x16xf32>
    %221 = arith.addf %218, %220 : vector<128x16xf32>
    %222 = arith.addf %196, %221 : vector<128x16xf32>
    %c0_106 = arith.constant 0 : index
    %c0_107 = arith.constant 0 : index
    %223 = vector.load %arg30[%c0_106, %c0_107] : memref<128x1xf32, #tpu.memory_space<vmem>>, vector<128x1xf32>
    %c0_108 = arith.constant 0 : index
    %c0_109 = arith.constant 0 : index
    %224 = vector.load %arg31[%c0_108, %c0_109] : memref<128x1xf32, #tpu.memory_space<vmem>>, vector<128x1xf32>
    %cst_110 = arith.constant dense<0.000000e+00> : vector<16xf32>
    %225 = vector.multi_reduction <add>, %222, %cst_110 [0] : vector<128x16xf32> to vector<16xf32>
    %226 = vector.shape_cast %225 : vector<16xf32> to vector<1x16xf32>
    %cst_111 = arith.constant 1.280000e+02 : f32
    %227 = vector.broadcast %cst_111 : f32 to vector<1x16xf32>
    %228 = arith.divf %226, %227 : vector<1x16xf32>
    %229 = vector.broadcast %228 : vector<1x16xf32> to vector<128x16xf32>
    %230 = arith.subf %222, %229 : vector<128x16xf32>
    %231 = arith.mulf %230, %230 : vector<128x16xf32>
    %cst_112 = arith.constant dense<0.000000e+00> : vector<16xf32>
    %232 = vector.multi_reduction <add>, %231, %cst_112 [0] : vector<128x16xf32> to vector<16xf32>
    %233 = vector.shape_cast %232 : vector<16xf32> to vector<1x16xf32>
    %cst_113 = arith.constant 1.280000e+02 : f32
    %234 = vector.broadcast %cst_113 : f32 to vector<1x16xf32>
    %235 = arith.divf %233, %234 : vector<1x16xf32>
    %236 = vector.broadcast %228 : vector<1x16xf32> to vector<128x16xf32>
    %237 = arith.subf %222, %236 : vector<128x16xf32>
    %cst_114 = arith.constant 9.99999974E-6 : f32
    %238 = vector.broadcast %cst_114 : f32 to vector<1x16xf32>
    %239 = arith.addf %235, %238 : vector<1x16xf32>
    %240 = math.rsqrt %239 : vector<1x16xf32>
    %241 = vector.broadcast %240 : vector<1x16xf32> to vector<128x16xf32>
    %242 = arith.mulf %237, %241 : vector<128x16xf32>
    %243 = vector.broadcast %223 : vector<128x1xf32> to vector<128x16xf32>
    %244 = arith.mulf %242, %243 : vector<128x16xf32>
    %245 = vector.broadcast %224 : vector<128x1xf32> to vector<128x16xf32>
    %246 = arith.addf %244, %245 : vector<128x16xf32>
    %247 = tpu.transpose %246, [1, 0] : vector<128x16xf32> -> vector<16x128xf32>
    %c0_115 = arith.constant 0 : index
    %c0_116 = arith.constant 0 : index
    %c0_117 = arith.constant 0 : index
    %248 = vector.load %arg32[%c0_115, %c0_116, %c0_117] : memref<1x16x128xf32, #tpu.memory_space<vmem>>, vector<1x16x128xf32>
    %249 = vector.shape_cast %248 : vector<1x16x128xf32> to vector<16x128xf32>
    %250 = vector.shape_cast %247 : vector<16x128xf32> to vector<1x16x128xf32>
    tpu.vector_store %arg32[%c0_115, %c0_116, %c0_117], %250 {strides = array<i32>} : memref<1x16x128xf32, #tpu.memory_space<vmem>>, vector<1x16x128xf32>,
    return
  }
  func.func @transform_0(%arg0: i32, %arg1: memref<3xf32, #tpu.memory_space<smem>>) -> (i32, i32, i32) {
    %c0_i32 = arith.constant 0 : i32
    %c0_i32_0 = arith.constant 0 : i32
    %c0_i32_1 = arith.constant 0 : i32
    return %arg0, %c0_i32, %c0_i32_0 : i32, i32, i32
  }
  func.func @transform_1(%arg0: i32, %arg1: memref<3xf32, #tpu.memory_space<smem>>) -> (i32, i32, i32, i32) {
    %c0_i32 = arith.constant 0 : i32
    %c0_i32_0 = arith.constant 0 : i32
    %c0_i32_1 = arith.constant 0 : i32
    %c0_i32_2 = arith.constant 0 : i32
    return %arg0, %c0_i32, %c0_i32_0, %c0_i32_1 : i32, i32, i32, i32
  }
  func.func @transform_2(%arg0: i32, %arg1: memref<3xf32, #tpu.memory_space<smem>>) -> (i32, i32, i32) {
    %c0_i32 = arith.constant 0 : i32
    %c0_i32_0 = arith.constant 0 : i32
    %c0_i32_1 = arith.constant 0 : i32
    return %arg0, %c0_i32, %c0_i32_0 : i32, i32, i32
  }
  func.func @transform_3(%arg0: i32, %arg1: memref<3xf32, #tpu.memory_space<smem>>) -> (i32, i32, i32) {
    %c0_i32 = arith.constant 0 : i32
    %c0_i32_0 = arith.constant 0 : i32
    %c0_i32_1 = arith.constant 0 : i32
    return %arg0, %c0_i32, %c0_i32_0 : i32, i32, i32
  }
  func.func @transform_4(%arg0: i32, %arg1: memref<3xf32, #tpu.memory_space<smem>>) -> (i32, i32) {
    %c0_i32 = arith.constant 0 : i32
    %c0_i32_0 = arith.constant 0 : i32
    %c0_i32_1 = arith.constant 0 : i32
    return %c0_i32, %c0_i32_0 : i32, i32
  }
  func.func @transform_5(%arg0: i32, %arg1: memref<3xf32, #tpu.memory_space<smem>>) -> (i32, i32) {
    %c0_i32 = arith.constant 0 : i32
    %c0_i32_0 = arith.constant 0 : i32
    %c0_i32_1 = arith.constant 0 : i32
    return %c0_i32, %c0_i32_0 : i32, i32
  }
  func.func @transform_6(%arg0: i32, %arg1: memref<3xf32, #tpu.memory_space<smem>>) -> (i32, i32) {
    %c0_i32 = arith.constant 0 : i32
    %c0_i32_0 = arith.constant 0 : i32
    %c0_i32_1 = arith.constant 0 : i32
    return %c0_i32, %c0_i32_0 : i32, i32
  }
  func.func @transform_7(%arg0: i32, %arg1: memref<3xf32, #tpu.memory_space<smem>>) -> (i32, i32) {
    %c0_i32 = arith.constant 0 : i32
    %c0_i32_0 = arith.constant 0 : i32
    %c0_i32_1 = arith.constant 0 : i32
    return %c0_i32, %c0_i32_0 : i32, i32
  }
  func.func @transform_8(%arg0: i32, %arg1: memref<3xf32, #tpu.memory_space<smem>>) -> (i32, i32) {
    %c0_i32 = arith.constant 0 : i32
    %c0_i32_0 = arith.constant 0 : i32
    %c0_i32_1 = arith.constant 0 : i32
    return %c0_i32, %c0_i32_0 : i32, i32
  }
  func.func @transform_9(%arg0: i32, %arg1: memref<3xf32, #tpu.memory_space<smem>>) -> (i32, i32) {
    %c0_i32 = arith.constant 0 : i32
    %c0_i32_0 = arith.constant 0 : i32
    %c0_i32_1 = arith.constant 0 : i32
    return %c0_i32, %c0_i32_0 : i32, i32
  }
  func.func @transform_10(%arg0: i32, %arg1: memref<3xf32, #tpu.memory_space<smem>>) -> (i32, i32) {
    %c0_i32 = arith.constant 0 : i32
    %c0_i32_0 = arith.constant 0 : i32
    %c0_i32_1 = arith.constant 0 : i32
    return %c0_i32, %c0_i32_0 : i32, i32
  }
  func.func @transform_11(%arg0: i32, %arg1: memref<3xf32, #tpu.memory_space<smem>>) -> (i32, i32) {
    %c0_i32 = arith.constant 0 : i32
    %c0_i32_0 = arith.constant 0 : i32
    %c0_i32_1 = arith.constant 0 : i32
    return %c0_i32, %c0_i32_0 : i32, i32
  }
  func.func @transform_12(%arg0: i32, %arg1: memref<3xf32, #tpu.memory_space<smem>>) -> (i32, i32) {
    %c0_i32 = arith.constant 0 : i32
    %c0_i32_0 = arith.constant 0 : i32
    %c0_i32_1 = arith.constant 0 : i32
    return %c0_i32, %c0_i32_0 : i32, i32
  }
  func.func @transform_13(%arg0: i32, %arg1: memref<3xf32, #tpu.memory_space<smem>>) -> (i32, i32) {
    %c0_i32 = arith.constant 0 : i32
    %c0_i32_0 = arith.constant 0 : i32
    %c0_i32_1 = arith.constant 0 : i32
    return %c0_i32, %c0_i32_0 : i32, i32
  }
  func.func @transform_14(%arg0: i32, %arg1: memref<3xf32, #tpu.memory_space<smem>>) -> (i32, i32) {
    %c0_i32 = arith.constant 0 : i32
    %c0_i32_0 = arith.constant 0 : i32
    %c0_i32_1 = arith.constant 0 : i32
    return %c0_i32, %c0_i32_0 : i32, i32
  }
  func.func @transform_15(%arg0: i32, %arg1: memref<3xf32, #tpu.memory_space<smem>>) -> (i32, i32) {
    %c0_i32 = arith.constant 0 : i32
    %c0_i32_0 = arith.constant 0 : i32
    %c0_i32_1 = arith.constant 0 : i32
    return %c0_i32, %c0_i32_0 : i32, i32
  }
  func.func @transform_16(%arg0: i32, %arg1: memref<3xf32, #tpu.memory_space<smem>>) -> (i32, i32) {
    %c0_i32 = arith.constant 0 : i32
    %c0_i32_0 = arith.constant 0 : i32
    %c0_i32_1 = arith.constant 0 : i32
    return %c0_i32, %c0_i32_0 : i32, i32
  }
  func.func @transform_17(%arg0: i32, %arg1: memref<3xf32, #tpu.memory_space<smem>>) -> (i32, i32) {
    %c0_i32 = arith.constant 0 : i32
    %c0_i32_0 = arith.constant 0 : i32
    %c0_i32_1 = arith.constant 0 : i32
    return %c0_i32, %c0_i32_0 : i32, i32
  }
  func.func @transform_18(%arg0: i32, %arg1: memref<3xf32, #tpu.memory_space<smem>>) -> (i32, i32) {
    %c0_i32 = arith.constant 0 : i32
    %c0_i32_0 = arith.constant 0 : i32
    %c0_i32_1 = arith.constant 0 : i32
    return %c0_i32, %c0_i32_0 : i32, i32
  }
  func.func @transform_19(%arg0: i32, %arg1: memref<3xf32, #tpu.memory_space<smem>>) -> (i32, i32) {
    %c0_i32 = arith.constant 0 : i32
    %c0_i32_0 = arith.constant 0 : i32
    %c0_i32_1 = arith.constant 0 : i32
    return %c0_i32, %c0_i32_0 : i32, i32
  }
  func.func @transform_20(%arg0: i32, %arg1: memref<3xf32, #tpu.memory_space<smem>>) -> (i32, i32) {
    %c0_i32 = arith.constant 0 : i32
    %c0_i32_0 = arith.constant 0 : i32
    %c0_i32_1 = arith.constant 0 : i32
    return %c0_i32, %c0_i32_0 : i32, i32
  }
  func.func @transform_21(%arg0: i32, %arg1: memref<3xf32, #tpu.memory_space<smem>>) -> (i32, i32) {
    %c0_i32 = arith.constant 0 : i32
    %c0_i32_0 = arith.constant 0 : i32
    %c0_i32_1 = arith.constant 0 : i32
    return %c0_i32, %c0_i32_0 : i32, i32
  }
  func.func @transform_22(%arg0: i32, %arg1: memref<3xf32, #tpu.memory_space<smem>>) -> (i32, i32) {
    %c0_i32 = arith.constant 0 : i32
    %c0_i32_0 = arith.constant 0 : i32
    %c0_i32_1 = arith.constant 0 : i32
    return %c0_i32, %c0_i32_0 : i32, i32
  }
  func.func @transform_23(%arg0: i32, %arg1: memref<3xf32, #tpu.memory_space<smem>>) -> (i32, i32) {
    %c0_i32 = arith.constant 0 : i32
    %c0_i32_0 = arith.constant 0 : i32
    %c0_i32_1 = arith.constant 0 : i32
    return %c0_i32, %c0_i32_0 : i32, i32
  }
  func.func @transform_24(%arg0: i32, %arg1: memref<3xf32, #tpu.memory_space<smem>>) -> (i32, i32) {
    %c0_i32 = arith.constant 0 : i32
    %c0_i32_0 = arith.constant 0 : i32
    %c0_i32_1 = arith.constant 0 : i32
    return %c0_i32, %c0_i32_0 : i32, i32
  }
  func.func @transform_25(%arg0: i32, %arg1: memref<3xf32, #tpu.memory_space<smem>>) -> (i32, i32) {
    %c0_i32 = arith.constant 0 : i32
    %c0_i32_0 = arith.constant 0 : i32
    %c0_i32_1 = arith.constant 0 : i32
    return %c0_i32, %c0_i32_0 : i32, i32
  }
  func.func @transform_26(%arg0: i32, %arg1: memref<3xf32, #tpu.memory_space<smem>>) -> (i32, i32) {
    %c0_i32 = arith.constant 0 : i32
    %c0_i32_0 = arith.constant 0 : i32
    %c0_i32_1 = arith.constant 0 : i32
    return %c0_i32, %c0_i32_0 : i32, i32
  }
  func.func @transform_27(%arg0: i32, %arg1: memref<3xf32, #tpu.memory_space<smem>>) -> (i32, i32) {
    %c0_i32 = arith.constant 0 : i32
    %c0_i32_0 = arith.constant 0 : i32
    %c0_i32_1 = arith.constant 0 : i32
    return %c0_i32, %c0_i32_0 : i32, i32
  }
  func.func @transform_28(%arg0: i32, %arg1: memref<3xf32, #tpu.memory_space<smem>>) -> (i32, i32) {
    %c0_i32 = arith.constant 0 : i32
    %c0_i32_0 = arith.constant 0 : i32
    %c0_i32_1 = arith.constant 0 : i32
    return %c0_i32, %c0_i32_0 : i32, i32
  }
  func.func @transform_29(%arg0: i32, %arg1: memref<3xf32, #tpu.memory_space<smem>>) -> (i32, i32) {
    %c0_i32 = arith.constant 0 : i32
    %c0_i32_0 = arith.constant 0 : i32
    %c0_i32_1 = arith.constant 0 : i32
    return %c0_i32, %c0_i32_0 : i32, i32
  }
  func.func @transform_30(%arg0: i32, %arg1: memref<3xf32, #tpu.memory_space<smem>>) -> (i32, i32, i32) {
    %c0_i32 = arith.constant 0 : i32
    %c0_i32_0 = arith.constant 0 : i32
    %c0_i32_1 = arith.constant 0 : i32
    return %arg0, %c0_i32, %c0_i32_0 : i32, i32, i32
  }
  func.func @transform_31(%arg0: i32, %arg1: memref<3xf32, #tpu.memory_space<smem>>) -> (i32, i32, i32) {
    %c0_i32 = arith.constant 0 : i32
    %c0_i32_0 = arith.constant 0 : i32
    %c0_i32_1 = arith.constant 0 : i32
    return %arg0, %c0_i32, %c0_i32_0 : i32, i32, i32
  }
  func.func @transform_32(%arg0: i32, %arg1: memref<3xf32, #tpu.memory_space<smem>>) -> (i32, i32, i32) {
    %c0_i32 = arith.constant 0 : i32
    %c0_i32_0 = arith.constant 0 : i32
    %c0_i32_1 = arith.constant 0 : i32
    return %arg0, %c0_i32, %c0_i32_0 : i32, i32, i32
  }
  func.func @transform_33(%arg0: i32, %arg1: memref<3xf32, #tpu.memory_space<smem>>) -> (i32, i32, i32) {
    %c0_i32 = arith.constant 0 : i32
    %c0_i32_0 = arith.constant 0 : i32
    %c0_i32_1 = arith.constant 0 : i32
    return %arg0, %c0_i32, %c0_i32_0 : i32, i32, i32
  }
  func.func @transform_34(%arg0: i32, %arg1: memref<3xf32, #tpu.memory_space<smem>>) -> (i32, i32, i32) {
    %c0_i32 = arith.constant 0 : i32
    %c0_i32_0 = arith.constant 0 : i32
    %c0_i32_1 = arith.constant 0 : i32
    return %arg0, %c0_i32, %c0_i32_0 : i32, i32, i32
  }
}

</mosaic_0001>

<bundles_post_ra>
// kernel: multi_channel_decoder_layer.1
= control target key start
LH: loop header
LB: loop body
LE: loop exit
PB: predicated region body
PF: predicated region fallthrough
CT: control target
= control target key end

     0   :  { %s8432_s6 = smov 1   ;;  %s8433_s10 = smov 2   ;;  %s11148_s0 = inlined_call_operand.smem [shape: u32[36], index: -1, kind: input, shape index: {}] }
   0x1   :  { %s8482_s5 = sld [smem:[%s11148_s0]]   ;;  %s8434_s14 = smov 3  }
   0x2   :  { %s8487_s9 = sld [smem:[%s11148_s0 + %s8432_s6]]   ;;  %s8435_s18 = smov 4  }
   0x3   :  { %s8492_s13 = sld [smem:[%s11148_s0 + %s8433_s10]]   ;;  %s8436_s22 = smov 5  }
   0x4   :  { %s8497_s17 = sld [smem:[%s11148_s0 + %s8434_s14]]   ;;  %s8437_s26 = smov 6  }
   0x5   :  { %s8502_s21 = sld [smem:[%s11148_s0 + %s8435_s18]]   ;;  %s8438_s30 = smov 7  }
   0x6   :  { %s8507_s25 = sld [smem:[%s11148_s0 + %s8436_s22]]   ;;  %s8439_s4 = smov 8  }
   0x7   :  { %s8512_s29 = sld [smem:[%s11148_s0 + %s8437_s26]]   ;;  %s8440_s10 = smov 9  }
   0x8   :  { %11224 = sst [smem:[#allocation8_spill]] %s8487_s9  ;;  %s8441_s15 = smov 10  }
   0x9   :  { %11225 = sst [smem:[#allocation9_spill]] %s8492_s13  ;;  %s8442_s20 = smov 11  }
   0xa   :  { %s8517_s3 = sld [smem:[%s11148_s0 + %s8438_s30]]   ;;  %s8443_s26 = smov 12  }
   0xb   :  { %11226 = sst [smem:[#allocation10_spill]] %s8502_s21  ;;  %s8444_s1 = smov 13  }
   0xc   :  { %s8522_s8 = sld [smem:[%s11148_s0 + %s8439_s4]]   ;;  %s8445_s7 = smov 14  }
   0xd   :  { %s8527_s14 = sld [smem:[%s11148_s0 + %s8440_s10]]   ;;  %s8447_s22 = smov 16  }
   0xe   :  { %s8532_s19 = sld [smem:[%s11148_s0 + %s8441_s15]]   ;;  %s8446_s15 = smov 15  }
   0xf   :  { %s8537_s24 = sld [smem:[%s11148_s0 + %s8442_s20]]   ;;  %s8448_s28 = smov 17  }
  0x10   :  { %11227 = sst [smem:[#allocation11_spill]] %s8517_s3 }
  0x11   :  { %s8542_s30 = sld [smem:[%s11148_s0 + %s8443_s26]]  }
  0x12   :  { %11228 = sst [smem:[#allocation12_spill]] %s8522_s8 }
  0x13   :  { %s8547_s6 = sld [smem:[%s11148_s0 + %s8444_s1]]  }
  0x14   :  { %s8552_s12 = sld [smem:[%s11148_s0 + %s8445_s7]]   ;;  %s8449_s7 = smov 18  }
  0x15   :  { %11229 = sst [smem:[#allocation13_spill]] %s8537_s24 }
  0x16   :  { %s8557_s20 = sld [smem:[%s11148_s0 + %s8446_s15]]   ;;  %s8450_s15 = smov 19  }
  0x17   :  { %s8562_s27 = sld [smem:[%s11148_s0 + %s8447_s22]]   ;;  %s8451_s22 = smov 20  }
  0x18   :  { %s8567_s4 = sld [smem:[%s11148_s0 + %s8448_s28]]   ;;  %s8452_s28 = smov 21  }
  0x19   :  { %11230 = sst [smem:[#allocation14_spill]] %s8547_s6 }
  0x1a   :  { %11231 = sst [smem:[#allocation15_spill]] %s8552_s12 }
  0x1b   :  { %s8572_s21 = sld [smem:[%s11148_s0 + %s8449_s7]]   ;;  %s8453_s7 = smov 22  }
  0x1c   :  { %11232 = sst [smem:[#allocation16_spill]] %s8557_s20 }
  0x1d   :  { %s8577_s20 = sld [smem:[%s11148_s0 + %s8450_s15]]   ;;  %s8454_s15 = smov 23  }
  0x1e   :  { %11233 = sst [smem:[#allocation17_spill]] %s8567_s4 }
  0x1f   :  { %s8582_s13 = sld [smem:[%s11148_s0 + %s8451_s22]]   ;;  %s8455_s22 = smov 24  }
  0x20   :  { %s8587_s4 = sld [smem:[%s11148_s0 + %s8452_s28]]   ;;  %s8456_s28 = smov 25  }
  0x21   :  { %s8592_s24 = sld [smem:[%s11148_s0 + %s8453_s7]]   ;;  %s8457_s7 = smov 26  }
  0x22   :  { %s8612_s16 = sld [smem:[%s11148_s0 + %s8457_s7]]   ;;  %s8461_s7 = smov 30  }
  0x23   :  { %11234 = sst [smem:[#allocation18_spill]] %s8577_s20 }
  0x24   :  { %s8597_s20 = sld [smem:[%s11148_s0 + %s8454_s15]]   ;;  %s8458_s15 = smov 27  }
  0x25   :  { %11235 = sst [smem:[#allocation19_spill]] %s8582_s13 }
  0x26   :  { %11236 = sst [smem:[#allocation20_spill]] %s8587_s4 }
  0x27   :  { %11237 = sst [smem:[#allocation21_spill]] %s8592_s24 }
  0x28   :  { %s8602_s13 = sld [smem:[%s11148_s0 + %s8455_s22]]   ;;  %s8459_s22 = smov 28  }
  0x29   :  { %s8607_s4 = sld [smem:[%s11148_s0 + %s8456_s28]]   ;;  %s8460_s28 = smov 29  }
  0x2a   :  { %11238 = sst [smem:[#allocation22_spill]] %s8597_s20  ;;  %s8462_s20 = smov 31  }
  0x2b   :  { %11241 = sst [smem:[#allocation25_spill]] %s8612_s16  ;;  %s77_s16 = sshll.u32 %s8482_s5, 4  ;;  %s78_s16 = int_to_ptr.vmem [resolvable:$true] %s77_s16 }
  0x2c   :  { %s8617_s23 = sld [smem:[%s11148_s0 + %s8458_s15]]   ;;  %p8361_p1 = scmp.lt.s32.totalorder %s78_s16, %s78_s16 }
  0x2d   :  { %s8622_s1 = sld [smem:[%s11148_s0 + %s8459_s22]]   ;;  %s8356_s22 = scalar_lea.vmem %s78_s16, 16 }
  0x2e   :  { %11239 = sst [smem:[#allocation23_spill]] %s8602_s13  ;;  %s8463_s13 = smov 32  }
  0x2f   :  { %11240 = sst [smem:[#allocation24_spill]] %s8607_s4  ;;  %s8464_s4 = smov 33  }
  0x30   :  { %s8627_s10 = sld [smem:[%s11148_s0 + %s8460_s28]]   ;;  %p8357_p0 = scmp.ne.s32.totalorder %s78_s16, %s8356_s22 }
  0x31   :  { %s8632_s24 = sld [smem:[%s11148_s0 + %s8461_s7]]   ;;  %s8465_s7 = smov 34  }
  0x32   :  { %11242 = sst [smem:[#allocation26_spill]] %s8617_s23  ;;  %p8362_p2 = scmp.lt.s32.totalorder %s8356_s22, %s8356_s22 }
  0x33   :  { %11243 = sst [smem:[#allocation27_spill]] %s8622_s1 }
  0x34   :  { %s8637_s23 = sld [smem:[%s11148_s0 + %s8462_s20]]   ;;  %s8466_s20 = smov 35  }
  0x35   :  { %s8642_s1 = sld [smem:[%s11148_s0 + %s8463_s13]]   ;;  %p8363_p3 = por %p8362_p2, %p8361_p1 }
  0x36   :  { %11244 = sst [smem:[#allocation28_spill]] %s8627_s10 }
  0x37   :  { %11245 = sst [smem:[#allocation29_spill]] %s8632_s24  ;;  %p8364_p4 = pnand %p8363_p3, %p8357_p0 }
  0x38   :  { %s8647_s10 = sld [smem:[%s11148_s0 + %s8464_s4]]  }
  0x39   :  { %s8653_s15 = sld [smem:[%s11148_s0 + %s8465_s7]]  }
  0x3a   :  { %11246 = sst [smem:[#allocation30_spill]] %s8637_s23 }
  0x3b   :  { %11247 = sst [smem:[#allocation31_spill]] %s8642_s1 }
  0x3c   :  { %s8658_s13 = sld [smem:[%s11148_s0 + %s8466_s20]]  }
  0x3e   :  { %11248 = sst [smem:[#allocation32_spill]] %s8647_s10 }
  0x3f   :  { %8367 = shalt.err (!%p8364_p4)  }
  0x40   :  { %s8467_s5 = smov [#allocation3]  }
  0x41   :  { %80 = dma.vmem_to_smem %s78_s16, 16, %s8467_s5, [#allocation2] }
  0x42   :  { %8410 = dma.done.wait [#allocation2], 16 }
  0x43   :  { %8411 = vsyncadd [#allocation2], 4294967280 }
  0x44   :  { %82 = sfence }
  0x45   :  { %83 = vsyncpa [#allocation5], 0 }
  0x46   :  { %85 = vsyncpa [#allocation5 + $0x1], 0  ;;  %s8660_s24 = smov 0   ;;  %s8662_s26 = smov 0  }
  0x47   :  { %s8664_s0 = smov 0   ;;  %s8666_s23 = smov 0  }
  0x48 LB: > { %s11249_s12 = sld [smem:[#allocation15_spill]]  ;;  %s8681_s4 = sadd.s32 4294967295, %s8430_s23   ;;  %s8430_s23 = sphi %s8666_s23, %s11482_s23   ;;  %s8426_s0 = sphi %s8664_s0, %s11481_s0   ;;  %s8422_s26 = sphi %s8662_s26, %s11480_s26   ;;  %s8418_s24 = sphi %s8660_s24, %s11479_s24  }
  0x49   : > { %s11250_s8 = sld [smem:[#allocation12_spill]]  ;;  %s7161_s28 = sadd.s32 4294967294, %s8430_s23  }
  0x4a   : > { %s11251_s6 = sld [smem:[#allocation14_spill]]  ;;  %s8685_s2 = sadd.s32 1, %s8430_s23  }
  0x4b   : > { %s11252_s3 = sld [smem:[#allocation11_spill]]  ;;  %s748_s16 = sadd.s32 1, %s8426_s0 }
  0x4c   : > { %s745_s7 = ssub.s32 %s8430_s23, %s8685_s2  ;;  %p758_p5 = scmp.ne.s32.totalorder %s8426_s0, %s8422_s26 }
  0x4d   : > { %p746_p6 = scmp.eq.s32.totalorder %s745_s7, 0  ;;  %p759_p7 = scmp.eq.s32.totalorder %s8681_s4, 1 }
  0x4e   : > { %p764_p8 = scmp.ne.s32.totalorder %s8422_s26, %s8418_s24  ;;  %p765_p9 = scmp.eq.s32.totalorder %s7161_s28, 1 }
  0x4f   : > { %s8696_s11 = scalar_select %p746_p6, %s8426_s0, %s748_s16  }
  0x50   : > { %p8698_p10 = por %p759_p7, %p758_p5  ;;  %p8702_p11 = por %p765_p9, %p764_p8 }
  0x51   : > { %p7164_p12 = scmp.ge.s32.totalorder %s8430_s23, 1  ;;  %p997_p13 = scmp.lt.s32.totalorder %s8430_s23, 3 }
  0x53   : > { %p998_p0 = pnand %p7164_p12, %p997_p13 }
  0x55   : > { %1001 = sbr.rel (%p998_p0) target bundleno = 4072 (0xfe8), region = 140 }
  0x5a   : > { %s11255_s9 = sld [smem:[#allocation8_spill]]  ;;  %p1118_p1 = scmp.lt.s32.totalorder %s8681_s4, 1  ;;  %v8468_v1 = vmov 0   ;;  %v1224_v2 = vld [vmem:[%s8512_s29 + $0x8] sm:$0xff]  ;;  %v1225_v3 = vld [vmem:[%s8512_s29 + $0x10] sm:$0xff]  ;;  %v1226_v4 = vld [vmem:[%s8512_s29 + $0x18] sm:$0xff] }
  0x5b   : > { %8116 = vset.pattern.permute.xlu1 %v8468_v1  ;;  %v1227_v5 = vld [vmem:[%s8512_s29 + $0x20] sm:$0xff]  ;;  %v1228_v6 = vld [vmem:[%s8512_s29 + $0x28] sm:$0xff]  ;;  %v1229_v7 = vld [vmem:[%s8512_s29 + $0x30] sm:$0xff]  ;;  %v11168_v60 = vmov 0.0   ;;  %vm8470_vm0 = vmmov 0   ;;  %vm2066_vm1 = vcmask 261120  }
  0x5c   : > { %s8710_s22 = scalar_select %p1118_p1, %s8681_s4, 1  ;;  %1342 = vperm.xlu1 %8116, %v1224_v2   ;;  %v8118_v8 = vld [vmem:[%s8507_s25] sm:$0xff]   ;;  %v1230_v10 = vld [vmem:[%s8512_s29 + $0x38] sm:$0xff]  ;;  %v1232_v12 = vld [vmem:[%s8512_s29 + $0x48] sm:$0xff]  ;;  %vm2291_vm2 = vcmask 130048  }
  0x5d   : > { %v8119_v9 = vld [vmem:[%s11252_s3] sm:$0xff]   ;;  %7634 = vmatprep.mubr.bf16.mxu0 %v8118_v8  ;;  %v1233_v13 = vld [vmem:[%s8512_s29 + $0x50] sm:$0xff]  ;;  %v1234_v14 = vld [vmem:[%s8512_s29 + $0x58] sm:$0xff]  ;;  %s11271_s7 = sld [smem:[#allocation13_spill]] }
  0x5e   : > { %s8713_s5 = sshll.u32 %s8710_s22, 3  ;;  %7666 = vmatprep.mubr.bf16.mxu1 %v8119_v9  ;;  %v1231_v11 = vld [vmem:[%s8512_s29 + $0x40] sm:$0xff]  ;;  %v1236_v15 = vld [vmem:[%s8512_s29 + $0x68] sm:$0xff]  ;;  %v1238_v16 = vld [vmem:[%s8512_s29 + $0x78] sm:$0xff]  ;;  %s11399_s10 = sld [smem:[#allocation32_spill]] }
  0x5f   : > { %v1258_v17 = vld [vmem:[%s11250_s8 + $0x18] sm:$0xff]  ;;  %v1256_v18 = vld [vmem:[%s11250_s8 + $0x8] sm:$0xff]  ;;  %v1223_v19 = vld [vmem:[%s8512_s29] sm:$0xff]  ;;  %s1132_s16 = scalar_lea.vmem %s8497_s17, %s8713_s5  ;;  %s11476_s1 = sld [smem:[#allocation31_spill]] }
  0x60   : > { %s1122_s28 = scalar_lea.vmem %s11255_s9, %s8713_s5  ;;  %1347 = vperm.xlu1 %8116, %v1225_v3   ;;  %v1235_v20 = vld [vmem:[%s8512_s29 + $0x60] sm:$0xff]  ;;  %v1262_v21 = vld [vmem:[%s11250_s8 + $0x38] sm:$0xff]  ;;  %v1237_v22 = vld [vmem:[%s8512_s29 + $0x70] sm:$0xff]  ;;  %s7231_s9 = sld [smem:[#allocation3 + $0x2]] }
  0x61   : > { %v8117_v0 = vld [vmem:[%s1122_s28] sm:$0xff]   ;;  %v1260_v23 = vld [vmem:[%s11250_s8 + $0x28] sm:$0xff]  ;;  %v1257_v24 = vld [vmem:[%s11250_s8 + $0x10] sm:$0xff]  ;;  %s11273_s28 = sld [smem:[#allocation9_spill]] }
  0x62   : > { %1167 = vxpose.xlu0.c.b16.start.end [1/1] (short) %v8117_v0, 128  ;;  %v1266_v25 = vld [vmem:[%s11250_s8 + $0x58] sm:$0xff]  ;;  %v1255_v26 = vld [vmem:[%s11250_s8] sm:$0xff]  ;;  %v1264_v27 = vld [vmem:[%s11250_s8 + $0x48] sm:$0xff] }
  0x63   : > { %v1261_v28 = vld [vmem:[%s11250_s8 + $0x30] sm:$0xff]  ;;  %v1270_v29 = vld [vmem:[%s11250_s8 + $0x78] sm:$0xff]  ;;  %v1259_v30 = vld [vmem:[%s11250_s8 + $0x20] sm:$0xff] }
  0x64   : > { %1352 = vperm.xlu1 %8116, %v1226_v4   ;;  %v1268_v31 = vld [vmem:[%s11250_s8 + $0x68] sm:$0xff]  ;;  %v1265_v32 = vld [vmem:[%s11250_s8 + $0x50] sm:$0xff]  ;;  %v1263_v33 = vld [vmem:[%s11250_s8 + $0x40] sm:$0xff] }
  0x65   : > { %v1269_v34 = vld [vmem:[%s11250_s8 + $0x70] sm:$0xff]  ;;  %v1267_v36 = vld [vmem:[%s11250_s8 + $0x60] sm:$0xff]  ;;  %v8120_v44 = vld [vmem:[%s8507_s25 + $0x8] sm:$0xff]   ;;  %s7230_s8 = sld [smem:[#allocation3 + $0x1]] }
  0x66   : > { %v8121_v45 = vld [vmem:[%s11252_s3 + $0x8] sm:$0xff]   ;;  %v8122_v46 = vld [vmem:[%s8507_s25 + $0x10] sm:$0xff]   ;;  %v8124_v48 = vld [vmem:[%s8507_s25 + $0x18] sm:$0xff]  }
  0x67   : > { %v8123_v47 = vld [vmem:[%s11252_s3 + $0x10] sm:$0xff]   ;;  %v8125_v49 = vld [vmem:[%s11252_s3 + $0x18] sm:$0xff]   ;;  %v8126_v50 = vld [vmem:[%s8507_s25 + $0x20] sm:$0xff]  }
  0x68   : > { %1357 = vperm.xlu1 %8116, %v1227_v5   ;;  %v8127_v51 = vld [vmem:[%s11252_s3 + $0x20] sm:$0xff]   ;;  %v8128_v52 = vld [vmem:[%s8507_s25 + $0x28] sm:$0xff]   ;;  %v8130_v54 = vld [vmem:[%s8507_s25 + $0x30] sm:$0xff]  }
  0x69   : > { %v8129_v53 = vld [vmem:[%s11252_s3 + $0x28] sm:$0xff]   ;;  %v8131_v55 = vld [vmem:[%s11252_s3 + $0x30] sm:$0xff]   ;;  %v8132_v56 = vld [vmem:[%s8507_s25 + $0x38] sm:$0xff]  }
  0x6a   : > { %v8133_v57 = vld [vmem:[%s11252_s3 + $0x38] sm:$0xff]   ;;  %v8134_v58 = vld [vmem:[%s8527_s14 + $0x20] sm:$0xff]   ;;  %v8135_v59 = vld [vmem:[%s8527_s14 + $0x28] sm:$0xff]   ;;  %s3282_s3 = sld [smem:[#allocation3]] }
  0x6b   : > { %8115 = vset.pattern.permute.xlu0 %v8468_v1  ;;  %v8136_v61 = vld [vmem:[%s8527_s14 + $0x30] sm:$0xff]   ;;  %v8137_v62 = vld [vmem:[%s8527_s14 + $0x38] sm:$0xff]  }
  0x6c   : > { %1362 = vperm.xlu1 %8116, %v1228_v6  }
  0x70   : > { %1367 = vperm.xlu1 %8116, %v1229_v7  }
  0x74   : > { %1372 = vperm.xlu1 %8116, %v1230_v10  }
  0x78   : > { %1377 = vperm.xlu1 %8116, %v1231_v11  }
  0x7c   : > { %1382 = vperm.xlu1 %8116, %v1232_v12  }
  0x80   : > { %1387 = vperm.xlu1 %8116, %v1233_v13  }
  0x84   : > { %1392 = vperm.xlu1 %8116, %v1234_v14  }
  0x87   : > { %1337 = vperm.xlu0 %8115, %v1223_v19  }
  0x88   : > { %1402 = vperm.xlu1 %8116, %v1236_v15  }
  0x8b   : > { %1397 = vperm.xlu0 %8115, %v1235_v20  }
  0x8c   : > { %1412 = vperm.xlu1 %8116, %v1238_v16  }
  0x8f   : > { %1407 = vperm.xlu0 %8115, %v1237_v22  }
  0x90   : > { %1593 = vperm.xlu1 %8116, %v1258_v17  }
  0x93   : > { %1588 = vperm.xlu0 %8115, %v1257_v24  }
  0x94   : > { %1583 = vperm.xlu1 %8116, %v1256_v18  }
  0x97   : > { %1578 = vperm.xlu0 %8115, %v1255_v26  }
  0x98   : > { %1613 = vperm.xlu1 %8116, %v1262_v21  }
  0x9b   : > { %1608 = vperm.xlu0 %8115, %v1261_v28  }
  0x9c   : > { %1603 = vperm.xlu1 %8116, %v1260_v23  }
  0x9f   : > { %1598 = vperm.xlu0 %8115, %v1259_v30  }
  0xa0   : > { %1633 = vperm.xlu1 %8116, %v1266_v25  }
  0xa3   : > { %1628 = vperm.xlu0 %8115, %v1265_v32  }
  0xa4   : > { %1623 = vperm.xlu1 %8116, %v1264_v27  }
  0xa7   : > { %1618 = vperm.xlu0 %8115, %v1263_v33  }
  0xa8   : > { %1653 = vperm.xlu1 %8116, %v1270_v29  }
  0xab   : > { %1648 = vperm.xlu0 %8115, %v1269_v34  }
  0xac   : > { %1643 = vperm.xlu1 %8116, %v1268_v31  }
  0xaf   : > { %1638 = vperm.xlu0 %8115, %v1267_v36  }
  0xc4   : > { %v8750_v35 = vpop.trf.xlu0 }
  0xc8   : > { %v8753_v37 = vpop.trf.xlu0 }
  0xcc   : > { %v8755_v38 = vpop.trf.xlu0 }
  0xd0   : > { %v8757_v39 = vpop.trf.xlu0 }
  0xd4   : > { %v8759_v40 = vpop.trf.xlu0 }
  0xd7   : > { %v1343_v63 = vpop.permute.xlu1 %1342 }
  0xd8   : > { %v8761_v41 = vpop.trf.xlu0 }
  0xdb   : > { %v1348_v0 = vpop.permute.xlu1 %1347 }
  0xdc   : > { %v8763_v42 = vpop.trf.xlu0 }
  0xdf   : > { %v1353_v1 = vpop.permute.xlu1 %1352 }
  0xe0   : > { %v8765_v43 = vpop.trf.xlu0 }
  0xe1   : > { %7618 = vmatprep.subr.bf16.mxu0 %v8765_v43  ;;  %7650 = vmatprep.subr.bf16.mxu1 %v8765_v43 }
  0xe2   : > { %7619 = vmatpush3.bf16.msra.mxu0 %v8765_v43  ;;  %7651 = vmatpush3.bf16.msra.mxu1 %v8765_v43 }
  0xe3   : > { %7620 = vmatprep.subr.bf16.mxu0 %v8763_v42  ;;  %7652 = vmatprep.subr.bf16.mxu1 %v8763_v42  ;;  %v1358_v2 = vpop.permute.xlu1 %1357 }
  0xe6   : > { %7621 = vmatpush3.bf16.msra.mxu0 %v8763_v42  ;;  %7653 = vmatpush3.bf16.msra.mxu1 %v8763_v42 }
  0xe7   : > { %7622 = vmatprep.subr.bf16.mxu0 %v8761_v41  ;;  %7654 = vmatprep.subr.bf16.mxu1 %v8761_v41  ;;  %v1363_v3 = vpop.permute.xlu1 %1362 }
  0xea   : > { %7623 = vmatpush3.bf16.msra.mxu0 %v8761_v41  ;;  %7655 = vmatpush3.bf16.msra.mxu1 %v8761_v41 }
  0xeb   : > { %7624 = vmatprep.subr.bf16.mxu0 %v8759_v40  ;;  %7656 = vmatprep.subr.bf16.mxu1 %v8759_v40  ;;  %v1368_v4 = vpop.permute.xlu1 %1367 }
  0xee   : > { %7625 = vmatpush3.bf16.msra.mxu0 %v8759_v40  ;;  %7657 = vmatpush3.bf16.msra.mxu1 %v8759_v40 }
  0xef   : > { %7626 = vmatprep.subr.bf16.mxu0 %v8757_v39  ;;  %7658 = vmatprep.subr.bf16.mxu1 %v8757_v39  ;;  %v1373_v5 = vpop.permute.xlu1 %1372 }
  0xf2   : > { %7627 = vmatpush3.bf16.msra.mxu0 %v8757_v39  ;;  %7659 = vmatpush3.bf16.msra.mxu1 %v8757_v39 }
  0xf3   : > { %7628 = vmatprep.subr.bf16.mxu0 %v8755_v38  ;;  %7660 = vmatprep.subr.bf16.mxu1 %v8755_v38  ;;  %v8852_v6 = vpop.permute.xlu1 %1377 }
  0xf6   : > { %7629 = vmatpush3.bf16.msra.mxu0 %v8755_v38  ;;  %7661 = vmatpush3.bf16.msra.mxu1 %v8755_v38 }
  0xf7   : > { %7630 = vmatprep.subr.bf16.mxu0 %v8753_v37  ;;  %7662 = vmatprep.subr.bf16.mxu1 %v8753_v37  ;;  %v8854_v7 = vpop.permute.xlu1 %1382 }
  0xfa   : > { %7631 = vmatpush3.bf16.msra.mxu0 %v8753_v37  ;;  %7663 = vmatpush3.bf16.msra.mxu1 %v8753_v37 }
  0xfb   : > { %7632 = vmatprep.subr.bf16.mxu0 %v8750_v35  ;;  %7664 = vmatprep.subr.bf16.mxu1 %v8750_v35  ;;  %v8856_v8 = vpop.permute.xlu1 %1387 }
  0xfe   : > { %7633 = vmatpush3.bf16.msra.mxu0 %v8750_v35  ;;  %7665 = vmatpush3.bf16.msra.mxu1 %v8750_v35 }
  0xff   : > { %7682 = vmatprep.subr.bf16.mxu0 %v8765_v43  ;;  %8010 = vmatprep.subr.bf16.mxu1 %v8765_v43  ;;  %v8858_v9 = vpop.permute.xlu1 %1392 }
 0x101   : > { %7635 = vmatmul.mubr.bf16.vlgmr.msra.gmra.mxu0 %v8120_v44  ;;  %7667 = vmatmul.mubr.bf16.vlgmr.msra.gmra.mxu1 %v8121_v45  ;;  %v8138_v44 = vld [vmem:[%s8527_s14] sm:$0xff]   ;;  %v8139_v45 = vld [vmem:[%s8527_s14 + $0x8] sm:$0xff]  }
 0x102   : > { %7683 = vmatpush3.bf16.msra.mxu0 %v8765_v43  ;;  %8018 = vmatpush3.bf16.msra.mxu1 %v8765_v43  ;;  %v1338_v10 = vpop.permute.xlu0 %1337 }
 0x103   : > { %7684 = vmatprep.subr.bf16.mxu0 %v8763_v42  ;;  %8011 = vmatprep.subr.bf16.mxu1 %v8763_v42  ;;  %v8860_v11 = vpop.permute.xlu1 %1402 }
 0x104   : > { %7638 = vmatprep.mubr.bf16.mxu0 %v8122_v46  ;;  %7670 = vmatprep.mubr.bf16.mxu1 %v8123_v47  ;;  %v8140_v46 = vld [vmem:[%s8527_s14 + $0x10] sm:$0xff]  }
 0x106   : > { %7685 = vmatpush3.bf16.msra.mxu0 %v8763_v42  ;;  %8019 = vmatpush3.bf16.msra.mxu1 %v8763_v42  ;;  %v8862_v12 = vpop.permute.xlu0 %1397 }
 0x107   : > { %7686 = vmatprep.subr.bf16.mxu0 %v8761_v41  ;;  %8012 = vmatprep.subr.bf16.mxu1 %v8761_v41  ;;  %v8864_v13 = vpop.permute.xlu1 %1412 }
 0x109   : > { %7639 = vmatmul.mubr.bf16.gmra.mxu0 %v8124_v48  ;;  %7671 = vmatmul.mubr.bf16.gmra.mxu1 %v8125_v49 }
 0x10a   : > { %7687 = vmatpush3.bf16.msra.mxu0 %v8761_v41  ;;  %8020 = vmatpush3.bf16.msra.mxu1 %v8761_v41  ;;  %v8866_v14 = vpop.permute.xlu0 %1407 }
 0x10b   : > { %7688 = vmatprep.subr.bf16.mxu0 %v8759_v40  ;;  %8013 = vmatprep.subr.bf16.mxu1 %v8759_v40  ;;  %v1594_v15 = vpop.permute.xlu1 %1593 }
 0x10c   : > { %7642 = vmatprep.mubr.bf16.mxu0 %v8126_v50  ;;  %7674 = vmatprep.mubr.bf16.mxu1 %v8127_v51 }
 0x10e   : > { %7689 = vmatpush3.bf16.msra.mxu0 %v8759_v40  ;;  %8021 = vmatpush3.bf16.msra.mxu1 %v8759_v40  ;;  %v1589_v16 = vpop.permute.xlu0 %1588 }
 0x10f   : > { %7690 = vmatprep.subr.bf16.mxu0 %v8757_v39  ;;  %8014 = vmatprep.subr.bf16.mxu1 %v8757_v39  ;;  %v1584_v24 = vpop.permute.xlu1 %1583 }
 0x111   : > { %7643 = vmatmul.mubr.bf16.gmra.mxu0 %v8128_v52  ;;  %7675 = vmatmul.mubr.bf16.gmra.mxu1 %v8129_v53 }
 0x112   : > { %7691 = vmatpush3.bf16.msra.mxu0 %v8757_v39  ;;  %8022 = vmatpush3.bf16.msra.mxu1 %v8757_v39  ;;  %v1579_v25 = vpop.permute.xlu0 %1578 }
 0x113   : > { %7692 = vmatprep.subr.bf16.mxu0 %v8755_v38  ;;  %8015 = vmatprep.subr.bf16.mxu1 %v8755_v38 }
 0x114   : > { %7646 = vmatprep.mubr.bf16.mxu0 %v8130_v54  ;;  %7678 = vmatprep.mubr.bf16.mxu1 %v8131_v55 }
 0x116   : > { %7693 = vmatpush3.bf16.msra.mxu0 %v8755_v38  ;;  %8023 = vmatpush3.bf16.msra.mxu1 %v8755_v38 }
 0x117   : > { %7694 = vmatprep.subr.bf16.mxu0 %v8753_v37  ;;  %8016 = vmatprep.subr.bf16.mxu1 %v8753_v37 }
 0x119   : > { %7647 = vmatmul.mubr.bf16.gmra.mxu0 %v8132_v56  ;;  %7679 = vmatmul.mubr.bf16.gmra.mxu1 %v8133_v57 }
 0x11a   : > { %7695 = vmatpush3.bf16.msra.mxu0 %v8753_v37  ;;  %8024 = vmatpush3.bf16.msra.mxu1 %v8753_v37 }
 0x11b   : > { %7696 = vmatprep.subr.bf16.mxu0 %v8750_v35  ;;  %8017 = vmatprep.subr.bf16.mxu1 %v8750_v35 }
 0x11c   : > { %7706 = vmatprep.mubr.bf16.mxu1 %v8134_v58  ;;  %7698 = vmatprep.mubr.bf16.mxu0 %v8138_v44 }
 0x11e   : > { %7697 = vmatpush3.bf16.msra.mxu0 %v8750_v35  ;;  %8025 = vmatpush3.bf16.msra.mxu1 %v8750_v35 }
 0x11f   : > { %7714 = vmatprep.subr.bf16.mxu1 %v11168_v60 }
 0x121   : > { %7707 = vmatmul.mubr.bf16.vlgmr.msra.gmra.mxu1 %v8135_v59  ;;  %7699 = vmatmul.mubr.bf16.vlgmr.msra.gmra.mxu0 %v8139_v45 }
 0x122   : > { %7710 = vmatprep.mubr.bf16.mxu1 %v8136_v61  ;;  %7702 = vmatprep.mubr.bf16.mxu0 %v8140_v46 }
 0x129   : > { %7711 = vmatmul.mubr.bf16.gmra.mxu1 %v8137_v62  ;;  %v8141_v62 = vld [vmem:[%s8527_s14 + $0x18] sm:$0xff]  }
 0x12a   : > { %7718 = vmatprep.mubr.msk.bf16.mxu1 %vm8470_vm0, %v11168_v60  ;;  %7703 = vmatmul.mubr.bf16.gmra.mxu0 %v8141_v62 }
 0x1c1   : > { %v7636_v17 = vpop.f32.mrf.mxu0  ;;  %v7668_v18 = vpop.f32.mrf.mxu1 }
 0x1c2   : > { %v1747_v21 = vadd.f32 %v7668_v18, %v1589_v16  ;;  %v1506_v47 = vadd.f32 %v7636_v17, %v1348_v0 }
 0x1c3   : > { %v1497_v19 = vpop.f32.mrf.mxu0  ;;  %v1738_v20 = vpop.f32.mrf.mxu1 }
 0x1c4   : > { %v1498_v26 = vadd.f32 %v1497_v19, %v1338_v10  ;;  %v1739_v28 = vadd.f32 %v1738_v20, %v1579_v25  ;;  %v1562_v55 = vmul.f32 0.17677669, %v1506_v47  ;;  %v1609_v47 = vpop.permute.xlu0 %1608 }
 0x1c5   : > { %v7637_v22 = vpop.f32.mrf.mxu0  ;;  %v7669_v23 = vpop.f32.mrf.mxu1 }
 0x1c6   : > { %v1750_v27 = vadd.f32 %v7669_v23, %v1594_v15  ;;  %v1509_v31 = vadd.f32 %v7637_v22, %v1353_v1  ;;  %v1560_v48 = vmul.f32 0.17677669, %v1498_v26 }
 0x1c7   : > { %v1500_v29 = vpop.f32.mrf.mxu0  ;;  %v1741_v30 = vpop.f32.mrf.mxu1 }
 0x1c8   : > { %v8868_v32 = vpack.c.bf16 %v1750_v27, %v1747_v21  ;;  %v1501_v33 = vadd.f32 %v1500_v29, %v1343_v63  ;;  %v1742_v34 = vadd.f32 %v1741_v30, %v1584_v24  ;;  %v1563_v51 = vmul.f32 0.17677669, %v1509_v31 }
 0x1c9   : > { %v7640_v36 = vpop.f32.mrf.mxu0 }
 0x1ca   : > { %11256 = vst [vmem:[#allocation33_spill] sm:$0xff] %v8868_v32  ;;  %v1561_v49 = vmul.f32 0.17677669, %v1501_v33  ;;  %7715 = vmatpush3.bf16.msra.mxu1 %v8868_v32  ;;  %v8875_v53 = vpack.c.bf16 %v1742_v34, %v1739_v28  ;;  %v2027_v58 = vpack.c.bf16 %v1563_v51, %v1562_v55  ;;  %v1522_v0 = vadd.f32 %v7640_v36, %v1368_v4 }
 0x1cb   : > { %v1513_v50 = vpop.f32.mrf.mxu0  ;;  %7716 = vmatprep.subr.bf16.mxu1 %v11168_v60 }
 0x1cc   : > { %v2026_v52 = vpack.c.bf16 %v1561_v49, %v1560_v48  ;;  %11257 = vst [vmem:[#allocation34_spill] sm:$0xff] %v8875_v53  ;;  %v1514_v56 = vadd.f32 %v1513_v50, %v1358_v2  ;;  %v1566_v18 = vmul.f32 0.17677669, %v1522_v0  ;;  %v1599_v48 = vpop.permute.xlu0 %1598  ;;  %v1614_v50 = vpop.permute.xlu1 %1613 }
 0x1cd   : > { %v7641_v54 = vpop.f32.mrf.mxu0 }
 0x1ce   : > { %2050 = vxpose.xlu0.c.b16.start [1/2] (short) (narrow) %v2026_v52, 16  ;;  %7717 = vmatpush3.bf16.msra.mxu1 %v8875_v53  ;;  %v1525_v59 = vadd.f32 %v7641_v54, %v1373_v5  ;;  %v1564_v1 = vmul.f32 0.17677669, %v1514_v56 }
 0x1cf   : > { %v1516_v57 = vpop.f32.mrf.mxu0  ;;  %7722 = vmatprep.subr.bf16.mxu1 %v11168_v60 }
 0x1d0   : > { %v1517_v61 = vadd.f32 %v1516_v57, %v1363_v3  ;;  %v1567_v16 = vmul.f32 0.17677669, %v1525_v59  ;;  %v1604_v52 = vpop.permute.xlu1 %1603 }
 0x1d1   : > { %v7644_v63 = vpop.f32.mrf.mxu0 }
 0x1d2   : > { %v1565_v10 = vmul.f32 0.17677669, %v1517_v61  ;;  %2051 = vxpose.xlu0.c.b16.end [2/2] (short) (narrow) %v2027_v58, 16  ;;  %v2029_v21 = vpack.c.bf16 %v1567_v16, %v1566_v18  ;;  %v1538_v4 = vadd.f32 %v7644_v63, %v8856_v8 }
 0x1d3   : > { %v1529_v15 = vpop.f32.mrf.mxu0 }
 0x1d4   : > { %v2028_v17 = vpack.c.bf16 %v1565_v10, %v1564_v1  ;;  %v1530_v19 = vadd.f32 %v1529_v15, %v8852_v6  ;;  %v1570_v29 = vmul.f32 0.17677669, %v1538_v4  ;;  %v1634_v55 = vpop.permute.xlu1 %1633 }
 0x1d5   : > { %v7645_v2 = vpop.f32.mrf.mxu0 }
 0x1d6   : > { %2111 = vxpose.xlu1.c.b16.start [1/2] (short) (narrow) %v2028_v17, 16  ;;  %v1541_v5 = vadd.f32 %v7645_v2, %v8858_v9  ;;  %v1568_v23 = vmul.f32 0.17677669, %v1530_v19 }
 0x1d7   : > { %v1532_v20 = vpop.f32.mrf.mxu0 }
 0x1d8   : > { %v1533_v3 = vadd.f32 %v1532_v20, %v8854_v7  ;;  %v1571_v26 = vmul.f32 0.17677669, %v1541_v5  ;;  %v1624_v58 = vpop.permute.xlu1 %1623 }
 0x1d9   : > { %v7648_v22 = vpop.f32.mrf.mxu0 }
 0x1da   : > { %v1569_v24 = vmul.f32 0.17677669, %v1533_v3  ;;  %2112 = vxpose.xlu1.c.b16.end [2/2] (short) (narrow) %v2029_v21, 16  ;;  %v2031_v31 = vpack.c.bf16 %v1571_v26, %v1570_v29  ;;  %v1554_v33 = vadd.f32 %v7648_v22, %v8866_v14 }
 0x1db   : > { %v1545_v25 = vpop.f32.mrf.mxu0 }
 0x1dc   : > { %v2030_v27 = vpack.c.bf16 %v1569_v24, %v1568_v23  ;;  %v1546_v6 = vadd.f32 %v1545_v25, %v8862_v12  ;;  %v1574_v45 = vmul.f32 0.17677669, %v1554_v33  ;;  %v7672_v12 = vpop.f32.mrf.mxu1  ;;  %v1654_v0 = vpop.permute.xlu1 %1653 }
 0x1dd   : > { %v7649_v28 = vpop.f32.mrf.mxu0  ;;  %v1763_v1 = vadd.f32 %v7672_v12, %v1609_v47 }
 0x1de   : > { %2171 = vxpose.xlu0.c.b16.start [1/2] (short) (narrow) %v2030_v27, 16  ;;  %v1557_v9 = vadd.f32 %v7649_v28, %v8864_v13  ;;  %v1572_v8 = vmul.f32 0.17677669, %v1546_v6  ;;  %v1754_v49 = vpop.f32.mrf.mxu1  ;;  %v1629_v13 = vpop.permute.xlu0 %1628 }
 0x1df   : > { %v1548_v30 = vpop.f32.mrf.mxu0  ;;  %v1755_v2 = vadd.f32 %v1754_v49, %v1599_v48  ;;  %v7330_v49 = vld [vmem:[%s1132_s16] sm:$0xff]   ;;  %s8034_s16 = smul.u32 48, %s8710_s22 }
 0x1e0   : > { %v1549_v7 = vadd.f32 %v1548_v30, %v8860_v11  ;;  %v1575_v36 = vmul.f32 0.17677669, %v1557_v9  ;;  %v7673_v51 = vpop.f32.mrf.mxu1  ;;  %v1644_v18 = vpop.permute.xlu1 %1643 }
 0x1e1   : > { %v1766_v62 = vadd.f32 %v7673_v51, %v1614_v50 }
 0x1e2   : > { %v1573_v34 = vmul.f32 0.17677669, %v1549_v7  ;;  %2172 = vxpose.xlu0.c.b16.end [2/2] (short) (narrow) %v2031_v31, 16  ;;  %v2033_v46 = vpack.c.bf16 %v1575_v36, %v1574_v45  ;;  %v1757_v11 = vpop.f32.mrf.mxu1  ;;  %v1619_v54 = vpop.permute.xlu0 %1618 }
 0x1e3   : > { %v8888_v10 = vpack.c.bf16 %v1766_v62, %v1763_v1  ;;  %v1758_v15 = vadd.f32 %v1757_v11, %v1604_v52 }
 0x1e4   : > { %v2032_v44 = vpack.c.bf16 %v1573_v34, %v1572_v8  ;;  %v7676_v14 = vpop.f32.mrf.mxu1 }
 0x1e5   : > { %11258 = vst [vmem:[#allocation35_spill] sm:$0xff] %v8888_v10  ;;  %v8895_v19 = vpack.c.bf16 %v1758_v15, %v1755_v2  ;;  %v1779_v5 = vadd.f32 %v7676_v14, %v1629_v13  ;;  %v7331_v13 = vunpack.c.l.bf16 %v7330_v49 }
 0x1e6   : > { %2231 = vxpose.xlu0.c.b16.start [1/2] (short) (narrow) %v2032_v44, 16  ;;  %v1770_v56 = vpop.f32.mrf.mxu1  ;;  %v1649_v57 = vpop.permute.xlu0 %1648 }
 0x1e7   : > { %11259 = vst [vmem:[#allocation36_spill] sm:$0xff] %v8895_v19  ;;  %v1771_v24 = vadd.f32 %v1770_v56, %v1619_v54 }
 0x1e8   : > { %v7677_v59 = vpop.f32.mrf.mxu1 }
 0x1e9   : > { %v1782_v20 = vadd.f32 %v7677_v59, %v1634_v55  ;;  %v7332_v55 = vunpack.c.h.bf16 %v7330_v49  ;;  %v1289_v49 = vld [vmem:[%s8532_s19 + $0x10] sm:$0xff] }
 0x1ea   : > { %2232 = vxpose.xlu0.c.b16.end [2/2] (short) (narrow) %v2033_v46, 16  ;;  %v1639_v61 = vpop.permute.xlu0 %1638  ;;  %v1773_v63 = vpop.f32.mrf.mxu1 }
 0x1eb   : > { %v8899_v3 = vpack.c.bf16 %v1782_v20, %v1779_v5  ;;  %v1774_v22 = vadd.f32 %v1773_v63, %v1624_v58 }
 0x1ec   : > { %v7680_v17 = vpop.f32.mrf.mxu1 }
 0x1ed   : > { %11260 = vst [vmem:[#allocation37_spill] sm:$0xff] %v8899_v3  ;;  %v8906_v25 = vpack.c.bf16 %v1774_v22, %v1771_v24  ;;  %v1795_v28 = vadd.f32 %v7680_v17, %v1649_v57 }
 0x1ee   : > { %v1786_v21 = vpop.f32.mrf.mxu1 }
 0x1ef   : > { %11261 = vst [vmem:[#allocation38_spill] sm:$0xff] %v8906_v25  ;;  %v1787_v31 = vadd.f32 %v1786_v21, %v1639_v61 }
 0x1f0   : > { %v7681_v23 = vpop.f32.mrf.mxu1 }
 0x1f1   : > { %v1798_v26 = vadd.f32 %v7681_v23, %v1654_v0 }
 0x1f2   : > { %v1789_v27 = vpop.f32.mrf.mxu1 }
 0x1f3   : > { %v8910_v29 = vpack.c.bf16 %v1798_v26, %v1795_v28  ;;  %v1790_v6 = vadd.f32 %v1789_v27, %v1644_v18  ;;  %v1292_v27 = vld [vmem:[%s8532_s19 + $0x28] sm:$0xff]  ;;  %v1293_v28 = vld [vmem:[%s8532_s19 + $0x30] sm:$0xff] }
 0x1f4   : > { %v8921_v33 = vpop.f32.mrf.mxu1 }
 0x1f5   : > { %11262 = vst [vmem:[#allocation39_spill] sm:$0xff] %v8910_v29  ;;  %v8917_v9 = vpack.c.bf16 %v1790_v6, %v1787_v31  ;;  %v1294_v6 = vld [vmem:[%s8532_s19 + $0x38] sm:$0xff]  ;;  %v1291_v31 = vld [vmem:[%s8532_s19 + $0x20] sm:$0xff] }
 0x1f6   : > { %v8923_v8 = vpop.f32.mrf.mxu1 }
 0x1f7   : > { %11263 = vst [vmem:[#allocation40_spill] sm:$0xff] %v8917_v9 }
 0x1f8   : > { %v8925_v34 = vpop.f32.mrf.mxu1 }
 0x1fa   : > { %v8927_v36 = vpop.f32.mrf.mxu1 }
 0x1fc   : > { %v8929_v44 = vpop.f32.mrf.mxu1 }
 0x1fe   : > { %v8931_v45 = vpop.f32.mrf.mxu1 }
 0x200   : > { %v8933_v46 = vpop.f32.mrf.mxu1 }
 0x202   : > { %v8935_v47 = vpop.f32.mrf.mxu1 }
 0x230   : > { %v2058_v16 = vpop.trf.xlu0 }
 0x231   : > { %7719 = vmatmul.mubr.msk.bf16.vlgmr.msra.gmra.mxu1 %vm2066_vm1, %v2058_v16 }
 0x232   : > { %7723 = vmatpush3.bf16.msra.mxu1 %v8888_v10  ;;  %7726 = vmatprep.mubr.msk.bf16.mxu1 %vm8470_vm0, %v11168_v60 }
 0x233   : > { %7724 = vmatprep.subr.bf16.mxu1 %v11168_v60 }
 0x236   : > { %7725 = vmatpush3.bf16.msra.mxu1 %v8895_v19 }
 0x237   : > { %7730 = vmatprep.subr.bf16.mxu1 %v11168_v60 }
 0x238   : > { %v2119_v4 = vpop.trf.xlu1 }
 0x239   : > { %7727 = vmatmul.mubr.msk.bf16.vlgmr.msra.gmra.mxu1 %vm2066_vm1, %v2119_v4 }
 0x23a   : > { %7731 = vmatpush3.bf16.msra.mxu1 %v8899_v3  ;;  %7734 = vmatprep.mubr.msk.bf16.mxu1 %vm8470_vm0, %v11168_v60 }
 0x23b   : > { %7732 = vmatprep.subr.bf16.mxu1 %v11168_v60 }
 0x23e   : > { %7733 = vmatpush3.bf16.msra.mxu1 %v8906_v25 }
 0x23f   : > { %7738 = vmatprep.subr.bf16.mxu1 %v11168_v60 }
 0x240   : > { %v2179_v30 = vpop.trf.xlu0 }
 0x241   : > { %7735 = vmatmul.mubr.msk.bf16.vlgmr.msra.gmra.mxu1 %vm2066_vm1, %v2179_v30  ;;  %v1288_v30 = vld [vmem:[%s8532_s19 + $0x8] sm:$0xff] }
 0x242   : > { %7739 = vmatpush3.bf16.msra.mxu1 %v8910_v29  ;;  %7742 = vmatprep.mubr.msk.bf16.mxu1 %vm8470_vm0, %v11168_v60 }
 0x243   : > { %7740 = vmatprep.subr.bf16.mxu1 %v11168_v60 }
 0x246   : > { %7741 = vmatpush3.bf16.msra.mxu1 %v8917_v9 }
 0x248   : > { %v2239_v7 = vpop.trf.xlu0 }
 0x249   : > { %7743 = vmatmul.mubr.msk.bf16.vlgmr.msra.gmra.mxu1 %vm2066_vm1, %v2239_v7  ;;  %v1300_v7 = vld [vmem:[%s8532_s19 + $0x68] sm:$0xff] }
 0x2f1   : > { %v2104_v12 = vpop.f32.mrf.mxu1 }
 0x2f2   : > { %v8941_v14 = vadd.f32 %v7331_v13, %v2104_v12  ;;  %v1287_v12 = vld [vmem:[%s8532_s19] sm:$0xff] }
 0x2f3   : > { %v7720_v48 = vpop.f32.mrf.mxu1 }
 0x2f4   : > { %v2292_v62 = vsel %vm2291_vm2, %v8941_v14, -inf  ;;  %v1299_v48 = vld [vmem:[%s8532_s19 + $0x60] sm:$0xff] }
 0x2f5   : > { %v2107_v50 = vpop.f32.mrf.mxu1 }
 0x2f6   : > { %v8947_v61 = vadd.f32 %v7332_v55, %v2107_v50 }
 0x2f7   : > { %v7721_v51 = vpop.f32.mrf.mxu1 }
 0x2f8   : > { %v2295_v15 = vsel %vm2291_vm2, %v8947_v61, -inf }
 0x2f9   : > { %v2164_v52 = vpop.f32.mrf.mxu1 }
 0x2fa   : > { %v8939_v11 = vadd.f32 %v7331_v13, %v2164_v52  ;;  %v8978_v52 = vpop.f32.mrf.mxu0 }
 0x2fb   : > { %v7728_v54 = vpop.f32.mrf.mxu1 }
 0x2fc   : > { %v2298_v56 = vsel %vm2291_vm2, %v8939_v11, -inf }
 0x2fd   : > { %2299 = vmax.xlane.f32.xlu1 %v2298_v56  ;;  %v2167_v57 = vpop.f32.mrf.mxu1  ;;  %v1963_v56 = vpop.f32.mrf.mxu0 }
 0x2fe   : > { %v8945_v58 = vadd.f32 %v7332_v55, %v2167_v57 }
 0x2ff   : > { %v7729_v59 = vpop.f32.mrf.mxu1 }
 0x300   : > { %v2301_v63 = vsel %vm2291_vm2, %v8945_v58, -inf }
 0x301   : > { %2293 = vmax.xlane.f32.xlu1 %v2292_v62  ;;  %2302 = vmax.xlane.f32.xlu0 %v2301_v63  ;;  %v2224_v0 = vpop.f32.mrf.mxu1 }
 0x302   : > { %v8958_v22 = vadd.f32 %v7331_v13, %v2224_v0  ;;  %v8982_v0 = vpop.f32.mrf.mxu0 }
 0x303   : > { %v7736_v1 = vpop.f32.mrf.mxu1 }
 0x304   : > { %v2304_v26 = vsel %vm2291_vm2, %v8958_v22, -inf }
 0x305   : > { %2296 = vmax.xlane.f32.xlu1 %v2295_v15  ;;  %v2227_v16 = vpop.f32.mrf.mxu1 }
 0x306   : > { %v2228_v17 = vadd.f32 %v7332_v55, %v2227_v16 }
 0x307   : > { %v7737_v2 = vpop.f32.mrf.mxu1 }
 0x308   : > { %v2307_v18 = vsel %vm2291_vm2, %v2228_v17, -inf }
 0x309   : > { %2308 = vmax.xlane.f32.xlu1 %v2307_v18  ;;  %v2284_v20 = vpop.f32.mrf.mxu1  ;;  %v1966_v18 = vpop.f32.mrf.mxu0 }
 0x30a   : > { %v8956_v21 = vadd.f32 %v7331_v13, %v2284_v20  ;;  %v1290_v13 = vld [vmem:[%s8532_s19 + $0x18] sm:$0xff] }
 0x30b   : > { %v7744_v5 = vpop.f32.mrf.mxu1 }
 0x30c   : > { %v2310_v4 = vsel %vm2291_vm2, %v8956_v21, -inf }
 0x30d   : > { %2311 = vmax.xlane.f32.xlu0 %v2310_v4  ;;  %v2287_v23 = vpop.f32.mrf.mxu1 }
 0x30e   : > { %v8973_v50 = vadd.f32 %v7332_v55, %v2287_v23  ;;  %v8986_v23 = vpop.f32.mrf.mxu0 }
 0x30f   : > { %v7745_v24 = vpop.f32.mrf.mxu1 }
 0x310   : > { %v2313_v51 = vsel %vm2291_vm2, %v8973_v50, -inf }
 0x311   : > { %2305 = vmax.xlane.f32.xlu0 %v2304_v26 }
 0x31a   : > { %1828 = vperm.xlu1 %8116, %v1292_v27   ;;  %v1979_v27 = vpop.f32.mrf.mxu0 }
 0x31e   : > { %1833 = vperm.xlu1 %8116, %v1293_v28  }
 0x322   : > { %1838 = vperm.xlu1 %8116, %v1294_v6  }
 0x326   : > { %1808 = vperm.xlu1 %8116, %v1288_v30  }
 0x327   : > { %1823 = vperm.xlu0 %8115, %v1291_v31   ;;  %v8994_v31 = vpop.f32.mrf.mxu0 }
 0x32a   : > { %1868 = vperm.xlu1 %8116, %v1300_v7  }
 0x32b   : > { %1803 = vperm.xlu0 %8115, %v1287_v12  }
 0x32f   : > { %1863 = vperm.xlu0 %8115, %v1299_v48  }
 0x333   : > { %1813 = vperm.xlu0 %8115, %v1289_v49  }
 0x34e   : > { %2314 = vmax.xlane.f32.xlu1 %v2313_v51  ;;  %v1982_v51 = vpop.f32.mrf.mxu0 }
 0x35f   : > { %1818 = vperm.xlu1 %8116, %v1290_v13  }
 0x386   : > { %v2300_v54 = vpop.xlane.xlu1 %2299 }
 0x387   : > { %v2318_v57 = vsub.f32 %v8939_v11, %v2300_v54 }
 0x389   : > { %v2328_v55 = vmul.f32 1.442695, %v2318_v57 }
 0x38a   : > { %v2294_v59 = vpop.xlane.xlu1 %2293  ;;  %v2303_v62 = vpop.xlane.xlu0 %2302 }
 0x38b   : > { %v2316_v63 = vsub.f32 %v8941_v14, %v2294_v59  ;;  %v2319_v15 = vsub.f32 %v8945_v58, %v2303_v62 }
 0x38d   : > { %v2324_v1 = vmul.f32 1.442695, %v2316_v63  ;;  %v2330_v20 = vmul.f32 1.442695, %v2319_v15 }
 0x38e   : > { %v2297_v16 = vpop.xlane.xlu1 %2296 }
 0x38f   : > { %8222 = vpow2.f32 %v2324_v1  ;;  %v2317_v2 = vsub.f32 %v8947_v61, %v2297_v16 }
 0x390   : > { %8224 = vpow2.f32 %v2328_v55 }
 0x391   : > { %v2326_v5 = vmul.f32 1.442695, %v2317_v2 }
 0x392   : > { %v2309_v4 = vpop.xlane.xlu1 %2308 }
 0x393   : > { %8226 = vpow2.f32 %v2326_v5  ;;  %v2321_v11 = vsub.f32 %v2228_v17, %v2309_v4 }
 0x394   : > { %8228 = vpow2.f32 %v2330_v20 }
 0x395   : > { %v2334_v14 = vmul.f32 1.442695, %v2321_v11 }
 0x396   : > { %v1829_v24 = vpop.permute.xlu1 %1828  ;;  %v2312_v26 = vpop.xlane.xlu0 %2311 }
 0x397   : > { %8230 = vpow2.f32 %v2334_v14  ;;  %v2322_v58 = vsub.f32 %v8956_v21, %v2312_v26  ;;  %v1983_v59 = vadd.f32 %v1982_v51, %v1829_v24  ;;  %v1302_v24 = vld [vmem:[%s8532_s19 + $0x78] sm:$0xff]  ;;  %v1301_v26 = vld [vmem:[%s8532_s19 + $0x70] sm:$0xff]  ;;  %v1323_v51 = vld [vmem:[%s8542_s30 + $0x20] sm:$0xff] }
 0x399   : > { %v2336_v17 = vmul.f32 1.442695, %v2322_v58  ;;  %v1297_v58 = vld [vmem:[%s8532_s19 + $0x50] sm:$0xff] }
 0x39a   : > { %v8989_v28 = vpop.permute.xlu1 %1833  ;;  %v2306_v61 = vpop.xlane.xlu0 %2305 }
 0x39b   : > { %v2320_v6 = vsub.f32 %v8958_v22, %v2306_v61  ;;  %v1319_v61 = vld [vmem:[%s8542_s30] sm:$0xff] }
 0x39c   : > { %v8992_v30 = vpop.eup %8222 }
 0x39d   : > { %v2332_v7 = vmul.f32 1.442695, %v2320_v6  ;;  %v2340_v12 = vsel %vm2291_vm2, %v8992_v30, 0.0  ;;  %v8998_v48 = vpop.eup %8224 }
 0x39e   : > { %v9000_v49 = vpop.permute.xlu1 %1838  ;;  %2341 = vadd.xlane.f32.xlu0 %v2340_v12  ;;  %v2346_v22 = vsel %vm2291_vm2, %v8998_v48, 0.0 }
 0x39f   : > { %8232 = vpow2.f32 %v2332_v7 }
 0x3a0   : > { %v9002_v21 = vpop.eup %8226  ;;  %8234 = vpow2.f32 %v2336_v17  ;;  %v1321_v17 = vld [vmem:[%s8542_s30 + $0x10] sm:$0xff] }
 0x3a1   : > { %v2343_v13 = vsel %vm2291_vm2, %v9002_v21, 0.0  ;;  %v9008_v54 = vpop.eup %8228 }
 0x3a2   : > { %2347 = vadd.xlane.f32.xlu0 %v2346_v22  ;;  %2344 = vadd.xlane.f32.xlu1 %v2343_v13  ;;  %v1824_v57 = vpop.permute.xlu0 %1823  ;;  %v1809_v63 = vpop.permute.xlu1 %1808  ;;  %v2349_v1 = vsel %vm2291_vm2, %v9008_v54, 0.0  ;;  %v1325_v13 = vld [vmem:[%s8542_s30 + $0x30] sm:$0xff] }
 0x3a3   : > { %v1980_v62 = vadd.f32 %v1979_v27, %v1824_v57  ;;  %v1967_v2 = vadd.f32 %v1966_v18, %v1809_v63  ;;  %v1295_v27 = vld [vmem:[%s8532_s19 + $0x40] sm:$0xff] }
 0x3a4   : > { %v9014_v15 = vpop.eup %8230  ;;  %v1327_v57 = vld [vmem:[%s8542_s30 + $0x40] sm:$0xff] }
 0x3a5   : > { %v9010_v55 = vpack.c.bf16 %v1983_v59, %v1980_v62  ;;  %v2355_v4 = vsel %vm2291_vm2, %v9014_v15, 0.0  ;;  %v1329_v59 = vld [vmem:[%s8542_s30 + $0x50] sm:$0xff] }
 0x3a6   : > { %2350 = vadd.xlane.f32.xlu1 %v2349_v1  ;;  %v1804_v16 = vpop.permute.xlu0 %1803  ;;  %v9037_v6 = vpop.permute.xlu1 %1868  ;;  %v1333_v1 = vld [vmem:[%s8542_s30 + $0x70] sm:$0xff] }
 0x3a7   : > { %11264 = vst [vmem:[#allocation41_spill] sm:$0xff] %v9010_v55  ;;  %v1964_v20 = vadd.f32 %v1963_v56, %v1804_v16  ;;  %7754 = vmatprep.mubr.msk.bf16.mxu1 %vm2291_vm2, %v9010_v55  ;;  %v2929_v16 = vld [vmem:[%s11251_s6 + $0x70] sm:$0xff] }
 0x3a9   : > { %v9018_v5 = vpack.c.bf16 %v1967_v2, %v1964_v20  ;;  %v2945_v2 = vld [vmem:[%s11249_s12 + $0x70] sm:$0xff]  ;;  %v1296_v20 = vld [vmem:[%s8532_s19 + $0x48] sm:$0xff] }
 0x3aa   : > { %2356 = vadd.xlane.f32.xlu1 %v2355_v4  ;;  %v2927_v4 = vld [vmem:[%s11251_s6 + $0x60] sm:$0xff] }
 0x3ab   : > { %11265 = vst [vmem:[#allocation42_spill] sm:$0xff] %v9018_v5  ;;  %7748 = vmatprep.mubr.msk.bf16.mxu0 %vm2291_vm2, %v9018_v5 }
 0x3ac   : > { %v9024_v11 = vpop.eup %8232 }
 0x3ad   : > { %v2352_v56 = vsel %vm2291_vm2, %v9024_v11, 0.0  ;;  %v9028_v18 = vpop.eup %8234 }
 0x3ae   : > { %2353 = vadd.xlane.f32.xlu0 %v2352_v56  ;;  %v2358_v14 = vsel %vm2291_vm2, %v9028_v18, 0.0  ;;  %v1298_v56 = vld [vmem:[%s8532_s19 + $0x58] sm:$0xff] }
 0x3b2   : > { %2359 = vadd.xlane.f32.xlu0 %v2358_v14  ;;  %v2943_v14 = vld [vmem:[%s11249_s12 + $0x60] sm:$0xff] }
 0x3bb   : > { %1878 = vperm.xlu1 %8116, %v1302_v24   ;;  %v1320_v24 = vld [vmem:[%s8542_s30 + $0x8] sm:$0xff] }
 0x3c8   : > { %1873 = vperm.xlu0 %8115, %v1301_v26   ;;  %v2925_v26 = vld [vmem:[%s11251_s6 + $0x50] sm:$0xff] }
 0x3cc   : > { %1843 = vperm.xlu0 %8115, %v1295_v27   ;;  %v1322_v27 = vld [vmem:[%s8542_s30 + $0x18] sm:$0xff] }
 0x3d0   : > { %1853 = vperm.xlu0 %8115, %v1297_v58   ;;  %v2941_v58 = vld [vmem:[%s11249_s12 + $0x50] sm:$0xff] }
 0x3d4   : > { %2626 = vperm.xlu0 %8115, %v1319_v61   ;;  %v1324_v61 = vld [vmem:[%s8542_s30 + $0x28] sm:$0xff] }
 0x3d7   : > { %v2315_v7 = vpop.xlane.xlu1 %2314 }
 0x3d8   : > { %v2323_v12 = vsub.f32 %v8973_v50, %v2315_v7  ;;  %2636 = vperm.xlu0 %8115, %v1321_v17   ;;  %v1331_v50 = vld [vmem:[%s8542_s30 + $0x60] sm:$0xff]  ;;  %v1326_v7 = vld [vmem:[%s8542_s30 + $0x38] sm:$0xff] }
 0x3d9   : > { %v2923_v17 = vld [vmem:[%s11251_s6 + $0x40] sm:$0xff] }
 0x3da   : > { %v2338_v22 = vmul.f32 1.442695, %v2323_v12  ;;  %v2939_v12 = vld [vmem:[%s11249_s12 + $0x40] sm:$0xff] }
 0x3dc   : > { %8236 = vpow2.f32 %v2338_v22  ;;  %2646 = vperm.xlu0 %8115, %v1323_v51   ;;  %v1328_v51 = vld [vmem:[%s8542_s30 + $0x48] sm:$0xff]  ;;  %v2921_v22 = vld [vmem:[%s11251_s6 + $0x30] sm:$0xff] }
 0x3e0   : > { %2656 = vperm.xlu0 %8115, %v1325_v13   ;;  %v1330_v13 = vld [vmem:[%s8542_s30 + $0x58] sm:$0xff] }
 0x3e4   : > { %2666 = vperm.xlu0 %8115, %v1327_v57   ;;  %v2937_v57 = vld [vmem:[%s11249_s12 + $0x30] sm:$0xff] }
 0x3e8   : > { %2676 = vperm.xlu0 %8115, %v1329_v59   ;;  %v1332_v59 = vld [vmem:[%s8542_s30 + $0x68] sm:$0xff] }
 0x3e9   : > { %v9045_v62 = vpop.eup %8236 }
 0x3ea   : > { %v2361_v63 = vsel %vm2291_vm2, %v9045_v62, 0.0 }
 0x3eb   : > { %2362 = vadd.xlane.f32.xlu1 %v2361_v63  ;;  %v9071_v63 = vpop.permute.xlu0 %1863 }
 0x3ec   : > { %2686 = vperm.xlu0 %8115, %v1331_v50   ;;  %v2919_v50 = vld [vmem:[%s11251_s6 + $0x20] sm:$0xff] }
 0x3f0   : > { %2696 = vperm.xlu0 %8115, %v1333_v1   ;;  %v1334_v1 = vld [vmem:[%s8542_s30 + $0x78] sm:$0xff] }
 0x3f4   : > { %3146 = vperm.xlu0 %8115, %v2929_v16   ;;  %v2935_v16 = vld [vmem:[%s11249_s12 + $0x20] sm:$0xff] }
 0x3f8   : > { %3242 = vperm.xlu0 %8115, %v2945_v2   ;;  %v2930_v2 = vld [vmem:[%s11251_s6 + $0x78] sm:$0xff] }
 0x3fc   : > { %1848 = vperm.xlu1 %8116, %v1296_v20   ;;  %3136 = vperm.xlu0 %8115, %v2927_v4   ;;  %v2917_v20 = vld [vmem:[%s11251_s6 + $0x10] sm:$0xff]  ;;  %v1814_v4 = vpop.permute.xlu0 %1813 }
 0x400   : > { %1858 = vperm.xlu1 %8116, %v1298_v56   ;;  %3232 = vperm.xlu0 %8115, %v2943_v14   ;;  %v2946_v56 = vld [vmem:[%s11249_s12 + $0x78] sm:$0xff]  ;;  %v2933_v14 = vld [vmem:[%s11249_s12 + $0x10] sm:$0xff] }
 0x404   : > { %2631 = vperm.xlu1 %8116, %v1320_v24   ;;  %3126 = vperm.xlu0 %8115, %v2925_v26   ;;  %v1819_v24 = vpop.permute.xlu1 %1818 }
 0x408   : > { %2641 = vperm.xlu1 %8116, %v1322_v27   ;;  %3222 = vperm.xlu0 %8115, %v2941_v58   ;;  %v2928_v27 = vld [vmem:[%s11251_s6 + $0x68] sm:$0xff]  ;;  %v2915_v58 = vld [vmem:[%s11251_s6] sm:$0xff] }
 0x40c   : > { %2651 = vperm.xlu1 %8116, %v1324_v61   ;;  %3116 = vperm.xlu0 %8115, %v2923_v17  }
 0x410   : > { %2661 = vperm.xlu1 %8116, %v1326_v7   ;;  %3212 = vperm.xlu0 %8115, %v2939_v12   ;;  %v2944_v7 = vld [vmem:[%s11249_s12 + $0x68] sm:$0xff]  ;;  %v2931_v12 = vld [vmem:[%s11249_s12] sm:$0xff] }
 0x414   : > { %2671 = vperm.xlu1 %8116, %v1328_v51   ;;  %3106 = vperm.xlu0 %8115, %v2921_v22   ;;  %v2926_v22 = vld [vmem:[%s11251_s6 + $0x58] sm:$0xff] }
 0x418   : > { %2681 = vperm.xlu1 %8116, %v1330_v13   ;;  %3202 = vperm.xlu0 %8115, %v2937_v57   ;;  %v3346_v13 = vld [vmem:[%s8562_s27 + $0x20] sm:$0xff] }
 0x41c   : > { %2691 = vperm.xlu1 %8116, %v1332_v59   ;;  %3096 = vperm.xlu0 %8115, %v2919_v50   ;;  %v2942_v59 = vld [vmem:[%s11249_s12 + $0x58] sm:$0xff]  ;;  %v3348_v50 = vld [vmem:[%s8562_s27 + $0x30] sm:$0xff] }
 0x420   : > { %2701 = vperm.xlu1 %8116, %v1334_v1   ;;  %3192 = vperm.xlu0 %8115, %v2935_v16  }
 0x424   : > { %3151 = vperm.xlu1 %8116, %v2930_v2   ;;  %3086 = vperm.xlu0 %8115, %v2917_v20   ;;  %v2924_v20 = vld [vmem:[%s11251_s6 + $0x48] sm:$0xff] }
 0x427   : > { %v2342_v26 = vpop.xlane.xlu0 %2341 }
 0x428   : > { %3247 = vperm.xlu1 %8116, %v2946_v56   ;;  %3182 = vperm.xlu0 %8115, %v2933_v14   ;;  %8238 = vrcp.f32 %v2342_v26  ;;  %v3342_v56 = vld [vmem:[%s8562_s27] sm:$0xff] }
 0x42b   : > { %v2345_v61 = vpop.xlane.xlu1 %2344  ;;  %v2348_v17 = vpop.xlane.xlu0 %2347 }
 0x42c   : > { %8240 = vrcp.f32 %v2345_v61  ;;  %3141 = vperm.xlu1 %8116, %v2928_v27   ;;  %3076 = vperm.xlu0 %8115, %v2915_v58  }
 0x42d   : > { %8242 = vrcp.f32 %v2348_v17  ;;  %v2940_v17 = vld [vmem:[%s11249_s12 + $0x48] sm:$0xff] }
 0x42f   : > { %v2351_v51 = vpop.xlane.xlu1 %2350 }
 0x430   : > { %8244 = vrcp.f32 %v2351_v51  ;;  %3237 = vperm.xlu1 %8116, %v2944_v7   ;;  %3172 = vperm.xlu0 %8115, %v2931_v12   ;;  %v3354_v7 = vld [vmem:[%s8562_s27 + $0x60] sm:$0xff] }
 0x433   : > { %v2357_v57 = vpop.xlane.xlu1 %2356 }
 0x434   : > { %3131 = vperm.xlu1 %8116, %v2926_v22   ;;  %3476 = vperm.xlu0 %8115, %v3346_v13   ;;  %8246 = vrcp.f32 %v2357_v57  ;;  %v2922_v13 = vld [vmem:[%s11251_s6 + $0x38] sm:$0xff]  ;;  %v3344_v57 = vld [vmem:[%s8562_s27 + $0x10] sm:$0xff] }
 0x435   : > { %v8239_v1 = vpop.eup %8238 }
 0x436   : > { %v2372_v14 = vmul.f32 %v8239_v1, %v8992_v30  ;;  %v1975_v30 = vadd.f32 %v8982_v0, %v1819_v24  ;;  %v2012_v24 = vadd.f32 %v8931_v45, %v9071_v63  ;;  %v3350_v63 = vld [vmem:[%s8562_s27 + $0x40] sm:$0xff] }
 0x437   : > { %v2354_v16 = vpop.xlane.xlu0 %2353 }
 0x438   : > { %8248 = vrcp.f32 %v2354_v16  ;;  %3227 = vperm.xlu1 %8116, %v2942_v59   ;;  %3486 = vperm.xlu0 %8115, %v3348_v50   ;;  %v1972_v59 = vadd.f32 %v8978_v52, %v1814_v4  ;;  %v2938_v52 = vld [vmem:[%s11249_s12 + $0x38] sm:$0xff]  ;;  %v3356_v4 = vld [vmem:[%s8562_s27 + $0x70] sm:$0xff]  ;;  %v1988_v16 = vadd.f32 %v8986_v23, %v8989_v28  ;;  %v2920_v28 = vld [vmem:[%s11251_s6 + $0x28] sm:$0xff] }
 0x439   : > { %v8241_v2 = vpop.eup %8240 }
 0x43a   : > { %v2373_v26 = vmul.f32 %v8241_v2, %v9002_v21  ;;  %v8243_v27 = vpop.eup %8242  ;;  %v2015_v2 = vadd.f32 %v8935_v47, %v9037_v6  ;;  %v2918_v6 = vld [vmem:[%s11251_s6 + $0x18] sm:$0xff] }
 0x43b   : > { %v2374_v51 = vmul.f32 %v8243_v27, %v8998_v48  ;;  %v1991_v48 = vadd.f32 %v8994_v31, %v9000_v49  ;;  %v2916_v27 = vld [vmem:[%s11251_s6 + $0x8] sm:$0xff]  ;;  %s9194_s6 = scalar_lea.vmem %s11273_s28, %s8034_s16  ;;  %s11341_s16 = sld [smem:[#allocation19_spill]] }
 0x43c   : > { %3121 = vperm.xlu1 %8116, %v2924_v20   ;;  %3456 = vperm.xlu0 %8115, %v3342_v56   ;;  %v2380_v58 = vpack.c.bf16 %v2373_v26, %v2372_v14  ;;  %v9121_v23 = vpack.c.bf16 %v2015_v2, %v2012_v24  ;;  %v3380_v56 = vld [vmem:[%s8572_s21 + $0x30] sm:$0xff]  ;;  %v2934_v14 = vld [vmem:[%s11249_s12 + $0x18] sm:$0xff]  ;;  %v3378_v26 = vld [vmem:[%s8572_s21 + $0x20] sm:$0xff] }
 0x43d   : > { %v8245_v61 = vpop.eup %8244  ;;  %v9119_v20 = vpack.c.bf16 %v1991_v48, %v1988_v16  ;;  %v3345_v48 = vld [vmem:[%s8562_s27 + $0x18] sm:$0xff] }
 0x43e   : > { %8026 = vmatprep.subr.msk.bf16.mxu0 %vm2291_vm2, %v2380_v58  ;;  %v2391_v12 = vsel %vm2291_vm2, %v2380_v58, 0  ;;  %v2375_v22 = vmul.f32 %v8245_v61, %v9008_v54  ;;  %v9105_v54 = vpack.c.bf16 %v1975_v30, %v1972_v59  ;;  %11268 = vst [vmem:[#allocation45_spill] sm:$0xff] %v9121_v23  ;;  %v3376_v58 = vld [vmem:[%s8572_s21 + $0x10] sm:$0xff]  ;;  %v2932_v61 = vld [vmem:[%s11249_s12 + $0x8] sm:$0xff]  ;;  %v3382_v59 = vld [vmem:[%s8572_s21 + $0x40] sm:$0xff] }
 0x43f   : > { %7747 = vmatpush3.bf16.xpose.msra.mxu0 %v2391_v12  ;;  %11267 = vst [vmem:[#allocation44_spill] sm:$0xff] %v9119_v20  ;;  %v3374_v12 = vld [vmem:[%s8572_s21] sm:$0xff]  ;;  %v3343_v30 = vld [vmem:[%s8562_s27 + $0x8] sm:$0xff] }
 0x440   : > { %3217 = vperm.xlu1 %8116, %v2940_v17   ;;  %3516 = vperm.xlu0 %8115, %v3354_v7   ;;  %v2381_v21 = vpack.c.bf16 %v2375_v22, %v2374_v51  ;;  %11266 = vst [vmem:[#allocation43_spill] sm:$0xff] %v9105_v54  ;;  %v3388_v17 = vld [vmem:[%s8572_s21 + $0x70] sm:$0xff]  ;;  %v3347_v7 = vld [vmem:[%s8562_s27 + $0x28] sm:$0xff]  ;;  %v3349_v51 = vld [vmem:[%s8562_s27 + $0x38] sm:$0xff] }
 0x441   : > { %v8247_v1 = vpop.eup %8246  ;;  %v3386_v22 = vld [vmem:[%s8572_s21 + $0x60] sm:$0xff] }
 0x442   : > { %8027 = vmatprep.subr.msk.bf16.mxu1 %vm2291_vm2, %v2381_v21  ;;  %v2449_v50 = vsel %vm2291_vm2, %v2381_v21, 0  ;;  %v2377_v49 = vmul.f32 %v8247_v1, %v9014_v15  ;;  %v2936_v15 = vld [vmem:[%s11249_s12 + $0x28] sm:$0xff]  ;;  %v3384_v21 = vld [vmem:[%s8572_s21 + $0x50] sm:$0xff]  ;;  %v1879_v1 = vpop.permute.xlu1 %1878 }
 0x443   : > { %7753 = vmatpush3.bf16.xpose.msra.mxu1 %v2449_v50 }
 0x444   : > { %3111 = vperm.xlu1 %8116, %v2922_v13   ;;  %3466 = vperm.xlu0 %8115, %v3344_v57   ;;  %v2360_v13 = vpop.xlane.xlu0 %2359  ;;  %v3355_v57 = vld [vmem:[%s8562_s27 + $0x68] sm:$0xff] }
 0x445   : > { %v8249_v0 = vpop.eup %8248  ;;  %8250 = vrcp.f32 %v2360_v13 }
 0x446   : > { %7749 = vmatmul.mubr.msk.bf16.vlgmr.msra.gmra.mxu0 %vm2291_vm2, %v9105_v54  ;;  %v2376_v31 = vmul.f32 %v8249_v0, %v9024_v11  ;;  %v3352_v11 = vld [vmem:[%s8562_s27 + $0x50] sm:$0xff] }
 0x448   : > { %3207 = vperm.xlu1 %8116, %v2938_v52   ;;  %3526 = vperm.xlu0 %8115, %v3356_v4   ;;  %v2382_v45 = vpack.c.bf16 %v2377_v49, %v2376_v31  ;;  %v1874_v50 = vpop.permute.xlu0 %1873  ;;  %v3357_v52 = vld [vmem:[%s8562_s27 + $0x78] sm:$0xff]  ;;  %v3351_v49 = vld [vmem:[%s8562_s27 + $0x48] sm:$0xff] }
 0x44a   : > { %7755 = vmatmul.mubr.msk.bf16.vlgmr.msra.gmra.mxu1 %vm2291_vm2, %v9119_v20  ;;  %8028 = vmatprep.subr.msk.bf16.mxu0 %vm2291_vm2, %v2382_v45  ;;  %v2507_v47 = vsel %vm2291_vm2, %v2382_v45, 0 }
 0x44b   : > { %7759 = vmatpush3.bf16.xpose.msra.mxu0 %v2507_v47  ;;  %7766 = vmatprep.mubr.msk.bf16.mxu1 %vm2291_vm2, %v9121_v23 }
 0x44c   : > { %3101 = vperm.xlu1 %8116, %v2920_v28   ;;  %3496 = vperm.xlu0 %8115, %v3350_v63   ;;  %v1844_v0 = vpop.permute.xlu0 %1843 }
 0x44d   : > { %v1996_v16 = vadd.f32 %v8923_v8, %v1844_v0 }
 0x450   : > { %3197 = vperm.xlu1 %8116, %v2936_v15   ;;  %3506 = vperm.xlu0 %8115, %v3352_v11   ;;  %v1854_v2 = vpop.permute.xlu0 %1853  ;;  %v3353_v15 = vld [vmem:[%s8562_s27 + $0x58] sm:$0xff] }
 0x451   : > { %v2004_v63 = vadd.f32 %v8921_v33, %v1854_v2 }
 0x452   : > { %v8251_v8 = vpop.eup %8250 }
 0x454   : > { %3091 = vperm.xlu1 %8116, %v2918_v6   ;;  %3727 = vperm.xlu0 %8115, %v3380_v56   ;;  %v2378_v56 = vmul.f32 %v8251_v8, %v9028_v18  ;;  %v2023_v18 = vadd.f32 %v8933_v46, %v1879_v1 }
 0x458   : > { %3187 = vperm.xlu1 %8116, %v2934_v14   ;;  %3717 = vperm.xlu0 %8115, %v3378_v26   ;;  %v3379_v14 = vld [vmem:[%s8572_s21 + $0x28] sm:$0xff] }
 0x45c   : > { %3081 = vperm.xlu1 %8116, %v2916_v27   ;;  %3707 = vperm.xlu0 %8115, %v3376_v58   ;;  %v2020_v27 = vadd.f32 %v8929_v44, %v1874_v50  ;;  %v3377_v58 = vld [vmem:[%s8572_s21 + $0x18] sm:$0xff]  ;;  %v8142_v44 = vld [vmem:[%s11271_s7] sm:$0xff]  }
 0x460   : > { %3177 = vperm.xlu1 %8116, %v2932_v61   ;;  %3767 = vperm.xlu0 %8115, %v3388_v17   ;;  %v3389_v61 = vld [vmem:[%s8572_s21 + $0x78] sm:$0xff]  ;;  %v3375_v17 = vld [vmem:[%s8572_s21 + $0x8] sm:$0xff] }
 0x464   : > { %3481 = vperm.xlu1 %8116, %v3347_v7   ;;  %3697 = vperm.xlu0 %8115, %v3374_v12   ;;  %v3387_v7 = vld [vmem:[%s8572_s21 + $0x68] sm:$0xff]  ;;  %v3385_v12 = vld [vmem:[%s8572_s21 + $0x58] sm:$0xff] }
 0x468   : > { %3491 = vperm.xlu1 %8116, %v3349_v51   ;;  %3757 = vperm.xlu0 %8115, %v3386_v22   ;;  %v3383_v51 = vld [vmem:[%s8572_s21 + $0x48] sm:$0xff] }
 0x46c   : > { %3461 = vperm.xlu1 %8116, %v3343_v30   ;;  %3747 = vperm.xlu0 %8115, %v3384_v21  }
 0x470   : > { %3521 = vperm.xlu1 %8116, %v3355_v57   ;;  %3737 = vperm.xlu0 %8115, %v3382_v59  }
 0x474   : > { %3471 = vperm.xlu1 %8116, %v3345_v48   ;;  %v2363_v24 = vpop.xlane.xlu1 %2362 }
 0x475   : > { %8252 = vrcp.f32 %v2363_v24 }
 0x478   : > { %3531 = vperm.xlu1 %8116, %v3357_v52   ;;  %v1849_v4 = vpop.permute.xlu1 %1848 }
 0x479   : > { %v1999_v31 = vadd.f32 %v8927_v36, %v1849_v4  ;;  %v3381_v36 = vld [vmem:[%s8572_s21 + $0x38] sm:$0xff] }
 0x47b   : > { %v9154_v45 = vpack.c.bf16 %v1999_v31, %v1996_v16 }
 0x47c   : > { %3501 = vperm.xlu1 %8116, %v3351_v49   ;;  %v1859_v28 = vpop.permute.xlu1 %1858 }
 0x47d   : > { %11269 = vst [vmem:[#allocation46_spill] sm:$0xff] %v9154_v45  ;;  %v2007_v47 = vadd.f32 %v8925_v34, %v1859_v28  ;;  %7760 = vmatprep.mubr.msk.bf16.mxu0 %vm2291_vm2, %v9154_v45 }
 0x47f   : > { %v9161_v11 = vpack.c.bf16 %v2007_v47, %v2004_v63  ;;  %v7361_v63 = vld [vmem:[%s9194_s6 + $0x8] sm:$0xff]   ;;  %v7363_v47 = vld [vmem:[%s9194_s6 + $0x18] sm:$0xff]  }
 0x480   : > { %3511 = vperm.xlu1 %8116, %v3353_v15   ;;  %v7343_v8 = vunpack.c.l.bf16 %v7361_v63 }
 0x481   : > { %11270 = vst [vmem:[#allocation47_spill] sm:$0xff] %v9161_v11  ;;  %7761 = vmatmul.mubr.msk.bf16.vlgmr.msra.gmra.mxu0 %vm2291_vm2, %v9161_v11 }
 0x482   : > { %v8253_v6 = vpop.eup %8252  ;;  %7786 = vmatprep.mubr.bf16.mxu0 %v8142_v44  ;;  %v3307_v44 = vstv %s7231_s9  ;;  %s11276_s9 = sld [smem:[#allocation17_spill]] }
 0x483   : > { %v2379_v33 = vmul.f32 %v8253_v6, %v9045_v62  ;;  %v9174_v62 = vpack.c.bf16 %v2023_v18, %v2020_v27  ;;  %v7351_v6 = vunpack.c.l.bf16 %v7363_v47  ;;  %v7362_v27 = vld [vmem:[%s9194_s6 + $0x10] sm:$0xff]  }
 0x484   : > { %3732 = vperm.xlu1 %8116, %v3381_v36   ;;  %v7344_v36 = vunpack.c.h.bf16 %v7361_v63 }
 0x485   : > { %v2383_v34 = vpack.c.bf16 %v2379_v33, %v2378_v56  ;;  %11272 = vst [vmem:[#allocation48_spill] sm:$0xff] %v9174_v62  ;;  %v7352_v56 = vunpack.c.h.bf16 %v7363_v47  ;;  %v7365_v33 = vld [vmem:[%s9194_s6 + $0x28] sm:$0xff]  }
 0x486   : > { %v7359_v18 = vunpack.c.l.bf16 %v7365_v33 }
 0x487   : > { %8029 = vmatprep.subr.msk.bf16.mxu1 %vm2291_vm2, %v2383_v34  ;;  %v2565_v26 = vsel %vm2291_vm2, %v2383_v34, 0  ;;  %v3283_v34 = vstv %s3282_s3  ;;  %s11303_s3 = sld [smem:[#allocation16_spill]] }
 0x488   : > { %3722 = vperm.xlu1 %8116, %v3379_v14   ;;  %7765 = vmatpush3.bf16.xpose.msra.mxu1 %v2565_v26  ;;  %v3293_v14 = vstv %s7230_s8  ;;  %v7338_v26 = vld [vmem:[%s9194_s6] sm:$0xff]   ;;  %s11317_s8 = sld [smem:[#allocation18_spill]] }
 0x48c   : > { %3712 = vperm.xlu1 %8116, %v3377_v58  }
 0x48f   : > { %7767 = vmatmul.mubr.msk.bf16.vlgmr.msra.gmra.mxu1 %vm2291_vm2, %v9174_v62 }
 0x490   : > { %3772 = vperm.xlu1 %8116, %v3389_v61   ;;  %v7360_v61 = vunpack.c.h.bf16 %v7365_v33 }
 0x494   : > { %3702 = vperm.xlu1 %8116, %v3375_v17   ;;  %v3286_v17 = vmul.f32 %v7343_v8, %v3283_v34 }
 0x498   : > { %3762 = vperm.xlu1 %8116, %v3387_v7   ;;  %v3287_v7 = vmul.f32 %v7344_v36, %v3283_v34 }
 0x49c   : > { %3752 = vperm.xlu1 %8116, %v3385_v12   ;;  %v3296_v12 = vmul.f32 %v7351_v6, %v3293_v14 }
 0x4a0   : > { %3742 = vperm.xlu1 %8116, %v3383_v51   ;;  %v3297_v51 = vmul.f32 %v7352_v56, %v3293_v14 }
 0x506   : > { %v9184_v46 = vpop.f32.mrf.mxu0 }
 0x508   : > { %v9186_v30 = vpop.f32.mrf.mxu0 }
 0x50a   : > { %v7756_v22 = vpop.f32.mrf.mxu1  ;;  %v9188_v13 = vpop.f32.mrf.mxu0 }
 0x50b   : > { %v2617_v8 = vpack.c.bf16 %v9188_v13, %v9184_v46  ;;  %v8143_v13 = vld [vmem:[%s11271_s7 + $0x8] sm:$0xff]  }
 0x50c   : > { %v2485_v21 = vpop.f32.mrf.mxu1  ;;  %v9190_v59 = vpop.f32.mrf.mxu0 }
 0x50e   : > { %v7757_v57 = vpop.f32.mrf.mxu1 }
 0x50f   : > { %v2619_v58 = vpack.c.bf16 %v7757_v57, %v7756_v22  ;;  %v3301_v22 = vadd.f32 %v3297_v51, %v3287_v7  ;;  %v9223_v7 = vpop.permute.xlu0 %2626  ;;  %v8149_v51 = vld [vmem:[%s11271_s7 + $0x38] sm:$0xff]  }
 0x510   : > { %v2488_v50 = vpop.f32.mrf.mxu1 }
 0x541   : > { %v7762_v1 = vpop.f32.mrf.mxu0 }
 0x543   : > { %v2543_v24 = vpop.f32.mrf.mxu0 }
 0x545   : > { %v7763_v49 = vpop.f32.mrf.mxu0 }
 0x546   : > { %v2621_v2 = vpack.c.bf16 %v7763_v49, %v7762_v1  ;;  %v7339_v1 = vunpack.c.l.bf16 %v7338_v26  ;;  %v3300_v49 = vadd.f32 %v3296_v12, %v3286_v17  ;;  %v9221_v17 = vpop.permute.xlu1 %2631 }
 0x547   : > { %v2546_v28 = vpop.f32.mrf.mxu0 }
 0x548   : > { %v2620_v15 = vpack.c.bf16 %v2546_v28, %v2543_v24  ;;  %v7348_v24 = vunpack.c.h.bf16 %v7362_v27  ;;  %v3284_v28 = vmul.f32 %v7339_v1, %v3283_v34  ;;  %v9229_v1 = vpop.permute.xlu0 %2636 }
 0x54a   : > { %v9225_v12 = vpop.permute.xlu1 %2641 }
 0x54f   : > { %v7768_v48 = vpop.f32.mrf.mxu1 }
 0x551   : > { %v2601_v0 = vpop.f32.mrf.mxu1 }
 0x553   : > { %v7769_v52 = vpop.f32.mrf.mxu1 }
 0x554   : > { %v2623_v4 = vpack.c.bf16 %v7769_v52, %v7768_v48  ;;  %v7340_v48 = vunpack.c.h.bf16 %v7338_v26  ;;  %v7364_v52 = vld [vmem:[%s9194_s6 + $0x20] sm:$0xff]   ;;  %v2616_v26 = vpack.c.bf16 %v9190_v59, %v9186_v30  ;;  %v8145_v30 = vld [vmem:[%s11271_s7 + $0x18] sm:$0xff]   ;;  %s11340_s6 = sld [smem:[#allocation10_spill]] }
 0x555   : > { %v2604_v16 = vpop.f32.mrf.mxu1  ;;  %v7355_v57 = vunpack.c.l.bf16 %v7364_v52  ;;  %v8146_v59 = vld [vmem:[%s11271_s7 + $0x20] sm:$0xff]  }
 0x556   : > { %v2622_v31 = vpack.c.bf16 %v2604_v16, %v2601_v0  ;;  %7770 = vmatprep.subr.bf16.mxu0 %v2623_v4  ;;  %v7347_v0 = vunpack.c.l.bf16 %v7362_v27  ;;  %v3310_v16 = vmul.f32 %v7359_v18, %v3307_v44  ;;  %v3285_v63 = vmul.f32 %v7340_v48, %v3283_v34  ;;  %v8144_v27 = vld [vmem:[%s11271_s7 + $0x10] sm:$0xff]   ;;  %v8147_v18 = vld [vmem:[%s11271_s7 + $0x28] sm:$0xff]   ;;  %v9231_v48 = vpop.permute.xlu1 %2651 }
 0x557   : > { %7771 = vmatpush3.bf16.msra.mxu0 %v2623_v4  ;;  %v2618_v4 = vpack.c.bf16 %v2488_v50, %v2485_v21  ;;  %v3308_v56 = vmul.f32 %v7355_v57, %v3307_v44 }
 0x558   : > { %7772 = vmatprep.subr.bf16.mxu0 %v2622_v31  ;;  %v3294_v47 = vmul.f32 %v7347_v0, %v3293_v14  ;;  %v3314_v36 = vadd.f32 %v3310_v16, %v3300_v49  ;;  %v9233_v0 = vpop.permute.xlu0 %2646  ;;  %v8154_v49 = vld [vmem:[%s11276_s9 + $0x20] sm:$0xff]  }
 0x55a   : > { %v3298_v50 = vadd.f32 %v3294_v47, %v3284_v28  ;;  %v8155_v28 = vld [vmem:[%s11276_s9 + $0x28] sm:$0xff]   ;;  %s1137_s28 = scalar_lea.vmem %s11340_s6, %s8713_s5  ;;  %s11342_s6 = sld [smem:[#allocation21_spill]] }
 0x55b   : > { %7773 = vmatpush3.bf16.msra.mxu0 %v2622_v31  ;;  %v3311_v31 = vmul.f32 %v7360_v61, %v3307_v44  ;;  %v8148_v61 = vld [vmem:[%s11271_s7 + $0x30] sm:$0xff]   ;;  %s11345_s7 = sld [smem:[#allocation25_spill]] }
 0x55c   : > { %7774 = vmatprep.subr.bf16.mxu0 %v2621_v2  ;;  %v9239_v16 = vpop.permute.xlu0 %2656 }
 0x55d   : > { %v3315_v21 = vadd.f32 %v3311_v31, %v3301_v22  ;;  %v8153_v31 = vld [vmem:[%s11276_s9 + $0x18] sm:$0xff]  }
 0x55f   : > { %7775 = vmatpush3.bf16.msra.mxu0 %v2621_v2  ;;  %v7356_v2 = vunpack.c.h.bf16 %v7364_v52  ;;  %v9206_v34 = vpack.c.bf16 %v3315_v21, %v3314_v36  ;;  %v8152_v52 = vld [vmem:[%s11276_s9 + $0x10] sm:$0xff]   ;;  %v8157_v36 = vld [vmem:[%s11276_s9 + $0x38] sm:$0xff]  }
 0x560   : > { %7776 = vmatprep.subr.bf16.mxu0 %v2620_v15  ;;  %v9245_v57 = vpop.permute.xlu0 %2666 }
 0x561   : > { %v3309_v33 = vmul.f32 %v7356_v2, %v3307_v44  ;;  %11274 = vst [vmem:[#allocation49_spill] sm:$0xff] %v9206_v34  ;;  %v8150_v44 = vld [vmem:[%s11276_s9] sm:$0xff]  }
 0x563   : > { %7777 = vmatpush3.bf16.msra.mxu0 %v2620_v15  ;;  %v3295_v15 = vmul.f32 %v7348_v24, %v3293_v14  ;;  %v3312_v14 = vadd.f32 %v3308_v56, %v3298_v50  ;;  %v8151_v24 = vld [vmem:[%s11276_s9 + $0x8] sm:$0xff]  }
 0x564   : > { %7778 = vmatprep.subr.bf16.mxu0 %v2619_v58  ;;  %v9251_v47 = vpop.permute.xlu0 %2676 }
 0x565   : > { %v3299_v6 = vadd.f32 %v3295_v15, %v3285_v63  ;;  %v8156_v63 = vld [vmem:[%s11276_s9 + $0x30] sm:$0xff]   ;;  %s1147_s9 = scalar_lea.vmem %s11399_s10, %s8713_s5 }
 0x567   : > { %7779 = vmatpush3.bf16.msra.mxu0 %v2619_v58  ;;  %v3313_v46 = vadd.f32 %v3309_v33, %v3299_v6 }
 0x568   : > { %7780 = vmatprep.subr.bf16.mxu0 %v2618_v4 }
 0x569   : > { %v9211_v58 = vpack.c.bf16 %v3313_v46, %v3312_v14 }
 0x56b   : > { %7781 = vmatpush3.bf16.msra.mxu0 %v2618_v4  ;;  %11275 = vst [vmem:[#allocation50_spill] sm:$0xff] %v9211_v58  ;;  %v9237_v4 = vpop.permute.xlu1 %2661 }
 0x56c   : > { %7782 = vmatprep.subr.bf16.mxu0 %v2617_v8 }
 0x56f   : > { %7783 = vmatpush3.bf16.msra.mxu0 %v2617_v8  ;;  %v9243_v22 = vpop.permute.xlu1 %2671  ;;  %v9255_v8 = vpop.permute.xlu0 %2686 }
 0x570   : > { %7784 = vmatprep.subr.bf16.mxu0 %v2616_v26 }
 0x573   : > { %7785 = vmatpush3.bf16.msra.mxu0 %v2616_v26  ;;  %v9247_v2 = vpop.permute.xlu1 %2681  ;;  %v9262_v50 = vpop.permute.xlu0 %2696 }
 0x574   : > { %7834 = vmatprep.subr.bf16.mxu0 %v9206_v34 }
 0x576   : > { %7787 = vmatmul.mubr.bf16.vlgmr.msra.gmra.mxu0 %v8143_v13 }
 0x577   : > { %7790 = vmatprep.mubr.bf16.mxu0 %v8144_v27  ;;  %7835 = vmatpush3.bf16.xpose.msra.mxu0 %v9206_v34  ;;  %v9253_v15 = vpop.permute.xlu1 %2691  ;;  %v9266_v56 = vpop.permute.xlu0 %3146 }
 0x578   : > { %7836 = vmatprep.subr.bf16.mxu0 %v9211_v58 }
 0x57b   : > { %v9258_v21 = vpop.permute.xlu1 %2701  ;;  %v9270_v26 = vpop.permute.xlu0 %3242 }
 0x57e   : > { %7791 = vmatmul.mubr.bf16.gmra.mxu0 %v8145_v30 }
 0x57f   : > { %7794 = vmatprep.mubr.bf16.mxu0 %v8146_v59  ;;  %7837 = vmatpush3.bf16.xpose.msra.mxu0 %v9211_v58  ;;  %v9264_v6 = vpop.permute.xlu1 %3151  ;;  %v9274_v46 = vpop.permute.xlu0 %3136 }
 0x580   : > { %7874 = vmatprep.subr.bf16.mxu0 %v11168_v60 }
 0x583   : > { %v9268_v33 = vpop.permute.xlu1 %3247  ;;  %v9278_v27 = vpop.permute.xlu0 %3232 }
 0x586   : > { %7795 = vmatmul.mubr.bf16.gmra.mxu0 %v8147_v18 }
 0x587   : > { %7798 = vmatprep.mubr.bf16.mxu0 %v8148_v61  ;;  %v9272_v14 = vpop.permute.xlu1 %3141  ;;  %v9282_v59 = vpop.permute.xlu0 %3126 }
 0x58b   : > { %v9276_v13 = vpop.permute.xlu1 %3237  ;;  %v9286_v61 = vpop.permute.xlu0 %3222 }
 0x58e   : > { %7799 = vmatmul.mubr.bf16.gmra.mxu0 %v8149_v51 }
 0x58f   : > { %7838 = vmatprep.mubr.bf16.mxu0 %v8150_v44  ;;  %v9280_v30 = vpop.permute.xlu1 %3131  ;;  %v9290_v44 = vpop.permute.xlu0 %3116 }
 0x593   : > { %v9284_v18 = vpop.permute.xlu1 %3227 }
 0x596   : > { %7839 = vmatmul.mubr.bf16.vlgmr.msra.gmra.mxu0 %v8151_v24 }
 0x597   : > { %7842 = vmatprep.mubr.bf16.mxu0 %v8152_v52  ;;  %v9288_v51 = vpop.permute.xlu1 %3121  ;;  %v9294_v52 = vpop.permute.xlu0 %3212 }
 0x59b   : > { %v9292_v24 = vpop.permute.xlu1 %3217 }
 0x59e   : > { %7843 = vmatmul.mubr.bf16.gmra.mxu0 %v8153_v31 }
 0x59f   : > { %7846 = vmatprep.mubr.bf16.mxu0 %v8154_v49  ;;  %v9296_v31 = vpop.permute.xlu1 %3111  ;;  %v9298_v49 = vpop.permute.xlu0 %3106 }
 0x5a6   : > { %7847 = vmatmul.mubr.bf16.gmra.mxu0 %v8155_v28  ;;  %v9300_v28 = vpop.permute.xlu1 %3207 }
 0x5a7   : > { %7850 = vmatprep.mubr.bf16.mxu0 %v8156_v63  ;;  %v9302_v63 = vpop.permute.xlu0 %3202 }
 0x5ae   : > { %7851 = vmatmul.mubr.bf16.gmra.mxu0 %v8157_v36  ;;  %v9304_v36 = vpop.permute.xlu1 %3101 }
 0x5af   : > { %7878 = vmatprep.mubr.msk.bf16.mxu0 %vm8470_vm0, %v11168_v60  ;;  %v9306_v60 = vpop.permute.xlu0 %3096 }
 0x5b2   : > { %v9308_v29 = vpop.permute.xlu1 %3197 }
 0x5b3   : > { %v9310_v9 = vpop.permute.xlu0 %3192 }
 0x5b6   : > { %v9312_v3 = vpop.permute.xlu1 %3091 }
 0x5b7   : > { %11277 = vst [vmem:[#allocation51_spill] sm:$0xff] %v9312_v3  ;;  %v9314_v25 = vpop.permute.xlu0 %3086 }
 0x5ba   : > { %v9316_v10 = vpop.permute.xlu1 %3187 }
 0x5bb   : > { %11278 = vst [vmem:[#allocation52_spill] sm:$0xff] %v9316_v10  ;;  %v9318_v19 = vpop.permute.xlu0 %3182 }
 0x5bc   : > { %11279 = vst [vmem:[#allocation53_spill] sm:$0xff] %v9318_v19 }
 0x5be   : > { %v9320_v32 = vpop.permute.xlu1 %3081 }
 0x5bf   : > { %11280 = vst [vmem:[#allocation54_spill] sm:$0xff] %v9320_v32  ;;  %v9322_v53 = vpop.permute.xlu0 %3076 }
 0x5c0   : > { %11281 = vst [vmem:[#allocation55_spill] sm:$0xff] %v9322_v53 }
 0x5c2   : > { %v9324_v62 = vpop.permute.xlu1 %3177 }
 0x5c3   : > { %11282 = vst [vmem:[#allocation56_spill] sm:$0xff] %v9324_v62  ;;  %v9326_v23 = vpop.permute.xlu0 %3172 }
 0x5c4   : > { %11283 = vst [vmem:[#allocation57_spill] sm:$0xff] %v9326_v23 }
 0x5c6   : > { %v9328_v11 = vpop.permute.xlu1 %3481 }
 0x5c7   : > { %11284 = vst [vmem:[#allocation58_spill] sm:$0xff] %v9328_v11  ;;  %v9330_v45 = vpop.permute.xlu0 %3476 }
 0x5c8   : > { %11285 = vst [vmem:[#allocation59_spill] sm:$0xff] %v9330_v45 }
 0x5ca   : > { %v9332_v20 = vpop.permute.xlu1 %3491 }
 0x5cb   : > { %11286 = vst [vmem:[#allocation60_spill] sm:$0xff] %v9332_v20  ;;  %v9334_v55 = vpop.permute.xlu0 %3486 }
 0x5cc   : > { %11287 = vst [vmem:[#allocation61_spill] sm:$0xff] %v9334_v55 }
 0x5ce   : > { %v9336_v54 = vpop.permute.xlu1 %3461 }
 0x5cf   : > { %11288 = vst [vmem:[#allocation62_spill] sm:$0xff] %v9336_v54  ;;  %v9338_v5 = vpop.permute.xlu0 %3456 }
 0x5d0   : > { %11289 = vst [vmem:[#allocation63_spill] sm:$0xff] %v9338_v5 }
 0x5d2   : > { %v9340_v58 = vpop.permute.xlu1 %3521 }
 0x5d3   : > { %11290 = vst [vmem:[#allocation64_spill] sm:$0xff] %v9340_v58  ;;  %v9342_v34 = vpop.permute.xlu0 %3516 }
 0x5d4   : > { %11291 = vst [vmem:[#allocation65_spill] sm:$0xff] %v9342_v34  ;;  %v1183_v34 = vunpack.c.l.bf16 %v8750_v35 }
 0x5d6   : > { %v9344_v32 = vpop.permute.xlu1 %3471 }
 0x5d7   : > { %11292 = vst [vmem:[#allocation66_spill] sm:$0xff] %v9344_v32  ;;  %v9346_v62 = vpop.permute.xlu0 %3466  ;;  %v1184_v32 = vunpack.c.h.bf16 %v8750_v35  ;;  %v1187_v35 = vunpack.c.l.bf16 %v8755_v38 }
 0x5d8   : > { %11293 = vst [vmem:[#allocation67_spill] sm:$0xff] %v9346_v62 }
 0x5da   : > { %v9348_v23 = vpop.permute.xlu1 %3531 }
 0x5db   : > { %11294 = vst [vmem:[#allocation68_spill] sm:$0xff] %v9348_v23  ;;  %v9350_v11 = vpop.permute.xlu0 %3526  ;;  %v1185_v23 = vunpack.c.l.bf16 %v8753_v37 }
 0x5dc   : > { %11295 = vst [vmem:[#allocation69_spill] sm:$0xff] %v9350_v11 }
 0x5de   : > { %v9352_v20 = vpop.permute.xlu1 %3501 }
 0x5df   : > { %11296 = vst [vmem:[#allocation70_spill] sm:$0xff] %v9352_v20  ;;  %v9355_v10 = vpop.permute.xlu0 %3496 }
 0x5e0   : > { %11297 = vst [vmem:[#allocation71_spill] sm:$0xff] %v9355_v10 }
 0x5e2   : > { %v9365_v53 = vpop.permute.xlu1 %3511 }
 0x5e3   : > { %11298 = vst [vmem:[#allocation72_spill] sm:$0xff] %v9365_v53  ;;  %v9372_v10 = vpop.permute.xlu0 %3506 }
 0x5e4   : > { %11299 = vst [vmem:[#allocation73_spill] sm:$0xff] %v9372_v10 }
 0x636   : > { %v7788_v45 = vpop.f32.mrf.mxu0 }
 0x637   : > { %v2795_v58 = vadd.f32 %v7788_v45, %v9229_v1  ;;  %v1186_v45 = vunpack.c.h.bf16 %v8753_v37 }
 0x638   : > { %v2786_v55 = vpop.f32.mrf.mxu0 }
 0x639   : > { %v2787_v54 = vadd.f32 %v2786_v55, %v9223_v7  ;;  %v9367_v7 = vadd.f32 %v2795_v58, %v1185_v23 }
 0x63a   : > { %v7789_v5 = vpop.f32.mrf.mxu0 }
 0x63b   : > { %v9361_v19 = vadd.f32 %v2787_v54, %v1183_v34  ;;  %v2798_v11 = vadd.f32 %v7789_v5, %v9225_v12  ;;  %v2950_v37 = vsel %vm2291_vm2, %v9367_v7, 0.0 }
 0x63c   : > { %v2789_v62 = vpop.f32.mrf.mxu0 }
 0x63d   : > { %v2790_v20 = vadd.f32 %v2789_v62, %v9221_v17  ;;  %v2947_v54 = vsel %vm2291_vm2, %v9361_v19, 0.0  ;;  %v9377_v5 = vadd.f32 %v2798_v11, %v1186_v45  ;;  %v9387_v17 = vpop.permute.xlu1 %3732  ;;  %v1188_v11 = vunpack.c.h.bf16 %v8755_v38 }
 0x63e   : > { %v7792_v55 = vpop.f32.mrf.mxu0  ;;  %11300 = vst [vmem:[#allocation74_spill] sm:$0xff] %v9387_v17  ;;  %v1190_v38 = vunpack.c.h.bf16 %v8757_v39 }
 0x63f   : > { %v9370_v1 = vadd.f32 %v2790_v20, %v1184_v32  ;;  %v2811_v32 = vadd.f32 %v7792_v55, %v9239_v16  ;;  %v2952_v10 = vsel %vm2291_vm2, %v9377_v5, 0.0 }
 0x640   : > { %v2802_v3 = vpop.f32.mrf.mxu0 }
 0x641   : > { %v2948_v62 = vsel %vm2291_vm2, %v9370_v1, 0.0  ;;  %v2803_v23 = vadd.f32 %v2802_v3, %v9233_v0  ;;  %v1189_v3 = vunpack.c.l.bf16 %v8757_v39 }
 0x642   : > { %v2949_v34 = vadd.f32 %v2948_v62, %v2947_v54  ;;  %v7793_v58 = vpop.f32.mrf.mxu0  ;;  %v9395_v62 = vpop.permute.xlu0 %3727 }
 0x643   : > { %v9385_v20 = vadd.f32 %v2803_v23, %v1187_v35  ;;  %v2814_v0 = vadd.f32 %v7793_v58, %v9237_v4  ;;  %v9397_v35 = vadd.f32 %v2811_v32, %v1189_v3  ;;  %v1191_v4 = vunpack.c.l.bf16 %v8759_v40  ;;  %v9410_v58 = vpop.permute.xlu1 %3722 }
 0x644   : > { %v2951_v12 = vadd.f32 %v2950_v37, %v2949_v34  ;;  %v2805_v45 = vpop.f32.mrf.mxu0  ;;  %11301 = vst [vmem:[#allocation75_spill] sm:$0xff] %v9410_v58 }
 0x645   : > { %v2806_v54 = vadd.f32 %v2805_v45, %v9231_v48  ;;  %v2954_v23 = vsel %vm2291_vm2, %v9385_v20, 0.0  ;;  %v9404_v17 = vadd.f32 %v2814_v0, %v1190_v38  ;;  %v2958_v39 = vsel %vm2291_vm2, %v9397_v35, 0.0 }
 0x646   : > { %v2953_v16 = vadd.f32 %v2952_v10, %v2951_v12  ;;  %v7796_v55 = vpop.f32.mrf.mxu0  ;;  %v9417_v3 = vpop.permute.xlu0 %3717 }
 0x647   : > { %v9402_v34 = vadd.f32 %v2806_v54, %v1188_v11  ;;  %v2827_v11 = vadd.f32 %v7796_v55, %v9251_v47  ;;  %11302 = vst [vmem:[#allocation76_spill] sm:$0xff] %v9417_v3  ;;  %v1192_v54 = vunpack.c.h.bf16 %v8759_v40 }
 0x648   : > { %v2955_v37 = vadd.f32 %v2954_v23, %v2953_v16  ;;  %v2818_v53 = vpop.f32.mrf.mxu0 }
 0x649   : > { %v2956_v48 = vsel %vm2291_vm2, %v9402_v34, 0.0  ;;  %v2819_v10 = vadd.f32 %v2818_v53, %v9245_v57  ;;  %v2960_v53 = vsel %vm2291_vm2, %v9404_v17, 0.0  ;;  %v1193_v57 = vunpack.c.l.bf16 %v8761_v41 }
 0x64a   : > { %v2957_v32 = vadd.f32 %v2956_v48, %v2955_v37  ;;  %v7797_v12 = vpop.f32.mrf.mxu0 }
 0x64b   : > { %v9415_v45 = vadd.f32 %v2819_v10, %v1191_v4  ;;  %v2830_v23 = vadd.f32 %v7797_v12, %v9247_v2  ;;  %v9425_v47 = vadd.f32 %v2827_v11, %v1193_v57  ;;  %v1194_v4 = vunpack.c.h.bf16 %v8761_v41  ;;  %v3713_v10 = vpop.permute.xlu1 %3712  ;;  %v3708_v11 = vpop.permute.xlu0 %3707 }
 0x64c   : > { %v2959_v0 = vadd.f32 %v2958_v39, %v2957_v32  ;;  %v2821_v16 = vpop.f32.mrf.mxu0 }
 0x64d   : > { %v2822_v38 = vadd.f32 %v2821_v16, %v9243_v22  ;;  %v2962_v55 = vsel %vm2291_vm2, %v9415_v45, 0.0  ;;  %v9432_v3 = vadd.f32 %v2830_v23, %v1194_v4  ;;  %v1195_v22 = vunpack.c.l.bf16 %v8763_v42 }
 0x64e   : > { %v2961_v37 = vadd.f32 %v2960_v53, %v2959_v0  ;;  %v7800_v48 = vpop.f32.mrf.mxu0  ;;  %v2966_v41 = vsel %vm2291_vm2, %v9425_v47, 0.0  ;;  %v1196_v23 = vunpack.c.h.bf16 %v8763_v42 }
 0x64f   : > { %v9430_v40 = vadd.f32 %v2822_v38, %v1192_v54  ;;  %v2843_v54 = vadd.f32 %v7800_v48, %v9262_v50 }
 0x650   : > { %v2963_v32 = vadd.f32 %v2962_v55, %v2961_v37  ;;  %v2834_v39 = vpop.f32.mrf.mxu0  ;;  %v2968_v37 = vsel %vm2291_vm2, %v9432_v3, 0.0 }
 0x651   : > { %v2964_v2 = vsel %vm2291_vm2, %v9430_v40, 0.0  ;;  %v2835_v12 = vadd.f32 %v2834_v39, %v9255_v8  ;;  %v1197_v8 = vunpack.c.l.bf16 %v8765_v43 }
 0x652   : > { %v2965_v0 = vadd.f32 %v2964_v2, %v2963_v32  ;;  %v7801_v16 = vpop.f32.mrf.mxu0  ;;  %v9449_v32 = vpop.permute.xlu1 %3772  ;;  %v1198_v2 = vunpack.c.h.bf16 %v8765_v43 }
 0x653   : > { %v9441_v53 = vadd.f32 %v2835_v12, %v1195_v22  ;;  %v2846_v55 = vadd.f32 %v7801_v16, %v9258_v21  ;;  %11304 = vst [vmem:[#allocation77_spill] sm:$0xff] %v9449_v32  ;;  %v9451_v48 = vadd.f32 %v2843_v54, %v1197_v8  ;;  %v9458_v12 = vpop.permute.xlu0 %3767  ;;  %v8158_v21 = vld [vmem:[%s11303_s3] sm:$0xff]  }
 0x654   : > { %v2967_v57 = vadd.f32 %v2966_v41, %v2965_v0  ;;  %v2837_v38 = vpop.f32.mrf.mxu0  ;;  %11305 = vst [vmem:[#allocation78_spill] sm:$0xff] %v9458_v12  ;;  %7818 = vmatprep.mubr.bf16.mxu1 %v8158_v21  ;;  %v11307_v21 = vmov 0.0  }
 0x655   : > { %v2838_v4 = vadd.f32 %v2837_v38, %v9253_v15  ;;  %v2970_v42 = vsel %vm2291_vm2, %v9441_v53, 0.0  ;;  %v9461_v16 = vadd.f32 %v2846_v55, %v1198_v2  ;;  %v2974_v38 = vsel %vm2291_vm2, %v9451_v48, 0.0 }
 0x656   : > { %v2969_v39 = vadd.f32 %v2968_v37, %v2967_v57  ;;  %v7840_v50 = vpop.f32.mrf.mxu0 }
 0x657   : > { %v9456_v22 = vadd.f32 %v2838_v4, %v1196_v23  ;;  %v3866_v37 = vadd.f32 %v7840_v50, %v3708_v11  ;;  %v3703_v23 = vpop.permute.xlu1 %3702  ;;  %v3698_v2 = vpop.permute.xlu0 %3697 }
 0x658   : > { %v2971_v0 = vadd.f32 %v2970_v42, %v2969_v39  ;;  %v3857_v41 = vpop.f32.mrf.mxu0  ;;  %v2976_v39 = vsel %vm2291_vm2, %v9461_v16, 0.0 }
 0x659   : > { %v2972_v15 = vsel %vm2291_vm2, %v9456_v22, 0.0  ;;  %v3858_v32 = vadd.f32 %v3857_v41, %v3698_v2 }
 0x65a   : > { %v2973_v57 = vadd.f32 %v2972_v15, %v2971_v0  ;;  %v7841_v54 = vpop.f32.mrf.mxu0 }
 0x65b   : > { %v3869_v43 = vadd.f32 %v7841_v54, %v3713_v10 }
 0x65c   : > { %v2975_v8 = vadd.f32 %v2974_v38, %v2973_v57  ;;  %v3860_v4 = vpop.f32.mrf.mxu0 }
 0x65d   : > { %v9469_v42 = vpack.c.bf16 %v3869_v43, %v3866_v37  ;;  %v3861_v55 = vadd.f32 %v3860_v4, %v3703_v23 }
 0x65e   : > { %v2977_v12 = vadd.f32 %v2976_v39, %v2975_v8 }
 0x65f   : > { %11306 = vst [vmem:[#allocation79_spill] sm:$0xff] %v9469_v42  ;;  %7875 = vmatpush3.bf16.msra.mxu0 %v9469_v42  ;;  %v9473_v15 = vpack.c.bf16 %v3861_v55, %v3858_v32 }
 0x660   : > { %v2978_v0 = vrot.slane %v2977_v12, 4  ;;  %7876 = vmatprep.subr.bf16.mxu0 %v11307_v21 }
 0x661   : > { %11308 = vst [vmem:[#allocation80_spill] sm:$0xff] %v9473_v15 }
 0x662   : > { %v2979_v10 = vadd.f32 %v2978_v0, %v2977_v12 }
 0x663   : > { %7877 = vmatpush3.bf16.msra.mxu0 %v9473_v15 }
 0x664   : > { %v2980_v11 = vrot.slane %v2979_v10, 2  ;;  %7890 = vmatprep.subr.bf16.mxu0 %v11307_v21 }
 0x666   : > { %v2981_v50 = vadd.f32 %v2980_v11, %v2979_v10 }
 0x668   : > { %v2982_v57 = vrot.slane %v2981_v50, 1 }
 0x66a   : > { %v2983_v54 = vadd.f32 %v2982_v57, %v2981_v50 }
 0x66c   : > { %v2985_v38 = vmul.f32 0.0078125, %v2983_v54 }
 0x66e   : > { %v9478_v37 = vsub.f32 %v9361_v19, %v2985_v38  ;;  %v9481_v41 = vsub.f32 %v9370_v1, %v2985_v38  ;;  %v9484_v43 = vsub.f32 %v9367_v7, %v2985_v38  ;;  %v9487_v32 = vsub.f32 %v9377_v5, %v2985_v38 }
 0x66f   : > { %v9494_v8 = vsub.f32 %v9385_v20, %v2985_v38  ;;  %v9499_v1 = vsub.f32 %v9402_v34, %v2985_v38  ;;  %v9506_v55 = vsub.f32 %v9397_v35, %v2985_v38  ;;  %v9512_v34 = vsub.f32 %v9404_v17, %v2985_v38 }
 0x670   : > { %v3002_v12 = vmul.f32 %v9478_v37, %v9478_v37  ;;  %v3003_v23 = vmul.f32 %v9481_v41, %v9481_v41  ;;  %v3004_v19 = vmul.f32 %v9484_v43, %v9484_v43  ;;  %v3005_v7 = vmul.f32 %v9487_v32, %v9487_v32 }
 0x671   : > { %v3006_v20 = vmul.f32 %v9494_v8, %v9494_v8  ;;  %v3007_v10 = vmul.f32 %v9499_v1, %v9499_v1  ;;  %v9518_v57 = vsub.f32 %v9415_v45, %v2985_v38  ;;  %v3008_v35 = vmul.f32 %v9506_v55, %v9506_v55 }
 0x672   : > { %v3018_v5 = vsel %vm2291_vm2, %v3002_v12, 0.0  ;;  %v3019_v4 = vsel %vm2291_vm2, %v3003_v23, 0.0  ;;  %v3021_v2 = vsel %vm2291_vm2, %v3004_v19, 0.0  ;;  %v3023_v11 = vsel %vm2291_vm2, %v3005_v7, 0.0 }
 0x673   : > { %v3020_v39 = vadd.f32 %v3019_v4, %v3018_v5  ;;  %v3025_v54 = vsel %vm2291_vm2, %v3006_v20, 0.0  ;;  %v2995_v23 = vsub.f32 %v9430_v40, %v2985_v38  ;;  %v3009_v17 = vmul.f32 %v9512_v34, %v9512_v34 }
 0x674   : > { %v3027_v19 = vsel %vm2291_vm2, %v3007_v10, 0.0  ;;  %v2996_v7 = vsub.f32 %v9425_v47, %v2985_v38  ;;  %v3010_v45 = vmul.f32 %v9518_v57, %v9518_v57  ;;  %v3029_v4 = vsel %vm2291_vm2, %v3008_v35, 0.0 }
 0x675   : > { %v3022_v0 = vadd.f32 %v3021_v2, %v3020_v39  ;;  %v2997_v2 = vsub.f32 %v9432_v3, %v2985_v38  ;;  %v3011_v20 = vmul.f32 %v2995_v23, %v2995_v23  ;;  %v2999_v47 = vsub.f32 %v9456_v22, %v2985_v38 }
 0x676   : > { %v3033_v10 = vsel %vm2291_vm2, %v3010_v45, 0.0  ;;  %v3000_v35 = vsub.f32 %v9451_v48, %v2985_v38 }
 0x677   : > { %v3024_v50 = vadd.f32 %v3023_v11, %v3022_v0  ;;  %v3031_v0 = vsel %vm2291_vm2, %v3009_v17, 0.0  ;;  %v2998_v11 = vsub.f32 %v9441_v53, %v2985_v38  ;;  %v3001_v17 = vsub.f32 %v9461_v16, %v2985_v38 }
 0x678   : > { %v3016_v45 = vmul.f32 %v3000_v35, %v3000_v35 }
 0x679   : > { %v3026_v12 = vadd.f32 %v3025_v54, %v3024_v50  ;;  %v3012_v50 = vmul.f32 %v2996_v7, %v2996_v7 }
 0x67a   : > { %v3045_v48 = vsel %vm2291_vm2, %v3016_v45, 0.0 }
 0x67b   : > { %v3028_v5 = vadd.f32 %v3027_v19, %v3026_v12  ;;  %v3013_v12 = vmul.f32 %v2997_v2, %v2997_v2  ;;  %v3035_v19 = vsel %vm2291_vm2, %v3011_v20, 0.0  ;;  %v3037_v3 = vsel %vm2291_vm2, %v3012_v50, 0.0 }
 0x67d   : > { %v3030_v39 = vadd.f32 %v3029_v4, %v3028_v5  ;;  %v3014_v5 = vmul.f32 %v2998_v11, %v2998_v11  ;;  %v3039_v53 = vsel %vm2291_vm2, %v3013_v12, 0.0 }
 0x67f   : > { %v3032_v40 = vadd.f32 %v3031_v0, %v3030_v39  ;;  %v3015_v39 = vmul.f32 %v2999_v47, %v2999_v47 }
 0x681   : > { %v3034_v54 = vadd.f32 %v3033_v10, %v3032_v40  ;;  %v3041_v40 = vsel %vm2291_vm2, %v3014_v5, 0.0  ;;  %v3017_v10 = vmul.f32 %v3001_v17, %v3001_v17  ;;  %v3043_v20 = vsel %vm2291_vm2, %v3015_v39, 0.0 }
 0x683   : > { %v3036_v42 = vadd.f32 %v3035_v19, %v3034_v54  ;;  %v3047_v50 = vsel %vm2291_vm2, %v3017_v10, 0.0 }
 0x685   : > { %v3038_v4 = vadd.f32 %v3037_v3, %v3036_v42 }
 0x687   : > { %v3040_v0 = vadd.f32 %v3039_v53, %v3038_v4 }
 0x689   : > { %v3042_v22 = vadd.f32 %v3041_v40, %v3040_v0 }
 0x68b   : > { %v3044_v54 = vadd.f32 %v3043_v20, %v3042_v22 }
 0x68d   : > { %v3046_v19 = vadd.f32 %v3045_v48, %v3044_v54 }
 0x68f   : > { %v3048_v42 = vadd.f32 %v3047_v50, %v3046_v19 }
 0x691   : > { %v3049_v3 = vrot.slane %v3048_v42, 4 }
 0x693   : > { %v3050_v16 = vadd.f32 %v3049_v3, %v3048_v42  ;;  %v11312_v3 = vld [vmem:[#allocation52_spill] sm:$0xff] }
 0x695   : > { %v3051_v38 = vrot.slane %v3050_v16, 2 }
 0x697   : > { %v3052_v15 = vadd.f32 %v3051_v38, %v3050_v16  ;;  %v11313_v16 = vld [vmem:[#allocation54_spill] sm:$0xff] }
 0x699   : > { %v3053_v12 = vrot.slane %v3052_v15, 1 }
 0x69b   : > { %v3054_v4 = vadd.f32 %v3053_v12, %v3052_v15  ;;  %v11314_v12 = vld [vmem:[#allocation57_spill] sm:$0xff] }
 0x69d   : > { %v3055_v53 = vmul.f32 0.0078125, %v3054_v4 }
 0x69f   : > { %v3056_v58 = vadd.f32 1e-05, %v3055_v53  ;;  %v11315_v53 = vld [vmem:[#allocation56_spill] sm:$0xff] }
 0x6a1   : > { %8254 = vrsqrt.f32 %v3056_v58 }
 0x6ae   : > { %v8255_v5 = vpop.eup %8254 }
 0x6af   : > { %v3071_v0 = vmul.f32 %v8255_v5, %v2999_v47  ;;  %v3072_v40 = vmul.f32 %v8255_v5, %v3000_v35  ;;  %v3073_v39 = vmul.f32 %v8255_v5, %v3001_v17  ;;  %v3070_v22 = vmul.f32 %v8255_v5, %v2998_v11 }
 0x6b0   : > { %v3068_v20 = vmul.f32 %v8255_v5, %v2996_v7  ;;  %v3069_v45 = vmul.f32 %v8255_v5, %v2997_v2  ;;  %v3066_v58 = vmul.f32 %v8255_v5, %v9518_v57  ;;  %v3067_v47 = vmul.f32 %v8255_v5, %v2995_v23 }
 0x6b1   : > { %v3168_v54 = vmul.f32 %v9266_v56, %v3072_v40  ;;  %v3169_v10 = vmul.f32 %v9264_v6, %v3073_v39  ;;  %v3166_v48 = vmul.f32 %v9274_v46, %v3070_v22  ;;  %v3167_v19 = vmul.f32 %v9272_v14, %v3071_v0  ;;  %v8159_v40 = vld [vmem:[%s11303_s3 + $0x8] sm:$0xff]   ;;  %v8160_v39 = vld [vmem:[%s11303_s3 + $0x10] sm:$0xff]   ;;  %v11316_v22 = vld [vmem:[#allocation49_spill] sm:$0xff] }
 0x6b2   : > { %v3164_v15 = vmul.f32 %v9282_v59, %v3068_v20  ;;  %v3165_v50 = vmul.f32 %v9280_v30, %v3069_v45  ;;  %v3065_v59 = vmul.f32 %v8255_v5, %v9512_v34  ;;  %v3062_v23 = vmul.f32 %v8255_v5, %v9494_v8  ;;  %v11318_v20 = vld [vmem:[#allocation50_spill] sm:$0xff]  ;;  %v8161_v45 = vld [vmem:[%s11303_s3 + $0x18] sm:$0xff]  }
 0x6b3   : > { %v9553_v35 = vadd.f32 %v9270_v26, %v3168_v54  ;;  %v9556_v7 = vadd.f32 %v9268_v33, %v3169_v10  ;;  %v9559_v56 = vadd.f32 %v9278_v27, %v3166_v48  ;;  %v9562_v6 = vadd.f32 %v9276_v13, %v3167_v19  ;;  %v8162_v54 = vld [vmem:[%s11303_s3 + $0x20] sm:$0xff]   ;;  %v8163_v10 = vld [vmem:[%s11303_s3 + $0x28] sm:$0xff]   ;;  %v8164_v48 = vld [vmem:[%s11303_s3 + $0x30] sm:$0xff]   ;;  %v7844_v19 = vpop.f32.mrf.mxu0 }
 0x6b4   : > { %v9567_v46 = vadd.f32 %v9286_v61, %v3164_v15  ;;  %v9570_v30 = vadd.f32 %v9284_v18, %v3165_v50  ;;  %v3162_v26 = vmul.f32 %v9290_v44, %v3066_v58  ;;  %v3163_v33 = vmul.f32 %v9288_v51, %v3067_v47  ;;  %v8165_v50 = vld [vmem:[%s11303_s3 + $0x38] sm:$0xff]   ;;  %v8166_v58 = vld [vmem:[%s11317_s8] sm:$0xff]   ;;  %s11344_s3 = sld [smem:[#allocation23_spill]] }
 0x6b5   : > { %v3325_v14 = vpack.c.bf16 %v9556_v7, %v9553_v35  ;;  %v3324_v27 = vpack.c.bf16 %v9562_v6, %v9559_v56  ;;  %v3064_v13 = vmul.f32 %v8255_v5, %v9506_v55  ;;  %v3161_v57 = vmul.f32 %v9296_v31, %v3065_v59  ;;  %v3873_v15 = vpop.f32.mrf.mxu0 }
 0x6b6   : > { %v3323_v61 = vpack.c.bf16 %v9570_v30, %v9567_v46  ;;  %v9581_v18 = vadd.f32 %v9294_v52, %v3162_v26  ;;  %v9584_v44 = vadd.f32 %v9292_v24, %v3163_v33  ;;  %v3063_v55 = vmul.f32 %v8255_v5, %v9499_v1 }
 0x6b7   : > { %7802 = vmatprep.subr.bf16.mxu1 %v3325_v14  ;;  %v3160_v51 = vmul.f32 %v9298_v49, %v3064_v13  ;;  %v3060_v2 = vmul.f32 %v8255_v5, %v9484_v43  ;;  %v3061_v52 = vmul.f32 %v8255_v5, %v9487_v32  ;;  %v9598_v49 = vadd.f32 %v9300_v28, %v3161_v57  ;;  %v7845_v47 = vpop.f32.mrf.mxu0  ;;  %v11321_v57 = vld [vmem:[#allocation76_spill] sm:$0xff] }
 0x6b8   : > { %7803 = vmatpush3.bf16.msra.mxu1 %v3325_v14  ;;  %v3322_v34 = vpack.c.bf16 %v9584_v44, %v9581_v18  ;;  %v3158_v31 = vmul.f32 %v9306_v60, %v3062_v23  ;;  %v3159_v8 = vmul.f32 %v9304_v36, %v3063_v55  ;;  %v3058_v11 = vmul.f32 %v8255_v5, %v9478_v37  ;;  %v11309_v60 = vld [vmem:[#allocation51_spill] sm:$0xff]  ;;  %v11319_v14 = vld [vmem:[#allocation74_spill] sm:$0xff] }
 0x6b9   : > { %7804 = vmatprep.subr.bf16.mxu1 %v3324_v27  ;;  %v9595_v24 = vadd.f32 %v9302_v63, %v3160_v51  ;;  %v3156_v1 = vmul.f32 %v9314_v25, %v3060_v2  ;;  %v3059_v43 = vmul.f32 %v8255_v5, %v9481_v41  ;;  %v3157_v17 = vmul.f32 %v11309_v60, %v3061_v52  ;;  %v11310_v36 = vld [vmem:[#allocation55_spill] sm:$0xff]  ;;  %v11311_v41 = vld [vmem:[#allocation53_spill] sm:$0xff]  ;;  %v3876_v33 = vpop.f32.mrf.mxu0  ;;  %v8171_v52 = vld [vmem:[%s11317_s8 + $0x28] sm:$0xff]  }
 0x6ba   : > { %v9608_v63 = vadd.f32 %v9310_v9, %v3158_v31  ;;  %v9611_v28 = vadd.f32 %v9308_v29, %v3159_v8  ;;  %v3154_v25 = vmul.f32 %v11310_v36, %v3058_v11  ;;  %v3885_v26 = vadd.f32 %v7845_v47, %v11319_v14  ;;  %v8170_v2 = vld [vmem:[%s11317_s8 + $0x20] sm:$0xff]   ;;  %v8172_v31 = vld [vmem:[%s11317_s8 + $0x30] sm:$0xff]   ;;  %v8173_v8 = vld [vmem:[%s11317_s8 + $0x38] sm:$0xff]  }
 0x6bb   : > { %v3321_v32 = vpack.c.bf16 %v9598_v49, %v9595_v24  ;;  %v9618_v42 = vadd.f32 %v11311_v41, %v3156_v1  ;;  %v9621_v9 = vadd.f32 %v11312_v3, %v3157_v17  ;;  %v3155_v29 = vmul.f32 %v11313_v16, %v3059_v43  ;;  %v11323_v36 = vld [vmem:[#allocation66_spill] sm:$0xff]  ;;  %v11325_v16 = vld [vmem:[#allocation67_spill] sm:$0xff]  ;;  %v11329_v47 = vld [vmem:[#allocation61_spill] sm:$0xff] }
 0x6bc   : > { %7805 = vmatpush3.bf16.msra.mxu1 %v3324_v27  ;;  %v3320_v37 = vpack.c.bf16 %v9611_v28, %v9608_v63  ;;  %v9627_v4 = vadd.f32 %v11314_v12, %v3154_v25  ;;  %v8167_v27 = vld [vmem:[%s11317_s8 + $0x8] sm:$0xff]   ;;  %v3882_v13 = vadd.f32 %v7844_v19, %v9395_v62  ;;  %v3874_v23 = vadd.f32 %v3873_v15, %v11321_v57  ;;  %v8168_v62 = vld [vmem:[%s11317_s8 + $0x10] sm:$0xff]  }
 0x6bd   : > { %7806 = vmatprep.subr.bf16.mxu1 %v3323_v61  ;;  %v3319_v38 = vpack.c.bf16 %v9621_v9, %v9618_v42  ;;  %v9630_v5 = vadd.f32 %v11315_v53, %v3155_v29  ;;  %v11328_v15 = vld [vmem:[#allocation58_spill] sm:$0xff] }
 0x6be   : > { %v9650_v59 = vpack.c.bf16 %v3885_v26, %v3882_v13 }
 0x6bf   : > { %v3318_v0 = vpack.c.bf16 %v9630_v5, %v9627_v4 }
 0x6c0   : > { %7807 = vmatpush3.bf16.msra.mxu1 %v3323_v61  ;;  %v11320_v61 = vld [vmem:[#allocation75_spill] sm:$0xff] }
 0x6c1   : > { %7808 = vmatprep.subr.bf16.mxu1 %v3322_v34  ;;  %v3877_v51 = vadd.f32 %v3876_v33, %v11320_v61 }
 0x6c3   : > { %v9656_v55 = vpack.c.bf16 %v3877_v51, %v3874_v23 }
 0x6c4   : > { %7809 = vmatpush3.bf16.msra.mxu1 %v3322_v34  ;;  %v8169_v34 = vld [vmem:[%s11317_s8 + $0x18] sm:$0xff]   ;;  %s11348_s8 = sld [smem:[#allocation29_spill]] }
 0x6c5   : > { %7810 = vmatprep.subr.bf16.mxu1 %v3321_v32 }
 0x6c8   : > { %7811 = vmatpush3.bf16.msra.mxu1 %v3321_v32  ;;  %v11322_v32 = vld [vmem:[#allocation63_spill] sm:$0xff] }
 0x6c9   : > { %7812 = vmatprep.subr.bf16.mxu1 %v3320_v37 }
 0x6cc   : > { %7813 = vmatpush3.bf16.msra.mxu1 %v3320_v37  ;;  %v11324_v37 = vld [vmem:[#allocation62_spill] sm:$0xff] }
 0x6cd   : > { %7814 = vmatprep.subr.bf16.mxu1 %v3319_v38 }
 0x6d0   : > { %7815 = vmatpush3.bf16.msra.mxu1 %v3319_v38 }
 0x6d1   : > { %7816 = vmatprep.subr.bf16.mxu1 %v3318_v0 }
 0x6d4   : > { %7817 = vmatpush3.bf16.msra.mxu1 %v3318_v0 }
 0x6d5   : > { %7854 = vmatprep.subr.bf16.mxu1 %v11316_v22 }
 0x6d7   : > { %7819 = vmatmul.mubr.bf16.vlgmr.msra.gmra.mxu1 %v8159_v40 }
 0x6d8   : > { %7822 = vmatprep.mubr.bf16.mxu1 %v8160_v39  ;;  %7855 = vmatpush3.bf16.xpose.msra.mxu1 %v11316_v22 }
 0x6d9   : > { %7856 = vmatprep.subr.bf16.mxu1 %v11318_v20 }
 0x6df   : > { %7823 = vmatmul.mubr.bf16.gmra.mxu1 %v8161_v45 }
 0x6e0   : > { %7826 = vmatprep.mubr.bf16.mxu1 %v8162_v54  ;;  %7857 = vmatpush3.bf16.xpose.msra.mxu1 %v11318_v20  ;;  %v11326_v20 = vld [vmem:[#allocation59_spill] sm:$0xff] }
 0x6e1   : > { %7882 = vmatprep.subr.bf16.mxu1 %v11307_v21 }
 0x6e7   : > { %7827 = vmatmul.mubr.bf16.gmra.mxu1 %v8163_v10 }
 0x6e8   : > { %7830 = vmatprep.mubr.bf16.mxu1 %v8164_v48  ;;  %v11327_v48 = vld [vmem:[#allocation60_spill] sm:$0xff] }
 0x6ef   : > { %7831 = vmatmul.mubr.bf16.gmra.mxu1 %v8165_v50 }
 0x6f0   : > { %7858 = vmatprep.mubr.bf16.mxu1 %v8166_v58 }
 0x6f7   : > { %7859 = vmatmul.mubr.bf16.vlgmr.msra.gmra.mxu1 %v8167_v27 }
 0x6f8   : > { %7883 = vmatpush3.bf16.msra.mxu1 %v9650_v59  ;;  %7862 = vmatprep.mubr.bf16.mxu1 %v8168_v62 }
 0x6f9   : > { %7884 = vmatprep.subr.bf16.mxu1 %v11307_v21 }
 0x6fc   : > { %7885 = vmatpush3.bf16.msra.mxu1 %v9656_v55 }
 0x6fd   : > { %7898 = vmatprep.subr.bf16.mxu1 %v11307_v21 }
 0x6ff   : > { %7863 = vmatmul.mubr.bf16.gmra.mxu1 %v8169_v34 }
 0x700   : > { %7866 = vmatprep.mubr.bf16.mxu1 %v8170_v2 }
 0x707   : > { %7867 = vmatmul.mubr.bf16.gmra.mxu1 %v8171_v52 }
 0x708   : > { %7870 = vmatprep.mubr.bf16.mxu1 %v8172_v31  ;;  %v11330_v31 = vld [vmem:[#allocation65_spill] sm:$0xff] }
 0x70f   : > { %7871 = vmatmul.mubr.bf16.gmra.mxu1 %v8173_v8 }
 0x710   : > { %7886 = vmatprep.mubr.msk.bf16.mxu1 %vm8470_vm0, %v11307_v21 }
 0x797   : > { %v7820_v1 = vpop.f32.mrf.mxu1 }
 0x798   : > { %v3625_v29 = vadd.f32 %v7820_v1, %v11325_v16 }
 0x799   : > { %v3616_v11 = vpop.f32.mrf.mxu1 }
 0x79a   : > { %v3617_v60 = vadd.f32 %v3616_v11, %v11322_v32  ;;  %v3681_v22 = vmul.f32 0.17677669, %v3625_v29  ;;  %v11331_v11 = vld [vmem:[#allocation68_spill] sm:$0xff] }
 0x79b   : > { %v7821_v43 = vpop.f32.mrf.mxu1  ;;  %v11332_v32 = vld [vmem:[#allocation64_spill] sm:$0xff] }
 0x79c   : > { %v3628_v25 = vadd.f32 %v7821_v43, %v11323_v36  ;;  %v3679_v38 = vmul.f32 0.17677669, %v3617_v60 }
 0x79d   : > { %v3619_v17 = vpop.f32.mrf.mxu1 }
 0x79e   : > { %v3620_v41 = vadd.f32 %v3619_v17, %v11324_v37  ;;  %v3682_v0 = vmul.f32 0.17677669, %v3628_v25  ;;  %v11333_v17 = vld [vmem:[#allocation69_spill] sm:$0xff] }
 0x79f   : > { %v7824_v3 = vpop.f32.mrf.mxu1 }
 0x7a0   : > { %v3680_v12 = vmul.f32 0.17677669, %v3620_v41  ;;  %v4146_v10 = vpack.c.bf16 %v3682_v0, %v3681_v22  ;;  %v3641_v14 = vadd.f32 %v7824_v3, %v11329_v47  ;;  %v11334_v41 = vld [vmem:[#allocation70_spill] sm:$0xff]  ;;  %v11336_v0 = vld [vmem:[#allocation72_spill] sm:$0xff] }
 0x7a1   : > { %v3632_v53 = vpop.f32.mrf.mxu1 }
 0x7a2   : > { %v4145_v40 = vpack.c.bf16 %v3680_v12, %v3679_v38  ;;  %v3633_v45 = vadd.f32 %v3632_v53, %v11326_v20  ;;  %v3685_v57 = vmul.f32 0.17677669, %v3641_v14  ;;  %v11335_v38 = vld [vmem:[#allocation71_spill] sm:$0xff]  ;;  %v11337_v20 = vld [vmem:[#allocation73_spill] sm:$0xff]  ;;  %v3763_v14 = vpop.permute.xlu1 %3762 }
 0x7a3   : > { %v7825_v39 = vpop.f32.mrf.mxu1 }
 0x7a4   : > { %4169 = vxpose.xlu1.c.b16.start [1/2] (short) (narrow) %v4145_v40, 16  ;;  %v3644_v19 = vadd.f32 %v7825_v39, %v11327_v48  ;;  %v3683_v26 = vmul.f32 0.17677669, %v3633_v45 }
 0x7a5   : > { %v3635_v54 = vpop.f32.mrf.mxu1 }
 0x7a6   : > { %v3636_v50 = vadd.f32 %v3635_v54, %v11328_v15  ;;  %v3686_v13 = vmul.f32 0.17677669, %v3644_v19 }
 0x7a7   : > { %v7828_v58 = vpop.f32.mrf.mxu1 }
 0x7a8   : > { %v3684_v33 = vmul.f32 0.17677669, %v3636_v50  ;;  %4170 = vxpose.xlu1.c.b16.end [2/2] (short) (narrow) %v4146_v10, 16  ;;  %v4148_v62 = vpack.c.bf16 %v3686_v13, %v3685_v57  ;;  %v3657_v45 = vadd.f32 %v7828_v58, %v11337_v20  ;;  %v7848_v50 = vpop.f32.mrf.mxu0  ;;  %v3753_v13 = vpop.permute.xlu1 %3752 }
 0x7a9   : > { %v3648_v27 = vpop.f32.mrf.mxu1 }
 0x7aa   : > { %v4147_v61 = vpack.c.bf16 %v3684_v33, %v3683_v26  ;;  %v3649_v12 = vadd.f32 %v3648_v27, %v11335_v38  ;;  %v3689_v19 = vmul.f32 0.17677669, %v3657_v45  ;;  %v3889_v47 = vpop.f32.mrf.mxu0  ;;  %v3758_v33 = vpop.permute.xlu0 %3757 }
 0x7ab   : > { %v7829_v51 = vpop.f32.mrf.mxu1 }
 0x7ac   : > { %4229 = vxpose.xlu0.c.b16.start [1/2] (short) (narrow) %v4147_v61, 16  ;;  %v3660_v40 = vadd.f32 %v7829_v51, %v11336_v0  ;;  %v3687_v54 = vmul.f32 0.17677669, %v3649_v12  ;;  %v7849_v26 = vpop.f32.mrf.mxu0  ;;  %v3743_v57 = vpop.permute.xlu1 %3742 }
 0x7ad   : > { %v3651_v23 = vpop.f32.mrf.mxu1 }
 0x7ae   : > { %v3652_v3 = vadd.f32 %v3651_v23, %v11334_v41  ;;  %v3690_v10 = vmul.f32 0.17677669, %v3660_v40  ;;  %v3892_v27 = vpop.f32.mrf.mxu0  ;;  %v3748_v51 = vpop.permute.xlu0 %3747  ;;  %v3901_v23 = vadd.f32 %v7849_v26, %v3753_v13 }
 0x7af   : > { %v7832_v34 = vpop.f32.mrf.mxu1 }
 0x7b0   : > { %4230 = vxpose.xlu0.c.b16.end [2/2] (short) (narrow) %v4148_v62, 16  ;;  %v3673_v36 = vadd.f32 %v7832_v34, %v11333_v17  ;;  %v3688_v39 = vmul.f32 0.17677669, %v3652_v3  ;;  %v4150_v15 = vpack.c.bf16 %v3690_v10, %v3689_v19  ;;  %v7852_v61 = vpop.f32.mrf.mxu0  ;;  %v3898_v62 = vadd.f32 %v7848_v50, %v3748_v51  ;;  %v11339_v17 = vld [vmem:[#allocation78_spill] sm:$0xff] }
 0x7b1   : > { %v3664_v2 = vpop.f32.mrf.mxu1 }
 0x7b2   : > { %v3665_v8 = vadd.f32 %v3664_v2, %v11330_v31  ;;  %v3693_v53 = vmul.f32 0.17677669, %v3673_v36  ;;  %v4149_v48 = vpack.c.bf16 %v3688_v39, %v3687_v54  ;;  %v3905_v58 = vpop.f32.mrf.mxu0  ;;  %v9684_v34 = vpack.c.bf16 %v3901_v23, %v3898_v62  ;;  %v3738_v31 = vpop.permute.xlu0 %3737 }
 0x7b3   : > { %v7833_v52 = vpop.f32.mrf.mxu1  ;;  %v3893_v2 = vadd.f32 %v3892_v27, %v3743_v57  ;;  %v3914_v36 = vadd.f32 %v7852_v61, %v11339_v17  ;;  %v3906_v3 = vadd.f32 %v3905_v58, %v3758_v33 }
 0x7b4   : > { %v3676_v43 = vadd.f32 %v7833_v52, %v11331_v11  ;;  %v3691_v25 = vmul.f32 0.17677669, %v3665_v8  ;;  %v7853_v8 = vpop.f32.mrf.mxu0 }
 0x7b5   : > { %v3667_v1 = vpop.f32.mrf.mxu1 }
 0x7b6   : > { %v3668_v60 = vadd.f32 %v3667_v1, %v11332_v32  ;;  %v3694_v16 = vmul.f32 0.17677669, %v3676_v43  ;;  %v3890_v1 = vadd.f32 %v3889_v47, %v3738_v31  ;;  %v11338_v43 = vld [vmem:[#allocation77_spill] sm:$0xff] }
 0x7b7   : > { %v3917_v32 = vadd.f32 %v7853_v8, %v11338_v43  ;;  %v9708_v12 = vpop.f32.mrf.mxu1 }
 0x7b8   : > { %v3692_v37 = vmul.f32 0.17677669, %v3668_v60  ;;  %v4152_v22 = vpack.c.bf16 %v3694_v16, %v3693_v53  ;;  %v9691_v11 = vpack.c.bf16 %v3893_v2, %v3890_v1  ;;  %v3908_v60 = vpop.f32.mrf.mxu0 }
 0x7b9   : > { %v9710_v53 = vpop.f32.mrf.mxu1 }
 0x7ba   : > { %v4151_v29 = vpack.c.bf16 %v3692_v37, %v3691_v25  ;;  %v9696_v25 = vpack.c.bf16 %v3917_v32, %v3914_v36  ;;  %v3909_v37 = vadd.f32 %v3908_v60, %v3763_v14  ;;  %v7334_v14 = vld [vmem:[%s1137_s28] sm:$0xff]   ;;  %s11343_s28 = sld [smem:[#allocation22_spill]] }
 0x7bb   : > { %v9712_v0 = vpop.f32.mrf.mxu1  ;;  %v7335_v13 = vunpack.c.l.bf16 %v7334_v14  ;;  %v7336_v58 = vunpack.c.h.bf16 %v7334_v14 }
 0x7bc   : > { %4349 = vxpose.xlu0.c.b16.start [1/2] (short) (narrow) %v4151_v29, 16  ;;  %v9703_v16 = vpack.c.bf16 %v3909_v37, %v3906_v3 }
 0x7bd   : > { %v9714_v40 = vpop.f32.mrf.mxu1 }
 0x7c0   : > { %4350 = vxpose.xlu0.c.b16.end [2/2] (short) (narrow) %v4152_v22, 16 }
 0x7c4   : > { %4289 = vxpose.xlu0.c.b16.start [1/2] (short) (narrow) %v4149_v48, 16 }
 0x7c8   : > { %4290 = vxpose.xlu0.c.b16.end [2/2] (short) (narrow) %v4150_v15, 16 }
 0x806   : > { %v4177_v52 = vpop.trf.xlu1 }
 0x807   : > { %7879 = vmatmul.mubr.msk.bf16.vlgmr.msra.gmra.mxu0 %vm2066_vm1, %v4177_v52 }
 0x808   : > { %7891 = vmatpush3.bf16.msra.mxu0 %v9684_v34  ;;  %7894 = vmatprep.mubr.msk.bf16.mxu0 %vm8470_vm0, %v11307_v21 }
 0x809   : > { %7892 = vmatprep.subr.bf16.mxu0 %v11307_v21 }
 0x80c   : > { %7893 = vmatpush3.bf16.msra.mxu0 %v9691_v11 }
 0x80e   : > { %v4237_v41 = vpop.trf.xlu0 }
 0x80f   : > { %7887 = vmatmul.mubr.msk.bf16.vlgmr.msra.gmra.mxu1 %vm2066_vm1, %v4237_v41 }
 0x810   : > { %7899 = vmatpush3.bf16.msra.mxu1 %v9696_v25  ;;  %7902 = vmatprep.mubr.msk.bf16.mxu1 %vm8470_vm0, %v11307_v21 }
 0x811   : > { %7900 = vmatprep.subr.bf16.mxu1 %v11307_v21  ;;  %v9716_v21 = vpop.f32.mrf.mxu1 }
 0x813   : > { %v9718_v39 = vpop.f32.mrf.mxu1 }
 0x814   : > { %7901 = vmatpush3.bf16.msra.mxu1 %v9703_v16 }
 0x815   : > { %v9720_v22 = vpop.f32.mrf.mxu1 }
 0x817   : > { %v9722_v20 = vpop.f32.mrf.mxu1 }
 0x819   : > { %v9724_v45 = vpop.f32.mrf.mxu1 }
 0x81b   : > { %v9726_v54 = vpop.f32.mrf.mxu1 }
 0x81d   : > { %v9728_v10 = vpop.f32.mrf.mxu1 }
 0x81e   : > { %v4357_v29 = vpop.trf.xlu0 }
 0x81f   : > { %7903 = vmatmul.mubr.msk.bf16.vlgmr.msra.gmra.mxu1 %vm2066_vm1, %v4357_v29  ;;  %v9730_v48 = vpop.f32.mrf.mxu1 }
 0x821   : > { %v9732_v19 = vpop.f32.mrf.mxu1 }
 0x823   : > { %v9734_v15 = vpop.f32.mrf.mxu1 }
 0x825   : > { %v9738_v50 = vpop.f32.mrf.mxu1 }
 0x826   : > { %v4297_v38 = vpop.trf.xlu0 }
 0x827   : > { %7895 = vmatmul.mubr.msk.bf16.vlgmr.msra.gmra.mxu0 %vm2066_vm1, %v4297_v38  ;;  %v9740_v33 = vpop.f32.mrf.mxu1 }
 0x8c7   : > { %v4222_v47 = vpop.f32.mrf.mxu0 }
 0x8c8   : > { %v4223_v23 = vadd.f32 %v7335_v13, %v4222_v47 }
 0x8c9   : > { %v7880_v26 = vpop.f32.mrf.mxu0 }
 0x8ca   : > { %v4409_v1 = vsel %vm2066_vm1, %v4223_v23, -inf }
 0x8cb   : > { %v4225_v27 = vpop.f32.mrf.mxu0 }
 0x8cc   : > { %v4226_v8 = vadd.f32 %v7336_v58, %v4225_v27 }
 0x8cd   : > { %v7881_v61 = vpop.f32.mrf.mxu0 }
 0x8ce   : > { %v4412_v60 = vsel %vm2066_vm1, %v4226_v8, -inf }
 0x8cf   : > { %v4282_v51 = vpop.f32.mrf.mxu1 }
 0x8d0   : > { %v4283_v57 = vadd.f32 %v7335_v13, %v4282_v51 }
 0x8d1   : > { %v7888_v62 = vpop.f32.mrf.mxu1 }
 0x8d2   : > { %v4415_v2 = vsel %vm2066_vm1, %v4283_v57, -inf }
 0x8d3   : > { %4416 = vmax.xlane.f32.xlu1 %v4415_v2  ;;  %v4285_v52 = vpop.f32.mrf.mxu1 }
 0x8d4   : > { %v4286_v31 = vadd.f32 %v7336_v58, %v4285_v52  ;;  %v3411_v52 = vld [vmem:[%s11341_s16 + $0x28] sm:$0xff] }
 0x8d5   : > { %v7889_v43 = vpop.f32.mrf.mxu1 }
 0x8d6   : > { %v4418_v32 = vsel %vm2066_vm1, %v4286_v31, -inf  ;;  %v3406_v43 = vld [vmem:[%s11341_s16] sm:$0xff] }
 0x8d7   : > { %4410 = vmax.xlane.f32.xlu1 %v4409_v1  ;;  %4419 = vmax.xlane.f32.xlu0 %v4418_v32  ;;  %v3410_v1 = vld [vmem:[%s11341_s16 + $0x20] sm:$0xff]  ;;  %v3413_v32 = vld [vmem:[%s11341_s16 + $0x38] sm:$0xff] }
 0x8db   : > { %4413 = vmax.xlane.f32.xlu1 %v4412_v60  ;;  %v3418_v60 = vld [vmem:[%s11341_s16 + $0x60] sm:$0xff] }
 0x8df   : > { %v4402_v17 = vpop.f32.mrf.mxu1 }
 0x8e0   : > { %v9746_v36 = vadd.f32 %v7335_v13, %v4402_v17  ;;  %v3408_v17 = vld [vmem:[%s11341_s16 + $0x10] sm:$0xff] }
 0x8e1   : > { %v7904_v37 = vpop.f32.mrf.mxu1 }
 0x8e2   : > { %v4427_v41 = vsel %vm2066_vm1, %v9746_v36, -inf  ;;  %v3419_v37 = vld [vmem:[%s11341_s16 + $0x68] sm:$0xff] }
 0x8e3   : > { %4428 = vmax.xlane.f32.xlu0 %v4427_v41  ;;  %v4405_v3 = vpop.f32.mrf.mxu1 }
 0x8e4   : > { %v9750_v29 = vadd.f32 %v7336_v58, %v4405_v3  ;;  %v3409_v3 = vld [vmem:[%s11341_s16 + $0x18] sm:$0xff] }
 0x8e5   : > { %v7905_v38 = vpop.f32.mrf.mxu1 }
 0x8e6   : > { %v4430_v41 = vsel %vm2066_vm1, %v9750_v29, -inf }
 0x8e7   : > { %v4342_v47 = vpop.f32.mrf.mxu0 }
 0x8e8   : > { %v4343_v14 = vadd.f32 %v7335_v13, %v4342_v47  ;;  %v3412_v13 = vld [vmem:[%s11341_s16 + $0x30] sm:$0xff] }
 0x8e9   : > { %v7896_v26 = vpop.f32.mrf.mxu0 }
 0x8ea   : > { %v4421_v27 = vsel %vm2066_vm1, %v4343_v14, -inf }
 0x8eb   : > { %4422 = vmax.xlane.f32.xlu0 %v4421_v27  ;;  %v4345_v61 = vpop.f32.mrf.mxu0 }
 0x8ec   : > { %v4346_v51 = vadd.f32 %v7336_v58, %v4345_v61  ;;  %v3407_v58 = vld [vmem:[%s11341_s16 + $0x8] sm:$0xff] }
 0x8ed   : > { %v7897_v62 = vpop.f32.mrf.mxu0 }
 0x8ee   : > { %v4424_v2 = vsel %vm2066_vm1, %v4346_v51, -inf }
 0x8ef   : > { %4425 = vmax.xlane.f32.xlu1 %v4424_v2 }
 0x900   : > { %3947 = vperm.xlu1 %8116, %v3411_v52  }
 0x901   : > { %3942 = vperm.xlu0 %8115, %v3410_v1  }
 0x904   : > { %3952 = vperm.xlu1 %8116, %v3412_v13  }
 0x905   : > { %3922 = vperm.xlu0 %8115, %v3406_v43  }
 0x908   : > { %3957 = vperm.xlu1 %8116, %v3413_v32  }
 0x909   : > { %3982 = vperm.xlu0 %8115, %v3418_v60  }
 0x90c   : > { %3927 = vperm.xlu1 %8116, %v3407_v58  }
 0x90d   : > { %3932 = vperm.xlu0 %8115, %v3408_v17  }
 0x910   : > { %3987 = vperm.xlu1 %8116, %v3419_v37  }
 0x934   : > { %4431 = vmax.xlane.f32.xlu1 %v4430_v41 }
 0x945   : > { %3937 = vperm.xlu1 %8116, %v3409_v3  }
 0x95c   : > { %v4417_v38 = vpop.xlane.xlu1 %4416 }
 0x95d   : > { %v4435_v47 = vsub.f32 %v4283_v57, %v4417_v38 }
 0x95f   : > { %v4445_v62 = vmul.f32 1.442695, %v4435_v47 }
 0x960   : > { %v4411_v26 = vpop.xlane.xlu1 %4410  ;;  %v4420_v27 = vpop.xlane.xlu0 %4419 }
 0x961   : > { %v4433_v61 = vsub.f32 %v4223_v23, %v4411_v26  ;;  %v4436_v52 = vsub.f32 %v4286_v31, %v4420_v27 }
 0x963   : > { %v4441_v2 = vmul.f32 1.442695, %v4433_v61  ;;  %v4447_v43 = vmul.f32 1.442695, %v4436_v52 }
 0x964   : > { %v4414_v1 = vpop.xlane.xlu1 %4413 }
 0x965   : > { %8256 = vpow2.f32 %v4441_v2  ;;  %v4434_v13 = vsub.f32 %v4226_v8, %v4414_v1 }
 0x966   : > { %8258 = vpow2.f32 %v4445_v62 }
 0x967   : > { %v4443_v32 = vmul.f32 1.442695, %v4434_v13 }
 0x969   : > { %8260 = vpow2.f32 %v4443_v32 }
 0x96a   : > { %8262 = vpow2.f32 %v4447_v43 }
 0x96c   : > { %v4429_v60 = vpop.xlane.xlu0 %4428 }
 0x96d   : > { %v4439_v17 = vsub.f32 %v9746_v36, %v4429_v60 }
 0x96f   : > { %v4453_v8 = vmul.f32 1.442695, %v4439_v17 }
 0x972   : > { %v9766_v58 = vpop.eup %8256 }
 0x973   : > { %v4457_v57 = vsel %vm2066_vm1, %v9766_v58, 0.0  ;;  %v9771_v23 = vpop.eup %8258 }
 0x974   : > { %4458 = vadd.xlane.f32.xlu0 %v4457_v57  ;;  %v4423_v31 = vpop.xlane.xlu0 %4422  ;;  %v4463_v38 = vsel %vm2066_vm1, %v9771_v23, 0.0 }
 0x975   : > { %v4437_v37 = vsub.f32 %v4343_v14, %v4423_v31 }
 0x976   : > { %v9773_v41 = vpop.eup %8260 }
 0x977   : > { %v4449_v3 = vmul.f32 1.442695, %v4437_v37  ;;  %v4460_v47 = vsel %vm2066_vm1, %v9773_v41, 0.0  ;;  %v9779_v26 = vpop.eup %8262 }
 0x978   : > { %4464 = vadd.xlane.f32.xlu0 %v4463_v38  ;;  %4461 = vadd.xlane.f32.xlu1 %v4460_v47  ;;  %v4426_v36 = vpop.xlane.xlu1 %4425  ;;  %v4466_v14 = vsel %vm2066_vm1, %v9779_v26, 0.0  ;;  %v3414_v47 = vld [vmem:[%s11341_s16 + $0x40] sm:$0xff] }
 0x979   : > { %8264 = vpow2.f32 %v4449_v3  ;;  %v4438_v27 = vsub.f32 %v4346_v51, %v4426_v36  ;;  %v3416_v36 = vld [vmem:[%s11341_s16 + $0x50] sm:$0xff] }
 0x97a   : > { %8266 = vpow2.f32 %v4453_v8 }
 0x97b   : > { %v4451_v61 = vmul.f32 1.442695, %v4438_v27  ;;  %v3438_v27 = vld [vmem:[%s11342_s6] sm:$0xff] }
 0x97c   : > { %v3948_v62 = vpop.permute.xlu1 %3947  ;;  %4467 = vadd.xlane.f32.xlu1 %v4466_v14  ;;  %v3943_v2 = vpop.permute.xlu0 %3942  ;;  %v3442_v14 = vld [vmem:[%s11342_s6 + $0x20] sm:$0xff] }
 0x97d   : > { %8268 = vpow2.f32 %v4451_v61  ;;  %v4102_v52 = vadd.f32 %v9722_v20, %v3948_v62  ;;  %v4099_v1 = vadd.f32 %v9718_v39, %v3943_v2  ;;  %v3440_v61 = vld [vmem:[%s11342_s6 + $0x10] sm:$0xff] }
 0x97e   : > { %v3444_v62 = vld [vmem:[%s11342_s6 + $0x30] sm:$0xff] }
 0x97f   : > { %v9785_v13 = vpack.c.bf16 %v4102_v52, %v4099_v1  ;;  %v3446_v52 = vld [vmem:[%s11342_s6 + $0x40] sm:$0xff] }
 0x980   : > { %v9787_v43 = vpop.permute.xlu1 %3952  ;;  %v3923_v60 = vpop.permute.xlu0 %3922 }
 0x981   : > { %7914 = vmatprep.mubr.msk.bf16.mxu1 %vm2066_vm1, %v9785_v13  ;;  %v4083_v57 = vadd.f32 %v9710_v53, %v3923_v60  ;;  %v3421_v53 = vld [vmem:[%s11341_s16 + $0x78] sm:$0xff] }
 0x984   : > { %v9791_v51 = vpop.permute.xlu1 %3957 }
 0x986   : > { %v9793_v32 = vpop.eup %8264 }
 0x987   : > { %v4469_v17 = vsel %vm2066_vm1, %v9793_v32, 0.0  ;;  %v9797_v20 = vpop.eup %8266 }
 0x988   : > { %v3928_v39 = vpop.permute.xlu1 %3927  ;;  %4470 = vadd.xlane.f32.xlu0 %v4469_v17  ;;  %v4475_v38 = vsel %vm2066_vm1, %v9797_v20, 0.0  ;;  %v3448_v17 = vld [vmem:[%s11342_s6 + $0x50] sm:$0xff] }
 0x989   : > { %v4086_v31 = vadd.f32 %v9714_v40, %v3928_v39  ;;  %v3420_v40 = vld [vmem:[%s11341_s16 + $0x70] sm:$0xff] }
 0x98a   : > { %v9801_v37 = vpop.eup %8268 }
 0x98b   : > { %v9803_v8 = vpack.c.bf16 %v4086_v31, %v4083_v57  ;;  %v4472_v3 = vsel %vm2066_vm1, %v9801_v37, 0.0  ;;  %v3450_v57 = vld [vmem:[%s11342_s6 + $0x60] sm:$0xff]  ;;  %v3452_v31 = vld [vmem:[%s11342_s6 + $0x70] sm:$0xff] }
 0x98c   : > { %4473 = vadd.xlane.f32.xlu1 %v4472_v3  ;;  %4476 = vadd.xlane.f32.xlu0 %v4475_v38  ;;  %v9819_v2 = vpop.permute.xlu1 %3987  ;;  %v5064_v3 = vld [vmem:[%s11343_s28 + $0x70] sm:$0xff] }
 0x98d   : > { %7908 = vmatprep.mubr.msk.bf16.mxu0 %vm2066_vm1, %v9803_v8 }
 0x99d   : > { %3997 = vperm.xlu1 %8116, %v3421_v53  }
 0x9a2   : > { %3992 = vperm.xlu0 %8115, %v3420_v40   ;;  %v5062_v40 = vld [vmem:[%s11343_s28 + $0x60] sm:$0xff] }
 0x9a6   : > { %3962 = vperm.xlu0 %8115, %v3414_v47   ;;  %v5078_v47 = vld [vmem:[%s11344_s3 + $0x60] sm:$0xff] }
 0x9aa   : > { %3972 = vperm.xlu0 %8115, %v3416_v36   ;;  %v5060_v36 = vld [vmem:[%s11343_s28 + $0x50] sm:$0xff] }
 0x9ae   : > { %4743 = vperm.xlu0 %8115, %v3438_v27   ;;  %v3415_v27 = vld [vmem:[%s11341_s16 + $0x48] sm:$0xff] }
 0x9b2   : > { %4753 = vperm.xlu0 %8115, %v3440_v61   ;;  %v5076_v61 = vld [vmem:[%s11344_s3 + $0x50] sm:$0xff] }
 0x9b6   : > { %4763 = vperm.xlu0 %8115, %v3442_v14   ;;  %v3417_v14 = vld [vmem:[%s11341_s16 + $0x58] sm:$0xff] }
 0x9ba   : > { %4773 = vperm.xlu0 %8115, %v3444_v62   ;;  %v5058_v62 = vld [vmem:[%s11343_s28 + $0x40] sm:$0xff] }
 0x9bd   : > { %v4432_v1 = vpop.xlane.xlu1 %4431 }
 0x9be   : > { %v4440_v60 = vsub.f32 %v9750_v29, %v4432_v1  ;;  %4783 = vperm.xlu0 %8115, %v3446_v52   ;;  %v5080_v29 = vld [vmem:[%s11344_s3 + $0x70] sm:$0xff]  ;;  %v3439_v52 = vld [vmem:[%s11342_s6 + $0x8] sm:$0xff]  ;;  %v5074_v1 = vld [vmem:[%s11344_s3 + $0x40] sm:$0xff] }
 0x9c0   : > { %v4455_v39 = vmul.f32 1.442695, %v4440_v60  ;;  %v3441_v60 = vld [vmem:[%s11342_s6 + $0x18] sm:$0xff] }
 0x9c2   : > { %8270 = vpow2.f32 %v4455_v39  ;;  %4793 = vperm.xlu0 %8115, %v3448_v17   ;;  %v5056_v17 = vld [vmem:[%s11343_s28 + $0x30] sm:$0xff]  ;;  %v3443_v39 = vld [vmem:[%s11342_s6 + $0x28] sm:$0xff] }
 0x9c6   : > { %4803 = vperm.xlu0 %8115, %v3450_v57   ;;  %v5072_v57 = vld [vmem:[%s11344_s3 + $0x30] sm:$0xff] }
 0x9ca   : > { %4813 = vperm.xlu0 %8115, %v3452_v31   ;;  %v9845_v31 = vpop.permute.xlu0 %3982 }
 0x9ce   : > { %5280 = vperm.xlu0 %8115, %v5064_v3   ;;  %v3445_v3 = vld [vmem:[%s11342_s6 + $0x38] sm:$0xff] }
 0x9cf   : > { %v9827_v38 = vpop.eup %8270 }
 0x9d0   : > { %v4478_v53 = vsel %vm2066_vm1, %v9827_v38, 0.0 }
 0x9d1   : > { %4479 = vadd.xlane.f32.xlu1 %v4478_v53  ;;  %v3447_v53 = vld [vmem:[%s11342_s6 + $0x48] sm:$0xff] }
 0x9d2   : > { %5376 = vperm.xlu0 %8115, %v5080_v29   ;;  %v5054_v29 = vld [vmem:[%s11343_s28 + $0x20] sm:$0xff] }
 0x9d6   : > { %5270 = vperm.xlu0 %8115, %v5062_v40   ;;  %v5070_v40 = vld [vmem:[%s11344_s3 + $0x20] sm:$0xff] }
 0x9da   : > { %5366 = vperm.xlu0 %8115, %v5078_v47   ;;  %v3933_v47 = vpop.permute.xlu0 %3932 }
 0x9de   : > { %5260 = vperm.xlu0 %8115, %v5060_v36   ;;  %v3449_v36 = vld [vmem:[%s11342_s6 + $0x58] sm:$0xff] }
 0x9e2   : > { %3967 = vperm.xlu1 %8116, %v3415_v27   ;;  %5356 = vperm.xlu0 %8115, %v5076_v61   ;;  %v5052_v27 = vld [vmem:[%s11343_s28 + $0x10] sm:$0xff]  ;;  %v3938_v61 = vpop.permute.xlu1 %3937 }
 0x9e6   : > { %3977 = vperm.xlu1 %8116, %v3417_v14   ;;  %5250 = vperm.xlu0 %8115, %v5058_v62   ;;  %v3451_v62 = vld [vmem:[%s11342_s6 + $0x68] sm:$0xff] }
 0x9ea   : > { %4748 = vperm.xlu1 %8116, %v3439_v52   ;;  %5346 = vperm.xlu0 %8115, %v5074_v1   ;;  %v5068_v52 = vld [vmem:[%s11344_s3 + $0x10] sm:$0xff] }
 0x9ee   : > { %4758 = vperm.xlu1 %8116, %v3441_v60   ;;  %5240 = vperm.xlu0 %8115, %v5056_v17   ;;  %v3453_v17 = vld [vmem:[%s11342_s6 + $0x78] sm:$0xff]  ;;  %s11346_s6 = sld [smem:[#allocation27_spill]] }
 0x9f2   : > { %4768 = vperm.xlu1 %8116, %v3443_v39   ;;  %5336 = vperm.xlu0 %8115, %v5072_v57   ;;  %v5050_v39 = vld [vmem:[%s11343_s28] sm:$0xff] }
 0x9f6   : > { %4778 = vperm.xlu1 %8116, %v3445_v3   ;;  %5230 = vperm.xlu0 %8115, %v5054_v29   ;;  %v5065_v3 = vld [vmem:[%s11343_s28 + $0x78] sm:$0xff]  ;;  %v5066_v29 = vld [vmem:[%s11344_s3] sm:$0xff] }
 0x9fa   : > { %4788 = vperm.xlu1 %8116, %v3447_v53   ;;  %5326 = vperm.xlu0 %8115, %v5070_v40   ;;  %v5081_v53 = vld [vmem:[%s11344_s3 + $0x78] sm:$0xff]  ;;  %v5470_v40 = vld [vmem:[%s11345_s7 + $0xf0] sm:$0xff] }
 0x9fd   : > { %v4459_v14 = vpop.xlane.xlu0 %4458 }
 0x9fe   : > { %4798 = vperm.xlu1 %8116, %v3449_v36   ;;  %5220 = vperm.xlu0 %8115, %v5052_v27   ;;  %8272 = vrcp.f32 %v4459_v14  ;;  %v5063_v14 = vld [vmem:[%s11343_s28 + $0x68] sm:$0xff] }
 0xa01   : > { %v4462_v1 = vpop.xlane.xlu1 %4461  ;;  %v4465_v60 = vpop.xlane.xlu0 %4464 }
 0xa02   : > { %8274 = vrcp.f32 %v4462_v1  ;;  %4808 = vperm.xlu1 %8116, %v3451_v62   ;;  %5316 = vperm.xlu0 %8115, %v5068_v52   ;;  %v5454_v62 = vld [vmem:[%s11345_s7 + $0x70] sm:$0xff] }
 0xa03   : > { %8276 = vrcp.f32 %v4465_v60 }
 0xa05   : > { %v4468_v57 = vpop.xlane.xlu1 %4467 }
 0xa06   : > { %8278 = vrcp.f32 %v4468_v57  ;;  %4818 = vperm.xlu1 %8116, %v3453_v17   ;;  %5210 = vperm.xlu0 %8115, %v5050_v39  }
 0xa0a   : > { %5285 = vperm.xlu1 %8116, %v5065_v3   ;;  %5306 = vperm.xlu0 %8115, %v5066_v29   ;;  %v5079_v3 = vld [vmem:[%s11344_s3 + $0x68] sm:$0xff]  ;;  %v5468_v29 = vld [vmem:[%s11345_s7 + $0xe0] sm:$0xff] }
 0xa0b   : > { %v8273_v36 = vpop.eup %8272 }
 0xa0c   : > { %v4489_v52 = vmul.f32 %v8273_v36, %v9766_v58  ;;  %v4094_v36 = vadd.f32 %v9712_v0, %v3938_v61  ;;  %v4110_v0 = vadd.f32 %v9720_v22, %v9791_v51  ;;  %v4134_v61 = vadd.f32 %v9740_v33, %v9819_v2  ;;  %v5059_v33 = vld [vmem:[%s11343_s28 + $0x48] sm:$0xff]  ;;  %v5450_v2 = vld [vmem:[%s11345_s7 + $0x50] sm:$0xff] }
 0xa0d   : > { %v4131_v22 = vadd.f32 %v9734_v15, %v9845_v31  ;;  %v5464_v31 = vld [vmem:[%s11345_s7 + $0xc0] sm:$0xff] }
 0xa0e   : > { %5381 = vperm.xlu1 %8116, %v5081_v53   ;;  %5624 = vperm.xlu0 %8115, %v5470_v40  }
 0xa0f   : > { %v8275_v27 = vpop.eup %8274 }
 0xa10   : > { %v4490_v1 = vmul.f32 %v8275_v27, %v9773_v41  ;;  %v8277_v60 = vpop.eup %8276 }
 0xa11   : > { %v4471_v17 = vpop.xlane.xlu0 %4470  ;;  %v4491_v40 = vmul.f32 %v8277_v60, %v9771_v23  ;;  %v5466_v60 = vld [vmem:[%s11345_s7 + $0xd0] sm:$0xff] }
 0xa12   : > { %5275 = vperm.xlu1 %8116, %v5063_v14   ;;  %5544 = vperm.xlu0 %8115, %v5454_v62   ;;  %v4497_v39 = vpack.c.bf16 %v4490_v1, %v4489_v52  ;;  %8280 = vrcp.f32 %v4471_v17  ;;  %v5061_v14 = vld [vmem:[%s11343_s28 + $0x58] sm:$0xff]  ;;  %v5452_v62 = vld [vmem:[%s11345_s7 + $0x60] sm:$0xff]  ;;  %v4091_v52 = vadd.f32 %v9708_v12, %v3933_v47  ;;  %v4107_v12 = vadd.f32 %v9716_v21, %v9787_v43  ;;  %v5075_v43 = vld [vmem:[%s11344_s3 + $0x48] sm:$0xff] }
 0xa13   : > { %v8279_v57 = vpop.eup %8278  ;;  %v5077_v1 = vld [vmem:[%s11344_s3 + $0x58] sm:$0xff]  ;;  %v9893_v47 = vpack.c.bf16 %v4134_v61, %v4131_v22 }
 0xa14   : > { %8030 = vmatprep.subr.msk.bf16.mxu0 %vm2066_vm1, %v4497_v39  ;;  %v4508_v53 = vsel %vm2066_vm1, %v4497_v39, 0  ;;  %v4492_v58 = vmul.f32 %v8279_v57, %v9779_v26  ;;  %v9879_v26 = vpack.c.bf16 %v4094_v36, %v4091_v52  ;;  %v9891_v51 = vpack.c.bf16 %v4110_v0, %v4107_v12  ;;  %v5460_v36 = vld [vmem:[%s11345_s7 + $0xa0] sm:$0xff]  ;;  %v5458_v52 = vld [vmem:[%s11345_s7 + $0x90] sm:$0xff]  ;;  %v5471_v22 = vld [vmem:[%s11345_s7 + $0xf8] sm:$0xff] }
 0xa15   : > { %v4474_v41 = vpop.xlane.xlu1 %4473  ;;  %7907 = vmatpush3.bf16.xpose.msra.mxu0 %v4508_v53  ;;  %v5442_v0 = vld [vmem:[%s11345_s7 + $0x10] sm:$0xff]  ;;  %v4477_v61 = vpop.xlane.xlu0 %4476 }
 0xa16   : > { %8282 = vrcp.f32 %v4474_v41  ;;  %5371 = vperm.xlu1 %8116, %v5079_v3   ;;  %5614 = vperm.xlu0 %8115, %v5468_v29   ;;  %v4498_v27 = vpack.c.bf16 %v4492_v58, %v4491_v40  ;;  %v5057_v3 = vld [vmem:[%s11343_s28 + $0x38] sm:$0xff]  ;;  %v5448_v29 = vld [vmem:[%s11345_s7 + $0x40] sm:$0xff]  ;;  %v5055_v40 = vld [vmem:[%s11343_s28 + $0x28] sm:$0xff] }
 0xa17   : > { %v5446_v58 = vld [vmem:[%s11345_s7 + $0x30] sm:$0xff]  ;;  %v5071_v41 = vld [vmem:[%s11344_s3 + $0x28] sm:$0xff]  ;;  %8284 = vrcp.f32 %v4477_v61 }
 0xa18   : > { %8031 = vmatprep.subr.msk.bf16.mxu1 %vm2066_vm1, %v4498_v27  ;;  %v4566_v23 = vsel %vm2066_vm1, %v4498_v27, 0  ;;  %v5053_v27 = vld [vmem:[%s11343_s28 + $0x18] sm:$0xff] }
 0xa19   : > { %7913 = vmatpush3.bf16.xpose.msra.mxu1 %v4566_v23  ;;  %v5051_v23 = vld [vmem:[%s11343_s28 + $0x8] sm:$0xff] }
 0xa1a   : > { %5265 = vperm.xlu1 %8116, %v5061_v14   ;;  %5534 = vperm.xlu0 %8115, %v5452_v62   ;;  %v5444_v14 = vld [vmem:[%s11345_s7 + $0x20] sm:$0xff]  ;;  %v5069_v62 = vld [vmem:[%s11344_s3 + $0x18] sm:$0xff] }
 0xa1c   : > { %7909 = vmatmul.mubr.msk.bf16.vlgmr.msra.gmra.mxu0 %vm2066_vm1, %v9879_v26 }
 0xa1d   : > { %v9923_v12 = vpop.permute.xlu0 %3992 }
 0xa1e   : > { %5361 = vperm.xlu1 %8116, %v5077_v1   ;;  %5604 = vperm.xlu0 %8115, %v5466_v60   ;;  %v5067_v1 = vld [vmem:[%s11344_s3 + $0x8] sm:$0xff]  ;;  %v5456_v60 = vld [vmem:[%s11345_s7 + $0x80] sm:$0xff] }
 0xa1f   : > { %v8281_v21 = vpop.eup %8280 }
 0xa20   : > { %7915 = vmatmul.mubr.msk.bf16.vlgmr.msra.gmra.mxu1 %vm2066_vm1, %v9891_v51  ;;  %v4493_v17 = vmul.f32 %v8281_v21, %v9793_v32  ;;  %v5073_v32 = vld [vmem:[%s11344_s3 + $0x38] sm:$0xff]  ;;  %s11347_s3 = sld [smem:[#allocation28_spill]] }
 0xa21   : > { %7926 = vmatprep.mubr.msk.bf16.mxu1 %vm2066_vm1, %v9893_v47  ;;  %v5455_v21 = vld [vmem:[%s11345_s7 + $0x78] sm:$0xff] }
 0xa22   : > { %5255 = vperm.xlu1 %8116, %v5059_v33   ;;  %5524 = vperm.xlu0 %8115, %v5450_v2   ;;  %v5440_v33 = vld [vmem:[%s11345_s7] sm:$0xff]  ;;  %v3963_v2 = vpop.permute.xlu0 %3962 }
 0xa23   : > { %v8283_v15 = vpop.eup %8282 }
 0xa24   : > { %v4494_v39 = vmul.f32 %v8283_v15, %v9801_v37  ;;  %v5462_v37 = vld [vmem:[%s11345_s7 + $0xb0] sm:$0xff]  ;;  %v6209_v15 = vld [vmem:[%s11346_s6] sm:$0xff] }
 0xa26   : > { %5351 = vperm.xlu1 %8116, %v5075_v43   ;;  %5594 = vperm.xlu0 %8115, %v5464_v31   ;;  %v4499_v57 = vpack.c.bf16 %v4494_v39, %v4493_v17  ;;  %v5469_v43 = vld [vmem:[%s11345_s7 + $0xe8] sm:$0xff]  ;;  %v6211_v31 = vld [vmem:[%s11346_s6 + $0x10] sm:$0xff]  ;;  %v3973_v17 = vpop.permute.xlu0 %3972 }
 0xa27   : > { %v5453_v39 = vld [vmem:[%s11345_s7 + $0x68] sm:$0xff]  ;;  %v4123_v61 = vadd.f32 %v9724_v45, %v3973_v17  ;;  %v5463_v45 = vld [vmem:[%s11345_s7 + $0xb8] sm:$0xff] }
 0xa28   : > { %8032 = vmatprep.subr.msk.bf16.mxu0 %vm2066_vm1, %v4499_v57  ;;  %v4624_v53 = vsel %vm2066_vm1, %v4499_v57, 0  ;;  %v6213_v57 = vld [vmem:[%s11346_s6 + $0x20] sm:$0xff] }
 0xa29   : > { %7919 = vmatpush3.bf16.xpose.msra.mxu0 %v4624_v53  ;;  %v5467_v53 = vld [vmem:[%s11345_s7 + $0xd8] sm:$0xff] }
 0xa2a   : > { %5245 = vperm.xlu1 %8116, %v5057_v3   ;;  %5514 = vperm.xlu0 %8115, %v5448_v29   ;;  %v3998_v3 = vpop.permute.xlu1 %3997  ;;  %v9933_v29 = vpop.permute.xlu0 %4743 }
 0xa2e   : > { %5341 = vperm.xlu1 %8116, %v5073_v32   ;;  %5584 = vperm.xlu0 %8115, %v5462_v37   ;;  %v6215_v32 = vld [vmem:[%s11346_s6 + $0x30] sm:$0xff] }
 0xa32   : > { %5235 = vperm.xlu1 %8116, %v5055_v40   ;;  %5504 = vperm.xlu0 %8115, %v5446_v58   ;;  %v5451_v40 = vld [vmem:[%s11345_s7 + $0x58] sm:$0xff]  ;;  %v6217_v58 = vld [vmem:[%s11346_s6 + $0x40] sm:$0xff] }
 0xa36   : > { %5331 = vperm.xlu1 %8116, %v5071_v41   ;;  %5574 = vperm.xlu0 %8115, %v5460_v36   ;;  %v9939_v41 = vpop.permute.xlu0 %4753 }
 0xa3a   : > { %5225 = vperm.xlu1 %8116, %v5053_v27   ;;  %5494 = vperm.xlu0 %8115, %v5444_v14   ;;  %v4115_v27 = vadd.f32 %v9726_v54, %v3963_v2  ;;  %v5449_v54 = vld [vmem:[%s11345_s7 + $0x48] sm:$0xff] }
 0xa3e   : > { %5321 = vperm.xlu1 %8116, %v5069_v62   ;;  %5564 = vperm.xlu0 %8115, %v5458_v52   ;;  %v5465_v62 = vld [vmem:[%s11345_s7 + $0xc8] sm:$0xff]  ;;  %v6219_v52 = vld [vmem:[%s11346_s6 + $0x50] sm:$0xff] }
 0xa42   : > { %5215 = vperm.xlu1 %8116, %v5051_v23   ;;  %5484 = vperm.xlu0 %8115, %v5442_v0  }
 0xa46   : > { %5311 = vperm.xlu1 %8116, %v5067_v1   ;;  %5554 = vperm.xlu0 %8115, %v5456_v60   ;;  %v9948_v1 = vpop.permute.xlu0 %4763 }
 0xa4a   : > { %5629 = vperm.xlu1 %8116, %v5471_v22   ;;  %5474 = vperm.xlu0 %8115, %v5440_v33   ;;  %v8285_v33 = vpop.eup %8284 }
 0xa4e   : > { %5549 = vperm.xlu1 %8116, %v5455_v21   ;;  %6227 = vperm.xlu0 %8115, %v6209_v15   ;;  %v6223_v21 = vld [vmem:[%s11346_s6 + $0x70] sm:$0xff]  ;;  %v9963_v15 = vpop.permute.xlu0 %4773 }
 0xa52   : > { %5619 = vperm.xlu1 %8116, %v5469_v43   ;;  %6237 = vperm.xlu0 %8115, %v6211_v31   ;;  %v4495_v43 = vmul.f32 %v8285_v33, %v9797_v20  ;;  %v4139_v20 = vadd.f32 %v9732_v19, %v9923_v12  ;;  %v5457_v33 = vld [vmem:[%s11345_s7 + $0x88] sm:$0xff] }
 0xa56   : > { %5539 = vperm.xlu1 %8116, %v5453_v39   ;;  %6247 = vperm.xlu0 %8115, %v6213_v57   ;;  %v5447_v57 = vld [vmem:[%s11345_s7 + $0x38] sm:$0xff] }
 0xa5a   : > { %5609 = vperm.xlu1 %8116, %v5467_v53   ;;  %v4480_v37 = vpop.xlane.xlu1 %4479  ;;  %6257 = vperm.xlu0 %8115, %v6215_v32   ;;  %v6498_v53 = vld [vmem:[%s11347_s3] sm:$0xff] }
 0xa5b   : > { %8286 = vrcp.f32 %v4480_v37 }
 0xa5e   : > { %5529 = vperm.xlu1 %8116, %v5451_v40   ;;  %v3968_v36 = vpop.permute.xlu1 %3967  ;;  %6267 = vperm.xlu0 %8115, %v6217_v58   ;;  %v5461_v40 = vld [vmem:[%s11345_s7 + $0xa8] sm:$0xff]  ;;  %v6500_v58 = vld [vmem:[%s11347_s3 + $0x10] sm:$0xff] }
 0xa5f   : > { %v4118_v14 = vadd.f32 %v9730_v48, %v3968_v36  ;;  %v6221_v48 = vld [vmem:[%s11346_s6 + $0x60] sm:$0xff]  ;;  %v4142_v36 = vadd.f32 %v9738_v50, %v3998_v3  ;;  %v5459_v50 = vld [vmem:[%s11345_s7 + $0x98] sm:$0xff]  ;;  %v6504_v3 = vld [vmem:[%s11347_s3 + $0x30] sm:$0xff] }
 0xa61   : > { %v9945_v23 = vpack.c.bf16 %v4118_v14, %v4115_v27  ;;  %v9984_v14 = vpack.c.bf16 %v4142_v36, %v4139_v20  ;;  %v6516_v20 = vld [vmem:[%s11348_s8 + $0x10] sm:$0xff]  ;;  %v6518_v36 = vld [vmem:[%s11348_s8 + $0x20] sm:$0xff] }
 0xa62   : > { %5599 = vperm.xlu1 %8116, %v5465_v62   ;;  %v3978_v0 = vpop.permute.xlu1 %3977  ;;  %6277 = vperm.xlu0 %8115, %v6219_v52   ;;  %v5445_v62 = vld [vmem:[%s11345_s7 + $0x28] sm:$0xff]  ;;  %v6502_v52 = vld [vmem:[%s11347_s3 + $0x20] sm:$0xff] }
 0xa63   : > { %v4126_v60 = vadd.f32 %v9728_v10, %v3978_v0  ;;  %7920 = vmatprep.mubr.msk.bf16.mxu0 %vm2066_vm1, %v9945_v23 }
 0xa65   : > { %v9955_v22 = vpack.c.bf16 %v4126_v60, %v4123_v61  ;;  %v5443_v60 = vld [vmem:[%s11345_s7 + $0x18] sm:$0xff] }
 0xa66   : > { %5519 = vperm.xlu1 %8116, %v5449_v54   ;;  %v9957_v2 = vpop.permute.xlu1 %4748  ;;  %6287 = vperm.xlu0 %8115, %v6221_v48   ;;  %v6506_v54 = vld [vmem:[%s11347_s3 + $0x40] sm:$0xff] }
 0xa67   : > { %7921 = vmatmul.mubr.msk.bf16.vlgmr.msra.gmra.mxu0 %vm2066_vm1, %v9955_v22 }
 0xa68   : > { %v8287_v10 = vpop.eup %8286 }
 0xa69   : > { %v4496_v31 = vmul.f32 %v8287_v10, %v9827_v38  ;;  %v9977_v38 = vpop.permute.xlu0 %4783 }
 0xa6a   : > { %5589 = vperm.xlu1 %8116, %v5463_v45   ;;  %v9967_v17 = vpop.permute.xlu1 %4758  ;;  %6297 = vperm.xlu0 %8115, %v6223_v21   ;;  %v6508_v45 = vld [vmem:[%s11347_s3 + $0x50] sm:$0xff] }
 0xa6b   : > { %v4500_v39 = vpack.c.bf16 %v4496_v31, %v4495_v43  ;;  %v5441_v43 = vld [vmem:[%s11345_s7 + $0x8] sm:$0xff]  ;;  %v6510_v31 = vld [vmem:[%s11347_s3 + $0x60] sm:$0xff]  ;;  %s11374_s7 = sld [smem:[#allocation20_spill]] }
 0xa6d   : > { %8033 = vmatprep.subr.msk.bf16.mxu1 %vm2066_vm1, %v4500_v39  ;;  %v4682_v32 = vsel %vm2066_vm1, %v4500_v39, 0  ;;  %v9988_v19 = vpop.permute.xlu0 %4793 }
 0xa6e   : > { %5509 = vperm.xlu1 %8116, %v5447_v57   ;;  %v9973_v37 = vpop.permute.xlu1 %4768  ;;  %7925 = vmatpush3.bf16.xpose.msra.mxu1 %v4682_v32 }
 0xa6f   : > { %6658 = vperm.xlu0 %8115, %v6498_v53   ;;  %v6514_v53 = vld [vmem:[%s11348_s8] sm:$0xff] }
 0xa71   : > { %v9998_v61 = vpop.permute.xlu0 %4803 }
 0xa72   : > { %5579 = vperm.xlu1 %8116, %v5461_v40   ;;  %v9982_v27 = vpop.permute.xlu1 %4778 }
 0xa73   : > { %6668 = vperm.xlu0 %8115, %v6500_v58  }
 0xa75   : > { %7927 = vmatmul.mubr.msk.bf16.vlgmr.msra.gmra.mxu1 %vm2066_vm1, %v9984_v14  ;;  %v10006_v21 = vpop.permute.xlu0 %4813 }
 0xa76   : > { %5499 = vperm.xlu1 %8116, %v5445_v62   ;;  %v9992_v12 = vpop.permute.xlu1 %4788 }
 0xa77   : > { %6678 = vperm.xlu0 %8115, %v6502_v52  }
 0xa79   : > { %v10014_v57 = vpop.permute.xlu0 %5280 }
 0xa7a   : > { %5569 = vperm.xlu1 %8116, %v5459_v50   ;;  %v9996_v0 = vpop.permute.xlu1 %4798  ;;  %v6520_v50 = vld [vmem:[%s11348_s8 + $0x30] sm:$0xff] }
 0xa7b   : > { %6688 = vperm.xlu0 %8115, %v6504_v3  }
 0xa7d   : > { %v10020_v40 = vpop.permute.xlu0 %5376 }
 0xa7e   : > { %5489 = vperm.xlu1 %8116, %v5443_v60   ;;  %v10002_v48 = vpop.permute.xlu1 %4808  ;;  %v6522_v60 = vld [vmem:[%s11348_s8 + $0x40] sm:$0xff] }
 0xa7f   : > { %6698 = vperm.xlu0 %8115, %v6506_v54  }
 0xa81   : > { %v10027_v52 = vpop.permute.xlu0 %5270 }
 0xa82   : > { %5559 = vperm.xlu1 %8116, %v5457_v33   ;;  %v10008_v10 = vpop.permute.xlu1 %4818 }
 0xa83   : > { %6708 = vperm.xlu0 %8115, %v6508_v45   ;;  %v6524_v45 = vld [vmem:[%s11348_s8 + $0x50] sm:$0xff] }
 0xa85   : > { %v10033_v54 = vpop.permute.xlu0 %5366 }
 0xa86   : > { %5479 = vperm.xlu1 %8116, %v5441_v43   ;;  %v10012_v39 = vpop.permute.xlu1 %5285  ;;  %11351 = vst [vmem:[#allocation53_spill] sm:$0xff] %v10033_v54  ;;  %v6528_v54 = vld [vmem:[%s11348_s8 + $0x70] sm:$0xff] }
 0xa87   : > { %6718 = vperm.xlu0 %8115, %v6510_v31  }
 0xa89   : > { %v10040_v31 = vpop.permute.xlu0 %5260 }
 0xa8a   : > { %v10017_v32 = vpop.permute.xlu1 %5381 }
 0xa8b   : > { %11349 = vst [vmem:[#allocation51_spill] sm:$0xff] %v10017_v32  ;;  %6754 = vperm.xlu0 %8115, %v6514_v53   ;;  %v6526_v53 = vld [vmem:[%s11348_s8 + $0x60] sm:$0xff]  ;;  %v11357_v32 = vld [vmem:[#allocation42_spill] sm:$0xff] }
 0xa8e   : > { %v10022_v58 = vpop.permute.xlu1 %5275 }
 0xa8f   : > { %6764 = vperm.xlu0 %8115, %v6516_v20  }
 0xa92   : > { %v10025_v62 = vpop.permute.xlu1 %5371 }
 0xa93   : > { %11350 = vst [vmem:[#allocation55_spill] sm:$0xff] %v10025_v62  ;;  %6774 = vperm.xlu0 %8115, %v6518_v36   ;;  %v6527_v36 = vld [vmem:[%s11348_s8 + $0x68] sm:$0xff]  ;;  %v10046_v62 = vpop.permute.xlu0 %5356 }
 0xa94   : > { %11355 = vst [vmem:[#allocation56_spill] sm:$0xff] %v10046_v62  ;;  %v11364_v62 = vld [vmem:[#allocation44_spill] sm:$0xff] }
 0xa96   : > { %v10030_v3 = vpop.permute.xlu1 %5265 }
 0xa97   : > { %6784 = vperm.xlu0 %8115, %v6520_v50  }
 0xa9a   : > { %v10035_v33 = vpop.permute.xlu1 %5361 }
 0xa9b   : > { %11352 = vst [vmem:[#allocation52_spill] sm:$0xff] %v10035_v33  ;;  %6794 = vperm.xlu0 %8115, %v6522_v60   ;;  %v10054_v33 = vpop.permute.xlu0 %5250 }
 0xa9c   : > { %11359 = vst [vmem:[#allocation74_spill] sm:$0xff] %v10054_v33 }
 0xa9e   : > { %v10038_v43 = vpop.permute.xlu1 %5255 }
 0xa9f   : > { %11353 = vst [vmem:[#allocation54_spill] sm:$0xff] %v10038_v43  ;;  %6804 = vperm.xlu0 %8115, %v6524_v45   ;;  %v11360_v43 = vld [vmem:[#allocation43_spill] sm:$0xff] }
 0xaa2   : > { %v10043_v20 = vpop.permute.xlu1 %5351 }
 0xaa3   : > { %11354 = vst [vmem:[#allocation57_spill] sm:$0xff] %v10043_v20  ;;  %6814 = vperm.xlu0 %8115, %v6526_v53   ;;  %v11362_v20 = vld [vmem:[#allocation41_spill] sm:$0xff] }
 0xaa6   : > { %v10048_v50 = vpop.permute.xlu1 %5245 }
 0xaa7   : > { %11356 = vst [vmem:[#allocation49_spill] sm:$0xff] %v10048_v50  ;;  %6819 = vperm.xlu0 %8115, %v6527_v36   ;;  %v11366_v36 = vld [vmem:[#allocation46_spill] sm:$0xff] }
 0xaa9   : > { %2874 = vxpose.xlu1.c.b16.start [1/8] (narrow) %v11357_v32, 16 }
 0xaaa   : > { %v10052_v60 = vpop.permute.xlu1 %5341 }
 0xaab   : > { %11358 = vst [vmem:[#allocation50_spill] sm:$0xff] %v10052_v60  ;;  %6824 = vperm.xlu0 %8115, %v6528_v54   ;;  %v11368_v60 = vld [vmem:[#allocation47_spill] sm:$0xff]  ;;  %v11370_v54 = vld [vmem:[#allocation45_spill] sm:$0xff] }
 0xaad   : > { %2875 = vxpose.xlu1.c.b16.cont [2/8] (narrow) %v11360_v43, 16 }
 0xaae   : > { %v10057_v45 = vpop.permute.xlu1 %5235 }
 0xaaf   : > { %11361 = vst [vmem:[#allocation75_spill] sm:$0xff] %v10057_v45  ;;  %v11372_v45 = vld [vmem:[#allocation48_spill] sm:$0xff] }
 0xab1   : > { %2876 = vxpose.xlu1.c.b16.cont [3/8] (narrow) %v11362_v20, 16 }
 0xab2   : > { %v10060_v53 = vpop.permute.xlu1 %5331 }
 0xab3   : > { %11363 = vst [vmem:[#allocation76_spill] sm:$0xff] %v10060_v53 }
 0xab5   : > { %2877 = vxpose.xlu1.c.b16.cont [4/8] (narrow) %v11364_v62, 16  ;;  %v10077_v62 = vpop.permute.xlu0 %5346 }
 0xab6   : > { %v10063_v50 = vpop.permute.xlu1 %5225 }
 0xab7   : > { %11365 = vst [vmem:[#allocation63_spill] sm:$0xff] %v10063_v50  ;;  %v11375_v50 = vld [vmem:[#allocation34_spill] sm:$0xff] }
 0xab9   : > { %2878 = vxpose.xlu1.c.b16.cont [5/8] (narrow) %v11366_v36, 16 }
 0xaba   : > { %v10066_v32 = vpop.permute.xlu1 %5321 }
 0xabb   : > { %11367 = vst [vmem:[#allocation66_spill] sm:$0xff] %v10066_v32  ;;  %v6512_v32 = vld [vmem:[%s11347_s3 + $0x70] sm:$0xff] }
 0xabd   : > { %2879 = vxpose.xlu1.c.b16.cont [6/8] (narrow) %v11368_v60, 16  ;;  %v11377_v60 = vld [vmem:[#allocation33_spill] sm:$0xff] }
 0xabe   : > { %v10069_v33 = vpop.permute.xlu1 %5215 }
 0xabf   : > { %11369 = vst [vmem:[#allocation62_spill] sm:$0xff] %v10069_v33 }
 0xac1   : > { %2880 = vxpose.xlu1.c.b16.cont [7/8] (narrow) %v11370_v54, 16 }
 0xac2   : > { %v10072_v43 = vpop.permute.xlu1 %5311 }
 0xac3   : > { %11371 = vst [vmem:[#allocation67_spill] sm:$0xff] %v10072_v43  ;;  %v11379_v43 = vld [vmem:[#allocation36_spill] sm:$0xff] }
 0xac5   : > { %2881 = vxpose.xlu1.c.b16.end [8/8] (narrow) %v11372_v45, 16 }
 0xac6   : > { %v10075_v20 = vpop.permute.xlu1 %5629 }
 0xac7   : > { %11373 = vst [vmem:[#allocation59_spill] sm:$0xff] %v10075_v20  ;;  %v11381_v20 = vld [vmem:[#allocation35_spill] sm:$0xff] }
 0xac9   : > { %2849 = vxpose.xlu0.c.b16.start [1/8] (narrow) %v11375_v50, 16  ;;  %5000 = vxpose.xlu1.c.b16.start [1/8] (narrow) %v9803_v8, 32  ;;  %v11383_v8 = vld [vmem:[#allocation38_spill] sm:$0xff] }
 0xaca   : > { %v10081_v36 = vpop.permute.xlu1 %5549 }
 0xacb   : > { %11376 = vst [vmem:[#allocation60_spill] sm:$0xff] %v10081_v36 }
 0xacd   : > { %2850 = vxpose.xlu0.c.b16.cont [2/8] (narrow) %v11377_v60, 16  ;;  %5001 = vxpose.xlu1.c.b16.cont [2/8] (narrow) %v9879_v26, 32  ;;  %v8174_v26 = vld [vmem:[%s11374_s7] sm:$0xff]  }
 0xace   : > { %v10085_v54 = vpop.permute.xlu1 %5619  ;;  %7946 = vmatprep.mubr.bf16.mxu0 %v8174_v26 }
 0xacf   : > { %11378 = vst [vmem:[#allocation58_spill] sm:$0xff] %v10085_v54  ;;  %v11393_v54 = vld [vmem:[#allocation80_spill] sm:$0xff] }
 0xad1   : > { %2851 = vxpose.xlu0.c.b16.cont [3/8] (narrow) %v11379_v43, 16  ;;  %5002 = vxpose.xlu1.c.b16.cont [3/8] (narrow) %v9785_v13, 32  ;;  %v11385_v43 = vld [vmem:[#allocation37_spill] sm:$0xff] }
 0xad2   : > { %v10089_v45 = vpop.permute.xlu1 %5539 }
 0xad3   : > { %11380 = vst [vmem:[#allocation61_spill] sm:$0xff] %v10089_v45 }
 0xad5   : > { %2852 = vxpose.xlu0.c.b16.cont [4/8] (narrow) %v11381_v20, 16  ;;  %5003 = vxpose.xlu1.c.b16.cont [4/8] (narrow) %v9891_v51, 32  ;;  %v11387_v20 = vld [vmem:[#allocation40_spill] sm:$0xff] }
 0xad6   : > { %v10093_v50 = vpop.permute.xlu1 %5609 }
 0xad7   : > { %11382 = vst [vmem:[#allocation65_spill] sm:$0xff] %v10093_v50 }
 0xad9   : > { %2853 = vxpose.xlu0.c.b16.cont [5/8] (narrow) %v11383_v8, 16  ;;  %5004 = vxpose.xlu1.c.b16.cont [5/8] (narrow) %v9945_v23, 32  ;;  %v10108_v8 = vpop.permute.xlu0 %5240  ;;  %v11390_v23 = vld [vmem:[#allocation39_spill] sm:$0xff] }
 0xada   : > { %v10098_v60 = vpop.permute.xlu1 %5529  ;;  %11389 = vst [vmem:[#allocation70_spill] sm:$0xff] %v10108_v8 }
 0xadb   : > { %11384 = vst [vmem:[#allocation68_spill] sm:$0xff] %v10098_v60 }
 0xadd   : > { %2854 = vxpose.xlu0.c.b16.cont [6/8] (narrow) %v11385_v43, 16  ;;  %5005 = vxpose.xlu1.c.b16.cont [6/8] (narrow) %v9955_v22, 32  ;;  %v6210_v43 = vld [vmem:[%s11346_s6 + $0x8] sm:$0xff]  ;;  %v10115_v22 = vpop.permute.xlu0 %5336 }
 0xade   : > { %v10102_v13 = vpop.permute.xlu1 %5599  ;;  %11392 = vst [vmem:[#allocation72_spill] sm:$0xff] %v10115_v22 }
 0xadf   : > { %11386 = vst [vmem:[#allocation64_spill] sm:$0xff] %v10102_v13  ;;  %v11395_v13 = vld [vmem:[#allocation79_spill] sm:$0xff] }
 0xae1   : > { %2855 = vxpose.xlu0.c.b16.cont [7/8] (narrow) %v11387_v20, 16  ;;  %5006 = vxpose.xlu1.c.b16.cont [7/8] (narrow) %v9893_v47, 32  ;;  %v6212_v47 = vld [vmem:[%s11346_s6 + $0x18] sm:$0xff] }
 0xae2   : > { %v10106_v51 = vpop.permute.xlu1 %5519 }
 0xae3   : > { %11388 = vst [vmem:[#allocation69_spill] sm:$0xff] %v10106_v51 }
 0xae5   : > { %2856 = vxpose.xlu0.c.b16.end [8/8] (narrow) %v11390_v23, 16  ;;  %5007 = vxpose.xlu1.c.b16.end [8/8] (narrow) %v9984_v14, 32  ;;  %v6214_v14 = vld [vmem:[%s11346_s6 + $0x28] sm:$0xff] }
 0xae6   : > { %v10112_v26 = vpop.permute.xlu1 %5589 }
 0xae7   : > { %11391 = vst [vmem:[#allocation71_spill] sm:$0xff] %v10112_v26  ;;  %v6216_v26 = vld [vmem:[%s11346_s6 + $0x38] sm:$0xff] }
 0xae9   : > { %4966 = vxpose.xlu0.c.b16.start [1/8] (narrow) %v11393_v54, 32  ;;  %6232 = vperm.xlu1 %8116, %v6210_v43   ;;  %v6218_v43 = vld [vmem:[%s11346_s6 + $0x48] sm:$0xff] }
 0xaea   : > { %v10118_v20 = vpop.permute.xlu1 %5509 }
 0xaeb   : > { %11394 = vst [vmem:[#allocation73_spill] sm:$0xff] %v10118_v20 }
 0xaed   : > { %4967 = vxpose.xlu0.c.b16.cont [2/8] (narrow) %v11395_v13, 32  ;;  %6242 = vperm.xlu1 %8116, %v6212_v47   ;;  %v6220_v13 = vld [vmem:[%s11346_s6 + $0x58] sm:$0xff]  ;;  %v6222_v47 = vld [vmem:[%s11346_s6 + $0x68] sm:$0xff] }
 0xaee   : > { %v10122_v23 = vpop.permute.xlu1 %5579 }
 0xaef   : > { %11396 = vst [vmem:[#allocation77_spill] sm:$0xff] %v10122_v23 }
 0xaf1   : > { %4968 = vxpose.xlu0.c.b16.cont [3/8] (narrow) %v9656_v55, 32  ;;  %6252 = vperm.xlu1 %8116, %v6214_v14  }
 0xaf2   : > { %v10126_v50 = vpop.permute.xlu1 %5499 }
 0xaf3   : > { %11397 = vst [vmem:[#allocation78_spill] sm:$0xff] %v10126_v50 }
 0xaf5   : > { %4969 = vxpose.xlu0.c.b16.cont [4/8] (narrow) %v9650_v59, 32  ;;  %6262 = vperm.xlu1 %8116, %v6216_v26   ;;  %v6224_v26 = vld [vmem:[%s11346_s6 + $0x78] sm:$0xff]  ;;  %s11200_s6 = sshll.u32 %s8710_s22, 4 }
 0xaf6   : > { %v10130_v54 = vpop.permute.xlu1 %5569 }
 0xaf7   : > { %11398 = vst [vmem:[#allocation42_spill] sm:$0xff] %v10130_v54 }
 0xaf9   : > { %4970 = vxpose.xlu0.c.b16.cont [5/8] (narrow) %v9691_v11, 32  ;;  %6272 = vperm.xlu1 %8116, %v6218_v43   ;;  %v6499_v11 = vld [vmem:[%s11347_s3 + $0x8] sm:$0xff] }
 0xafa   : > { %v10135_v55 = vpop.permute.xlu1 %5489 }
 0xafb   : > { %11400 = vst [vmem:[#allocation43_spill] sm:$0xff] %v10135_v55 }
 0xafd   : > { %4971 = vxpose.xlu0.c.b16.cont [6/8] (narrow) %v9684_v34, 32  ;;  %6282 = vperm.xlu1 %8116, %v6220_v13   ;;  %v6501_v34 = vld [vmem:[%s11347_s3 + $0x18] sm:$0xff] }
 0xafe   : > { %v10139_v59 = vpop.permute.xlu1 %5559 }
 0xaff   : > { %11401 = vst [vmem:[#allocation41_spill] sm:$0xff] %v10139_v59  ;;  %v6515_v59 = vld [vmem:[%s11348_s8 + $0x8] sm:$0xff] }
 0xb01   : > { %4972 = vxpose.xlu0.c.b16.cont [7/8] (narrow) %v9703_v16, 32  ;;  %6292 = vperm.xlu1 %8116, %v6222_v47   ;;  %v6503_v16 = vld [vmem:[%s11347_s3 + $0x28] sm:$0xff] }
 0xb02   : > { %v10145_v14 = vpop.permute.xlu1 %5479  ;;  %v6507_v47 = vld [vmem:[%s11347_s3 + $0x48] sm:$0xff] }
 0xb03   : > { %11402 = vst [vmem:[#allocation44_spill] sm:$0xff] %v10145_v14 }
 0xb05   : > { %4973 = vxpose.xlu0.c.b16.end [8/8] (narrow) %v9696_v25, 32  ;;  %6302 = vperm.xlu1 %8116, %v6224_v26   ;;  %v6505_v25 = vld [vmem:[%s11347_s3 + $0x38] sm:$0xff] }
 0xb06   : > { %v6509_v26 = vld [vmem:[%s11347_s3 + $0x58] sm:$0xff] }
 0xb09   : > { %6663 = vperm.xlu1 %8116, %v6499_v11   ;;  %v6511_v11 = vld [vmem:[%s11347_s3 + $0x68] sm:$0xff] }
 0xb0b   : > { %v2882_v43 = vpop.trf.xlu1 }
 0xb0c   : > { %v7228_v13 = vcombine.low %v2882_v43, %v2882_v43  ;;  %v7229_v23 = vcombine.high %v2882_v43, %v2882_v43  ;;  %v6517_v43 = vld [vmem:[%s11348_s8 + $0x18] sm:$0xff] }
 0xb0d   : > { %6673 = vperm.xlu1 %8116, %v6501_v34   ;;  %v7910_v34 = vpop.f32.mrf.mxu0 }
 0xb0e   : > { %2897 = vst [vmem:[%s1147_s9] sm:$0xf] %v7228_v13  ;;  %2898 = vst [vmem:[%s1147_s9 + $0x4] sm:$0xf] %v7229_v23  ;;  %v7916_v13 = vpop.f32.mrf.mxu1  ;;  %s1157_s9 = scalar_lea.vmem %s8658_s13, %s11200_s6  ;;  %s11438_s6 = sld [smem:[#allocation26_spill]] }
 0xb0f   : > { %v4544_v23 = vpop.f32.mrf.mxu0 }
 0xb11   : > { %6683 = vperm.xlu1 %8116, %v6503_v16   ;;  %v6519_v16 = vld [vmem:[%s11348_s8 + $0x28] sm:$0xff] }
 0xb15   : > { %6693 = vperm.xlu1 %8116, %v6505_v25   ;;  %v4602_v25 = vpop.f32.mrf.mxu1 }
 0xb19   : > { %6703 = vperm.xlu1 %8116, %v6507_v47  }
 0xb1d   : > { %6713 = vperm.xlu1 %8116, %v6509_v26   ;;  %v7911_v26 = vpop.f32.mrf.mxu0 }
 0xb1f   : > { %v4547_v50 = vpop.f32.mrf.mxu0 }
 0xb21   : > { %6723 = vperm.xlu1 %8116, %v6511_v11   ;;  %v6521_v11 = vld [vmem:[%s11348_s8 + $0x38] sm:$0xff] }
 0xb25   : > { %6759 = vperm.xlu1 %8116, %v6515_v59   ;;  %v7917_v59 = vpop.f32.mrf.mxu1 }
 0xb27   : > { %v4605_v20 = vpop.f32.mrf.mxu1  ;;  %v7922_v14 = vpop.f32.mrf.mxu0 }
 0xb29   : > { %6769 = vperm.xlu1 %8116, %v6517_v43   ;;  %v6523_v43 = vld [vmem:[%s11348_s8 + $0x48] sm:$0xff]  ;;  %v4660_v33 = vpop.f32.mrf.mxu0 }
 0xb2b   : > { %v5008_v54 = vpop.trf.xlu1 }
 0xb2c   : > { %v7280_v47 = vcombine.low %v5008_v54, %v5008_v54  ;;  %v7281_v45 = vcombine.high %v5008_v54, %v5008_v54  ;;  %v6525_v54 = vld [vmem:[%s11348_s8 + $0x58] sm:$0xff] }
 0xb2d   : > { %6779 = vperm.xlu1 %8116, %v6519_v16  }
 0xb2e   : > { %5030 = vst [vmem:[%s1157_s9] sm:$0xf] %v7280_v47  ;;  %5031 = vst [vmem:[%s1157_s9 + $0x4] sm:$0xf] %v7281_v45 }
 0xb2f   : > { %v5009_v36 = vpop.trf.xlu1 }
 0xb30   : > { %v7282_v51 = vcombine.low %v5009_v36, %v5009_v36  ;;  %v7283_v60 = vcombine.high %v5009_v36, %v5009_v36 }
 0xb31   : > { %6789 = vperm.xlu1 %8116, %v6521_v11   ;;  %v7923_v11 = vpop.f32.mrf.mxu0 }
 0xb32   : > { %5032 = vst [vmem:[%s1157_s9 + $0x8] sm:$0xf] %v7282_v51  ;;  %5033 = vst [vmem:[%s1157_s9 + $0xc] sm:$0xf] %v7283_v60  ;;  %v6513_v60 = vld [vmem:[%s11347_s3 + $0x78] sm:$0xff]  ;;  %v4738_v51 = vpack.c.bf16 %v7923_v11, %v7922_v14  ;;  %v4734_v14 = vpack.c.bf16 %v7911_v26, %v7910_v34  ;;  %s11403_s9 = sld [smem:[#allocation24_spill]]  ;;  %s1142_s3 = scalar_lea.vmem %s11476_s1, %s8713_s5 }
 0xb33   : > { %v4663_v22 = vpop.f32.mrf.mxu0  ;;  %v8181_v34 = vld [vmem:[%s11374_s7 + $0x38] sm:$0xff]   ;;  %s1087_s5 = sand.u32 1, %s8422_s26   ;;  %s7328_s1 = sshll.u32 %s8681_s4, 8 }
 0xb34   : > { %v4737_v8 = vpack.c.bf16 %v4663_v22, %v4660_v33  ;;  %v8175_v33 = vld [vmem:[%s11374_s7 + $0x8] sm:$0xff]   ;;  %v8176_v22 = vld [vmem:[%s11374_s7 + $0x10] sm:$0xff]  }
 0xb35   : > { %v7928_v55 = vpop.f32.mrf.mxu1  ;;  %6799 = vperm.xlu1 %8116, %v6523_v43   ;;  %v6529_v43 = vld [vmem:[%s11348_s8 + $0x78] sm:$0xff] }
 0xb37   : > { %v4718_v16 = vpop.f32.mrf.mxu1 }
 0xb39   : > { %v7929_v47 = vpop.f32.mrf.mxu1  ;;  %6809 = vperm.xlu1 %8116, %v6525_v54  }
 0xb3a   : > { %v4740_v45 = vpack.c.bf16 %v7929_v47, %v7928_v55  ;;  %v4736_v55 = vpack.c.bf16 %v7917_v59, %v7916_v13  ;;  %v8178_v13 = vld [vmem:[%s11374_s7 + $0x20] sm:$0xff]  }
 0xb3b   : > { %v4721_v36 = vpop.f32.mrf.mxu1 }
 0xb3c   : > { %v4739_v53 = vpack.c.bf16 %v4721_v36, %v4718_v16  ;;  %7930 = vmatprep.subr.bf16.mxu0 %v4740_v45 }
 0xb3d   : > { %6728 = vperm.xlu1 %8116, %v6512_v32   ;;  %7931 = vmatpush3.bf16.msra.mxu0 %v4740_v45  ;;  %v4735_v32 = vpack.c.bf16 %v4605_v20, %v4602_v25  ;;  %v8179_v20 = vld [vmem:[%s11374_s7 + $0x28] sm:$0xff]   ;;  %v8180_v25 = vld [vmem:[%s11374_s7 + $0x30] sm:$0xff]  }
 0xb3e   : > { %7932 = vmatprep.subr.bf16.mxu0 %v4739_v53 }
 0xb41   : > { %6733 = vperm.xlu1 %8116, %v6513_v60   ;;  %7933 = vmatpush3.bf16.msra.mxu0 %v4739_v53  ;;  %v4733_v53 = vpack.c.bf16 %v4547_v50, %v4544_v23 }
 0xb42   : > { %7934 = vmatprep.subr.bf16.mxu0 %v4738_v51 }
 0xb45   : > { %6829 = vperm.xlu1 %8116, %v6529_v43   ;;  %7935 = vmatpush3.bf16.msra.mxu0 %v4738_v51 }
 0xb46   : > { %7936 = vmatprep.subr.bf16.mxu0 %v4737_v8 }
 0xb49   : > { %7937 = vmatpush3.bf16.msra.mxu0 %v4737_v8  ;;  %v8177_v8 = vld [vmem:[%s11374_s7 + $0x18] sm:$0xff]  }
 0xb4a   : > { %7938 = vmatprep.subr.bf16.mxu0 %v4736_v55 }
 0xb4d   : > { %7939 = vmatpush3.bf16.msra.mxu0 %v4736_v55 }
 0xb4e   : > { %7940 = vmatprep.subr.bf16.mxu0 %v4735_v32 }
 0xb51   : > { %7941 = vmatpush3.bf16.msra.mxu0 %v4735_v32 }
 0xb52   : > { %7942 = vmatprep.subr.bf16.mxu0 %v4734_v14 }
 0xb55   : > { %7943 = vmatpush3.bf16.msra.mxu0 %v4734_v14 }
 0xb56   : > { %7944 = vmatprep.subr.bf16.mxu0 %v4733_v53 }
 0xb59   : > { %7945 = vmatpush3.bf16.msra.mxu0 %v4733_v53 }
 0xb5c   : > { %7947 = vmatmul.mubr.bf16.vlgmr.msra.gmra.mxu0 %v8175_v33 }
 0xb5d   : > { %7950 = vmatprep.mubr.bf16.mxu0 %v8176_v22 }
 0xb64   : > { %7951 = vmatmul.mubr.bf16.gmra.mxu0 %v8177_v8 }
 0xb65   : > { %7954 = vmatprep.mubr.bf16.mxu0 %v8178_v13 }
 0xb6c   : > { %7955 = vmatmul.mubr.bf16.gmra.mxu0 %v8179_v20 }
 0xb6d   : > { %7958 = vmatprep.mubr.bf16.mxu0 %v8180_v25 }
 0xb74   : > { %7959 = vmatmul.mubr.bf16.gmra.mxu0 %v8181_v34 }
 0xc1c   : > { %v7948_v26 = vpop.f32.mrf.mxu0 }
 0xc1d   : > { %v4912_v54 = vadd.f32 %v7948_v26, %v9939_v41 }
 0xc1e   : > { %v4903_v50 = vpop.f32.mrf.mxu0 }
 0xc1f   : > { %v4904_v23 = vadd.f32 %v4903_v50, %v9933_v29  ;;  %v10183_v60 = vadd.f32 %v4912_v54, %v9618_v42 }
 0xc20   : > { %v7949_v59 = vpop.f32.mrf.mxu0 }
 0xc21   : > { %v10178_v47 = vadd.f32 %v4904_v23, %v9627_v4  ;;  %v4915_v45 = vadd.f32 %v7949_v59, %v9967_v17  ;;  %v5085_v42 = vsel %vm2291_vm2, %v10183_v60, 0.0 }
 0xc22   : > { %v4906_v16 = vpop.f32.mrf.mxu0 }
 0xc23   : > { %v4907_v36 = vadd.f32 %v4906_v16, %v9957_v2  ;;  %v5082_v29 = vsel %vm2291_vm2, %v10178_v47, 0.0  ;;  %v10191_v41 = vadd.f32 %v4915_v45, %v9621_v9 }
 0xc24   : > { %v7952_v11 = vpop.f32.mrf.mxu0 }
 0xc25   : > { %v10186_v51 = vadd.f32 %v4907_v36, %v9630_v5  ;;  %v4928_v5 = vadd.f32 %v7952_v11, %v9963_v15  ;;  %v5087_v9 = vsel %vm2291_vm2, %v10191_v41, 0.0 }
 0xc26   : > { %v4919_v43 = vpop.f32.mrf.mxu0 }
 0xc27   : > { %v5083_v4 = vsel %vm2291_vm2, %v10186_v51, 0.0  ;;  %v4920_v17 = vadd.f32 %v4919_v43, %v9948_v1  ;;  %v10207_v13 = vadd.f32 %v4928_v5, %v9595_v24 }
 0xc28   : > { %v5084_v2 = vadd.f32 %v5083_v4, %v5082_v29  ;;  %v7953_v55 = vpop.f32.mrf.mxu0 }
 0xc29   : > { %v10200_v32 = vadd.f32 %v4920_v17, %v9608_v63  ;;  %v4931_v33 = vadd.f32 %v7953_v55, %v9982_v27  ;;  %v5093_v24 = vsel %vm2291_vm2, %v10207_v13, 0.0 }
 0xc2a   : > { %v5086_v14 = vadd.f32 %v5085_v42, %v5084_v2  ;;  %v4922_v53 = vpop.f32.mrf.mxu0 }
 0xc2b   : > { %v4923_v22 = vadd.f32 %v4922_v53, %v9973_v37  ;;  %v5089_v15 = vsel %vm2291_vm2, %v10200_v32, 0.0  ;;  %v10215_v34 = vadd.f32 %v4931_v33, %v9598_v49 }
 0xc2c   : > { %v5088_v1 = vadd.f32 %v5087_v9, %v5086_v14  ;;  %v7956_v8 = vpop.f32.mrf.mxu0 }
 0xc2d   : > { %v10212_v63 = vadd.f32 %v4923_v22, %v9611_v28  ;;  %v4944_v23 = vadd.f32 %v7956_v8, %v9988_v19  ;;  %v5095_v49 = vsel %vm2291_vm2, %v10215_v34, 0.0  ;;  %v8182_v22 = vld [vmem:[%s11403_s9] sm:$0xff]  }
 0xc2e   : > { %v5090_v20 = vadd.f32 %v5089_v15, %v5088_v1  ;;  %v4935_v25 = vpop.f32.mrf.mxu0  ;;  %7978 = vmatprep.mubr.bf16.mxu1 %v8182_v22 }
 0xc2f   : > { %v5091_v27 = vsel %vm2291_vm2, %v10212_v63, 0.0  ;;  %v4936_v37 = vadd.f32 %v4935_v25, %v9977_v38  ;;  %v10231_v11 = vadd.f32 %v4944_v23, %v9567_v46 }
 0xc30   : > { %v5092_v26 = vadd.f32 %v5091_v27, %v5090_v20  ;;  %v7957_v50 = vpop.f32.mrf.mxu0 }
 0xc31   : > { %v10224_v28 = vadd.f32 %v4936_v37, %v9581_v18  ;;  %v4947_v16 = vadd.f32 %v7957_v50, %v9996_v0  ;;  %v5101_v46 = vsel %vm2291_vm2, %v10231_v11, 0.0 }
 0xc32   : > { %v5094_v59 = vadd.f32 %v5093_v24, %v5092_v26  ;;  %v4938_v54 = vpop.f32.mrf.mxu0 }
 0xc33   : > { %v4939_v45 = vadd.f32 %v4938_v54, %v9992_v12  ;;  %v5097_v19 = vsel %vm2291_vm2, %v10224_v28, 0.0  ;;  %v10237_v4 = vadd.f32 %v4947_v16, %v9570_v30 }
 0xc34   : > { %v5096_v38 = vadd.f32 %v5095_v49, %v5094_v59  ;;  %v7960_v36 = vpop.f32.mrf.mxu0 }
 0xc35   : > { %v5043_v18 = vadd.f32 %v4939_v45, %v9584_v44  ;;  %v4960_v55 = vadd.f32 %v7960_v36, %v10006_v21  ;;  %v5103_v30 = vsel %vm2291_vm2, %v10237_v4, 0.0 }
 0xc36   : > { %v5098_v43 = vadd.f32 %v5097_v19, %v5096_v38  ;;  %v4951_v29 = vpop.f32.mrf.mxu0 }
 0xc37   : > { %v5099_v17 = vsel %vm2291_vm2, %v5043_v18, 0.0  ;;  %v4952_v0 = vadd.f32 %v4951_v29, %v9998_v61  ;;  %v10252_v9 = vadd.f32 %v4960_v55, %v9553_v35 }
 0xc38   : > { %v5100_v12 = vadd.f32 %v5099_v17, %v5098_v43  ;;  %v7961_v2 = vpop.f32.mrf.mxu0 }
 0xc39   : > { %v10245_v42 = vadd.f32 %v4952_v0, %v9559_v56  ;;  %v4963_v14 = vadd.f32 %v7961_v2, %v10008_v10 }
 0xc3a   : > { %v5102_v44 = vadd.f32 %v5101_v46, %v5100_v12  ;;  %v4954_v5 = vpop.f32.mrf.mxu0 }
 0xc3b   : > { %v4955_v61 = vadd.f32 %v4954_v5, %v10002_v48  ;;  %v5105_v33 = vsel %vm2291_vm2, %v10245_v42, 0.0  ;;  %v10259_v1 = vadd.f32 %v4963_v14, %v9556_v7  ;;  %v5109_v48 = vsel %vm2291_vm2, %v10252_v9, 0.0 }
 0xc3c   : > { %v5104_v53 = vadd.f32 %v5103_v30, %v5102_v44 }
 0xc3d   : > { %v5047_v21 = vadd.f32 %v4955_v61, %v9562_v6  ;;  %v5111_v35 = vsel %vm2291_vm2, %v10259_v1, 0.0 }
 0xc3e   : > { %v5106_v56 = vadd.f32 %v5105_v33, %v5104_v53 }
 0xc3f   : > { %v5107_v8 = vsel %vm2291_vm2, %v5047_v21, 0.0 }
 0xc40   : > { %v5108_v15 = vadd.f32 %v5107_v8, %v5106_v56 }
 0xc42   : > { %v5110_v10 = vadd.f32 %v5109_v48, %v5108_v15 }
 0xc44   : > { %v5112_v20 = vadd.f32 %v5111_v35, %v5110_v10 }
 0xc46   : > { %v5113_v25 = vrot.slane %v5112_v20, 4 }
 0xc48   : > { %v5114_v27 = vadd.f32 %v5113_v25, %v5112_v20 }
 0xc4a   : > { %v5115_v6 = vrot.slane %v5114_v27, 2 }
 0xc4c   : > { %v5116_v37 = vadd.f32 %v5115_v6, %v5114_v27 }
 0xc4e   : > { %v5117_v26 = vrot.slane %v5116_v37, 1 }
 0xc50   : > { %v5118_v50 = vadd.f32 %v5117_v26, %v5116_v37 }
 0xc52   : > { %v5119_v7 = vmul.f32 0.0078125, %v5118_v50 }
 0xc54   : > { %v10267_v24 = vsub.f32 %v10178_v47, %v5119_v7  ;;  %v10270_v23 = vsub.f32 %v10186_v51, %v5119_v7  ;;  %v10273_v59 = vsub.f32 %v10183_v60, %v5119_v7  ;;  %v10276_v54 = vsub.f32 %v10191_v41, %v5119_v7 }
 0xc55   : > { %v10283_v45 = vsub.f32 %v10200_v32, %v5119_v7  ;;  %v10288_v51 = vsub.f32 %v10212_v63, %v5119_v7  ;;  %v10295_v19 = vsub.f32 %v10207_v13, %v5119_v7  ;;  %v10301_v63 = vsub.f32 %v10215_v34, %v5119_v7 }
 0xc56   : > { %v5136_v49 = vmul.f32 %v10267_v24, %v10267_v24  ;;  %v5137_v16 = vmul.f32 %v10270_v23, %v10270_v23  ;;  %v5138_v47 = vmul.f32 %v10273_v59, %v10273_v59  ;;  %v5139_v60 = vmul.f32 %v10276_v54, %v10276_v54 }
 0xc57   : > { %v5140_v32 = vmul.f32 %v10283_v45, %v10283_v45  ;;  %v5141_v17 = vmul.f32 %v10288_v51, %v10288_v51  ;;  %v10307_v2 = vsub.f32 %v10224_v28, %v5119_v7  ;;  %v5142_v13 = vmul.f32 %v10295_v19, %v10295_v19 }
 0xc58   : > { %v5152_v41 = vsel %vm2291_vm2, %v5136_v49, 0.0  ;;  %v5153_v38 = vsel %vm2291_vm2, %v5137_v16, 0.0  ;;  %v5155_v43 = vsel %vm2291_vm2, %v5138_v47, 0.0  ;;  %v5157_v0 = vsel %vm2291_vm2, %v5139_v60, 0.0 }
 0xc59   : > { %v5154_v36 = vadd.f32 %v5153_v38, %v5152_v41  ;;  %v5159_v46 = vsel %vm2291_vm2, %v5140_v32, 0.0  ;;  %v10312_v44 = vsub.f32 %v5043_v18, %v5119_v7  ;;  %v5143_v34 = vmul.f32 %v10301_v63, %v10301_v63 }
 0xc5a   : > { %v5161_v5 = vsel %vm2291_vm2, %v5141_v17, 0.0  ;;  %v5130_v14 = vsub.f32 %v10231_v11, %v5119_v7  ;;  %v5144_v28 = vmul.f32 %v10307_v2, %v10307_v2  ;;  %v5163_v61 = vsel %vm2291_vm2, %v5142_v13, 0.0 }
 0xc5b   : > { %v5156_v29 = vadd.f32 %v5155_v43, %v5154_v36  ;;  %v5131_v33 = vsub.f32 %v10237_v4, %v5119_v7  ;;  %v5145_v18 = vmul.f32 %v10312_v44, %v10312_v44  ;;  %v5165_v56 = vsel %vm2291_vm2, %v5143_v34, 0.0 }
 0xc5c   : > { %v5132_v8 = vsub.f32 %v10245_v42, %v5119_v7  ;;  %v5146_v15 = vmul.f32 %v5130_v14, %v5130_v14  ;;  %v5167_v48 = vsel %vm2291_vm2, %v5144_v28, 0.0  ;;  %v5133_v10 = vsub.f32 %v5047_v21, %v5119_v7 }
 0xc5d   : > { %v5158_v12 = vadd.f32 %v5157_v0, %v5156_v29  ;;  %v5147_v35 = vmul.f32 %v5131_v33, %v5131_v33  ;;  %v5169_v20 = vsel %vm2291_vm2, %v5145_v18, 0.0  ;;  %v5134_v27 = vsub.f32 %v10252_v9, %v5119_v7 }
 0xc5e   : > { %v5148_v4 = vmul.f32 %v5132_v8, %v5132_v8  ;;  %v5171_v6 = vsel %vm2291_vm2, %v5146_v15, 0.0  ;;  %v5135_v26 = vsub.f32 %v10259_v1, %v5119_v7  ;;  %v5149_v50 = vmul.f32 %v5133_v10, %v5133_v10 }
 0xc5f   : > { %v5160_v55 = vadd.f32 %v5159_v46, %v5158_v12  ;;  %v5173_v42 = vsel %vm2291_vm2, %v5147_v35, 0.0  ;;  %v5150_v16 = vmul.f32 %v5134_v27, %v5134_v27 }
 0xc60   : > { %v5175_v47 = vsel %vm2291_vm2, %v5148_v4, 0.0  ;;  %v5151_v60 = vmul.f32 %v5135_v26, %v5135_v26  ;;  %v5177_v41 = vsel %vm2291_vm2, %v5149_v50, 0.0 }
 0xc61   : > { %v5162_v30 = vadd.f32 %v5161_v5, %v5160_v55  ;;  %v5179_v9 = vsel %vm2291_vm2, %v5150_v16, 0.0  ;;  %v5231_v55 = vpop.permute.xlu0 %5230 }
 0xc62   : > { %v5181_v32 = vsel %vm2291_vm2, %v5151_v60, 0.0 }
 0xc63   : > { %v5164_v53 = vadd.f32 %v5163_v61, %v5162_v30 }
 0xc65   : > { %v5166_v22 = vadd.f32 %v5165_v56, %v5164_v53 }
 0xc67   : > { %v5168_v11 = vadd.f32 %v5167_v48, %v5166_v22 }
 0xc69   : > { %v5170_v25 = vadd.f32 %v5169_v20, %v5168_v11  ;;  %v5327_v11 = vpop.permute.xlu0 %5326 }
 0xc6b   : > { %v5172_v37 = vadd.f32 %v5171_v6, %v5170_v25  ;;  %v11416_v6 = vld [vmem:[#allocation54_spill] sm:$0xff] }
 0xc6d   : > { %v5174_v49 = vadd.f32 %v5173_v42, %v5172_v37 }
 0xc6f   : > { %v5176_v21 = vadd.f32 %v5175_v47, %v5174_v49  ;;  %v5221_v49 = vpop.permute.xlu0 %5220 }
 0xc71   : > { %v5178_v38 = vadd.f32 %v5177_v41, %v5176_v21  ;;  %v11418_v21 = vld [vmem:[#allocation57_spill] sm:$0xff]  ;;  %v11420_v41 = vld [vmem:[#allocation70_spill] sm:$0xff] }
 0xc73   : > { %v5180_v36 = vadd.f32 %v5179_v9, %v5178_v38  ;;  %v11421_v9 = vld [vmem:[#allocation49_spill] sm:$0xff] }
 0xc75   : > { %v5182_v43 = vadd.f32 %v5181_v32, %v5180_v36  ;;  %v5317_v32 = vpop.permute.xlu0 %5316 }
 0xc77   : > { %v5183_v29 = vrot.slane %v5182_v43, 4 }
 0xc79   : > { %v5184_v1 = vadd.f32 %v5183_v29, %v5182_v43 }
 0xc7b   : > { %v5185_v7 = vrot.slane %v5184_v1, 2 }
 0xc7d   : > { %v5186_v17 = vadd.f32 %v5185_v7, %v5184_v1  ;;  %v11422_v1 = vld [vmem:[#allocation72_spill] sm:$0xff] }
 0xc7f   : > { %v5187_v0 = vrot.slane %v5186_v17, 1 }
 0xc81   : > { %v5188_v12 = vadd.f32 %v5187_v0, %v5186_v17  ;;  %v11424_v17 = vld [vmem:[#allocation50_spill] sm:$0xff] }
 0xc83   : > { %v5189_v13 = vmul.f32 0.0078125, %v5188_v12 }
 0xc85   : > { %v5190_v46 = vadd.f32 1e-05, %v5189_v13 }
 0xc87   : > { %8288 = vrsqrt.f32 %v5190_v46 }
 0xc94   : > { %v8289_v34 = vpop.eup %8288 }
 0xc95   : > { %v5205_v5 = vmul.f32 %v8289_v34, %v5133_v10  ;;  %v5206_v30 = vmul.f32 %v8289_v34, %v5134_v27  ;;  %v5207_v28 = vmul.f32 %v8289_v34, %v5135_v26  ;;  %v5204_v61 = vmul.f32 %v8289_v34, %v5132_v8 }
 0xc96   : > { %v5202_v53 = vmul.f32 %v8289_v34, %v5130_v14  ;;  %v5203_v18 = vmul.f32 %v8289_v34, %v5131_v33  ;;  %v5200_v10 = vmul.f32 %v8289_v34, %v10307_v2  ;;  %v5201_v25 = vmul.f32 %v8289_v34, %v10312_v44  ;;  %v11405_v33 = vld [vmem:[#allocation51_spill] sm:$0xff]  ;;  %v11413_v2 = vld [vmem:[#allocation52_spill] sm:$0xff] }
 0xc97   : > { %v5302_v56 = vmul.f32 %v10014_v57, %v5206_v30  ;;  %v5303_v22 = vmul.f32 %v10012_v39, %v5207_v28  ;;  %v5300_v15 = vmul.f32 %v10027_v52, %v5204_v61  ;;  %v5301_v48 = vmul.f32 %v10022_v58, %v5205_v5  ;;  %v11407_v39 = vld [vmem:[#allocation53_spill] sm:$0xff]  ;;  %v11409_v52 = vld [vmem:[#allocation55_spill] sm:$0xff]  ;;  %v11428_v30 = vld [vmem:[#allocation76_spill] sm:$0xff] }
 0xc98   : > { %v5298_v35 = vmul.f32 %v10040_v31, %v5202_v53  ;;  %v5299_v20 = vmul.f32 %v10030_v3, %v5203_v18  ;;  %v11411_v3 = vld [vmem:[#allocation56_spill] sm:$0xff]  ;;  %v5297_v37 = vmul.f32 %v11416_v6, %v5201_v25  ;;  %v5198_v50 = vmul.f32 %v8289_v34, %v10295_v19  ;;  %v11430_v61 = vld [vmem:[#allocation63_spill] sm:$0xff]  ;;  %v8191_v6 = vld [vmem:[%s11403_s9 + $0x48] sm:$0xff]  }
 0xc99   : > { %v10345_v14 = vadd.f32 %v10020_v40, %v5302_v56  ;;  %v10348_v57 = vadd.f32 %v11405_v33, %v5303_v22  ;;  %v10351_v8 = vadd.f32 %v11407_v39, %v5300_v15  ;;  %v10354_v58 = vadd.f32 %v11409_v52, %v5301_v48  ;;  %v11415_v40 = vld [vmem:[#allocation74_spill] sm:$0xff]  ;;  %v8184_v39 = vld [vmem:[%s11403_s9 + $0x10] sm:$0xff]   ;;  %v8185_v52 = vld [vmem:[%s11403_s9 + $0x18] sm:$0xff]  }
 0xc9a   : > { %v10359_v27 = vadd.f32 %v11411_v3, %v5298_v35  ;;  %v10362_v44 = vadd.f32 %v11413_v2, %v5299_v20  ;;  %v5296_v4 = vmul.f32 %v11415_v40, %v5200_v10  ;;  %v5199_v42 = vmul.f32 %v8289_v34, %v10301_v63  ;;  %v11434_v22 = vld [vmem:[#allocation62_spill] sm:$0xff]  ;;  %v11436_v20 = vld [vmem:[#allocation67_spill] sm:$0xff]  ;;  %v8189_v40 = vld [vmem:[%s11403_s9 + $0x38] sm:$0xff]  }
 0xc9b   : > { %11404 = vst [vmem:[#allocation46_spill] sm:$0xff] %v10345_v14  ;;  %11406 = vst [vmem:[#allocation47_spill] sm:$0xff] %v10348_v57  ;;  %v5439_v31 = vpack.c.bf16 %v10348_v57, %v10345_v14  ;;  %v5438_v26 = vpack.c.bf16 %v10354_v58, %v10351_v8  ;;  %v10376_v60 = vadd.f32 %v11418_v21, %v5297_v37  ;;  %v8183_v33 = vld [vmem:[%s11403_s9 + $0x8] sm:$0xff]   ;;  %v8188_v2 = vld [vmem:[%s11403_s9 + $0x30] sm:$0xff]  }
 0xc9c   : > { %11408 = vst [vmem:[#allocation45_spill] sm:$0xff] %v10351_v8  ;;  %11410 = vst [vmem:[#allocation48_spill] sm:$0xff] %v10354_v58  ;;  %v5437_v16 = vpack.c.bf16 %v10362_v44, %v10359_v27  ;;  %v10373_v47 = vadd.f32 %v10077_v62, %v5296_v4  ;;  %v5294_v38 = vmul.f32 %v11420_v41, %v5198_v50  ;;  %v8187_v3 = vld [vmem:[%s11403_s9 + $0x28] sm:$0xff]   ;;  %v8190_v4 = vld [vmem:[%s11403_s9 + $0x40] sm:$0xff]  }
 0xc9d   : > { %11412 = vst [vmem:[#allocation34_spill] sm:$0xff] %v10359_v27  ;;  %11414 = vst [vmem:[#allocation33_spill] sm:$0xff] %v10362_v44  ;;  %7962 = vmatprep.subr.bf16.mxu1 %v5439_v31  ;;  %v5295_v36 = vmul.f32 %v11421_v9, %v5199_v42  ;;  %v5196_v19 = vmul.f32 %v8289_v34, %v10283_v45  ;;  %v5197_v63 = vmul.f32 %v8289_v34, %v10288_v51  ;;  %v11426_v45 = vld [vmem:[#allocation75_spill] sm:$0xff]  ;;  %v8194_v50 = vld [vmem:[%s11403_s9 + $0x60] sm:$0xff]  }
 0xc9e   : > { %7963 = vmatpush3.bf16.msra.mxu1 %v5439_v31  ;;  %11417 = vst [vmem:[#allocation36_spill] sm:$0xff] %v10373_v47  ;;  %11419 = vst [vmem:[#allocation35_spill] sm:$0xff] %v10376_v60  ;;  %v5436_v43 = vpack.c.bf16 %v10376_v60, %v10373_v47  ;;  %v5194_v62 = vmul.f32 %v8289_v34, %v10273_v59  ;;  %v5195_v29 = vmul.f32 %v8289_v34, %v10276_v54  ;;  %v8186_v31 = vld [vmem:[%s11403_s9 + $0x20] sm:$0xff]   ;;  %v8192_v37 = vld [vmem:[%s11403_s9 + $0x50] sm:$0xff]  }
 0xc9f   : > { %7964 = vmatprep.subr.bf16.mxu1 %v5438_v26  ;;  %v10387_v7 = vadd.f32 %v11422_v1, %v5294_v38  ;;  %v10390_v0 = vadd.f32 %v11424_v17, %v5295_v36  ;;  %v5292_v12 = vmul.f32 %v5231_v55, %v5196_v19  ;;  %v5293_v13 = vmul.f32 %v11426_v45, %v5197_v63  ;;  %v5211_v55 = vpop.permute.xlu0 %5210  ;;  %v8195_v42 = vld [vmem:[%s11403_s9 + $0x68] sm:$0xff]  }
 0xca0   : > { %v5290_v51 = vmul.f32 %v5221_v49, %v5194_v62  ;;  %v5192_v46 = vmul.f32 %v8289_v34, %v10267_v24  ;;  %v5193_v5 = vmul.f32 %v8289_v34, %v10270_v23  ;;  %v5291_v53 = vmul.f32 %v11430_v61, %v5195_v29  ;;  %v11432_v23 = vld [vmem:[#allocation66_spill] sm:$0xff]  ;;  %v8196_v49 = vld [vmem:[%s11403_s9 + $0x70] sm:$0xff]  }
 0xca1   : > { %11423 = vst [vmem:[#allocation38_spill] sm:$0xff] %v10387_v7  ;;  %11425 = vst [vmem:[#allocation37_spill] sm:$0xff] %v10390_v0  ;;  %v5435_v59 = vpack.c.bf16 %v10390_v0, %v10387_v7  ;;  %v10397_v54 = vadd.f32 %v5327_v11, %v5292_v12  ;;  %v10400_v28 = vadd.f32 %v11428_v30, %v5293_v13 }
 0xca2   : > { %7965 = vmatpush3.bf16.msra.mxu1 %v5438_v26  ;;  %v5288_v18 = vmul.f32 %v5211_v55, %v5192_v46  ;;  %v10405_v56 = vadd.f32 %v5317_v32, %v5290_v51  ;;  %v10408_v34 = vadd.f32 %v11432_v23, %v5291_v53  ;;  %v5289_v15 = vmul.f32 %v11434_v22, %v5193_v5  ;;  %v8193_v26 = vld [vmem:[%s11403_s9 + $0x58] sm:$0xff]   ;;  %v8200_v5 = vld [vmem:[%s11438_s6 + $0x4] ss:$8 sps:$4 sm:$0xff]   ;;  %v11439_v55 = vld [vmem:[#allocation43_spill] sm:$0xff] }
 0xca3   : > { %7966 = vmatprep.subr.bf16.mxu1 %v5437_v16  ;;  %11427 = vst [vmem:[#allocation40_spill] sm:$0xff] %v10397_v54  ;;  %11429 = vst [vmem:[#allocation39_spill] sm:$0xff] %v10400_v28  ;;  %v5434_v24 = vpack.c.bf16 %v10400_v28, %v10397_v54  ;;  %v5307_v48 = vpop.permute.xlu0 %5306  ;;  %6417 = vmatprep.mubr.bf16.mxu0 %v8200_v5  ;;  %v11440_v23 = vld [vmem:[#allocation44_spill] sm:$0xff] }
 0xca4   : > { %11431 = vst [vmem:[#allocation80_spill] sm:$0xff] %v10405_v56  ;;  %11433 = vst [vmem:[#allocation79_spill] sm:$0xff] %v10408_v34  ;;  %v5433_v11 = vpack.c.bf16 %v10408_v34, %v10405_v56  ;;  %v10413_v35 = vadd.f32 %v5307_v48, %v5288_v18  ;;  %v10416_v10 = vadd.f32 %v11436_v20, %v5289_v15 }
 0xca6   : > { %7967 = vmatpush3.bf16.msra.mxu1 %v5437_v16  ;;  %11435 = vst [vmem:[#allocation51_spill] sm:$0xff] %v10413_v35  ;;  %11437 = vst [vmem:[#allocation53_spill] sm:$0xff] %v10416_v10  ;;  %v5432_v25 = vpack.c.bf16 %v10416_v10, %v10413_v35  ;;  %v8197_v16 = vld [vmem:[%s11403_s9 + $0x78] sm:$0xff]   ;;  %s11112_s9 = scalar_lea.sflag [#allocation5], %s1087_s5 }
 0xca7   : > { %7968 = vmatprep.subr.bf16.mxu1 %v5436_v43  ;;  %v10435_v21 = vpop.permute.xlu0 %5624 }
 0xcaa   : > { %7969 = vmatpush3.bf16.msra.mxu1 %v5436_v43 }
 0xcab   : > { %7970 = vmatprep.subr.bf16.mxu1 %v5435_v59  ;;  %v10437_v41 = vpop.permute.xlu0 %5544 }
 0xcae   : > { %7971 = vmatpush3.bf16.msra.mxu1 %v5435_v59 }
 0xcaf   : > { %7972 = vmatprep.subr.bf16.mxu1 %v5434_v24  ;;  %v10439_v38 = vpop.permute.xlu0 %5614 }
 0xcb2   : > { %7973 = vmatpush3.bf16.msra.mxu1 %v5434_v24 }
 0xcb3   : > { %7974 = vmatprep.subr.bf16.mxu1 %v5433_v11  ;;  %v10441_v9 = vpop.permute.xlu0 %5534 }
 0xcb6   : > { %7975 = vmatpush3.bf16.msra.mxu1 %v5433_v11 }
 0xcb7   : > { %7976 = vmatprep.subr.bf16.mxu1 %v5432_v25  ;;  %v10443_v36 = vpop.permute.xlu0 %5604 }
 0xcba   : > { %7977 = vmatpush3.bf16.msra.mxu1 %v5432_v25 }
 0xcbb   : > { %v10445_v19 = vpop.permute.xlu0 %5524 }
 0xcbd   : > { %7979 = vmatmul.mubr.bf16.vlgmr.msra.gmra.mxu1 %v8183_v33 }
 0xcbe   : > { %7982 = vmatprep.mubr.bf16.mxu1 %v8184_v39 }
 0xcbf   : > { %v10447_v63 = vpop.permute.xlu0 %5594 }
 0xcc3   : > { %v10449_v32 = vpop.permute.xlu0 %5514 }
 0xcc5   : > { %7983 = vmatmul.mubr.bf16.gmra.mxu1 %v8185_v52 }
 0xcc6   : > { %7986 = vmatprep.mubr.bf16.mxu1 %v8186_v31 }
 0xcc7   : > { %v10451_v43 = vpop.permute.xlu0 %5584 }
 0xccb   : > { %v5505_v62 = vpop.permute.xlu0 %5504 }
 0xccd   : > { %7987 = vmatmul.mubr.bf16.gmra.mxu1 %v8187_v3 }
 0xcce   : > { %7990 = vmatprep.mubr.bf16.mxu1 %v8188_v2 }
 0xccf   : > { %v10453_v29 = vpop.permute.xlu0 %5574 }
 0xcd3   : > { %v5495_v1 = vpop.permute.xlu0 %5494 }
 0xcd5   : > { %7991 = vmatmul.mubr.bf16.gmra.mxu1 %v8189_v40  ;;  %v11441_v40 = vld [vmem:[#allocation73_spill] sm:$0xff] }
 0xcd6   : > { %7994 = vmatprep.mubr.bf16.mxu1 %v8190_v4 }
 0xcd7   : > { %v10455_v17 = vpop.permute.xlu0 %5564 }
 0xcdb   : > { %v5485_v12 = vpop.permute.xlu0 %5484 }
 0xcdd   : > { %7995 = vmatmul.mubr.bf16.gmra.mxu1 %v8191_v6 }
 0xcde   : > { %7998 = vmatprep.mubr.bf16.mxu1 %v8192_v37  ;;  %v11442_v37 = vld [vmem:[#allocation78_spill] sm:$0xff] }
 0xcdf   : > { %v10457_v45 = vpop.permute.xlu0 %5554 }
 0xce3   : > { %v5475_v59 = vpop.permute.xlu0 %5474 }
 0xce5   : > { %7999 = vmatmul.mubr.bf16.gmra.mxu1 %v8193_v26 }
 0xce6   : > { %8002 = vmatprep.mubr.bf16.mxu1 %v8194_v50 }
 0xced   : > { %8003 = vmatmul.mubr.bf16.gmra.mxu1 %v8195_v42 }
 0xcee   : > { %8006 = vmatprep.mubr.bf16.mxu1 %v8196_v49 }
 0xcf5   : > { %8007 = vmatmul.mubr.bf16.gmra.mxu1 %v8197_v16 }
 0xd7d   : > { %v7980_v13 = vpop.f32.mrf.mxu1 }
 0xd7e   : > { %v10460_v30 = vadd.f32 %v7980_v13, %v5485_v12 }
 0xd7f   : > { %v5762_v51 = vpop.f32.mrf.mxu1 }
 0xd80   : > { %v10462_v53 = vadd.f32 %v5762_v51, %v5475_v59  ;;  %v5891_v15 = vmul.f32 %v10460_v30, %v10460_v30 }
 0xd81   : > { %v7981_v46 = vpop.f32.mrf.mxu1 }
 0xd82   : > { %v10465_v18 = vadd.f32 %v7981_v46, %v11439_v55  ;;  %v5889_v11 = vmul.f32 %v10462_v53, %v10462_v53  ;;  %v5923_v52 = vmul.f32 %v5891_v15, %v10460_v30 }
 0xd83   : > { %v5765_v61 = vpop.f32.mrf.mxu1 }
 0xd84   : > { %v10468_v22 = vadd.f32 %v5765_v61, %v11440_v23  ;;  %v5892_v20 = vmul.f32 %v10465_v18, %v10465_v18  ;;  %v5921_v2 = vmul.f32 %v5889_v11, %v10462_v53  ;;  %v5955_v16 = vmul.f32 0.044715, %v5923_v52 }
 0xd85   : > { %v7984_v24 = vpop.f32.mrf.mxu1 }
 0xd86   : > { %v5890_v33 = vmul.f32 %v10468_v22, %v10468_v22  ;;  %v10478_v39 = vadd.f32 %v7984_v24, %v5505_v62  ;;  %v5924_v6 = vmul.f32 %v5892_v20, %v10465_v18  ;;  %v5953_v12 = vmul.f32 0.044715, %v5921_v2 }
 0xd87   : > { %v5778_v48 = vpop.f32.mrf.mxu1  ;;  %v5987_v55 = vadd.f32 %v5955_v16, %v10460_v30 }
 0xd88   : > { %v10481_v31 = vadd.f32 %v5778_v48, %v5495_v1  ;;  %v5922_v42 = vmul.f32 %v5890_v33, %v10468_v22  ;;  %v5895_v49 = vmul.f32 %v10478_v39, %v10478_v39  ;;  %v5956_v51 = vmul.f32 0.044715, %v5924_v6 }
 0xd89   : > { %v7985_v25 = vpop.f32.mrf.mxu1  ;;  %v5985_v15 = vadd.f32 %v5953_v12, %v10462_v53 }
 0xd8a   : > { %v10485_v4 = vadd.f32 %v7985_v25, %v11441_v40  ;;  %v5893_v62 = vmul.f32 %v10481_v31, %v10481_v31  ;;  %v5954_v59 = vmul.f32 0.044715, %v5922_v42  ;;  %v5927_v61 = vmul.f32 %v5895_v49, %v10478_v39 }
 0xd8b   : > { %v5781_v3 = vpop.f32.mrf.mxu1  ;;  %v5988_v11 = vadd.f32 %v5956_v51, %v10465_v18  ;;  %v6017_v6 = vmul.f32 0.7978846, %v5985_v15 }
 0xd8c   : > { %v10489_v26 = vadd.f32 %v5781_v3, %v11442_v37  ;;  %v5896_v13 = vmul.f32 %v10485_v4, %v10485_v4  ;;  %v5925_v24 = vmul.f32 %v5893_v62, %v10481_v31  ;;  %v5986_v33 = vadd.f32 %v5954_v59, %v10468_v22 }
 0xd8d   : > { %v7988_v50 = vpop.f32.mrf.mxu1  ;;  %v5959_v52 = vmul.f32 0.044715, %v5927_v61  ;;  %v6019_v3 = vmul.f32 0.7978846, %v5987_v55  ;;  %v6020_v42 = vmul.f32 0.7978846, %v5988_v11 }
 0xd8e   : > { %v5894_v46 = vmul.f32 %v10489_v26, %v10489_v26  ;;  %v5928_v48 = vmul.f32 %v5896_v13, %v10485_v4  ;;  %v5957_v2 = vmul.f32 0.044715, %v5925_v24  ;;  %v6018_v62 = vmul.f32 0.7978846, %v5986_v33  ;;  %v11443_v55 = vld [vmem:[#allocation68_spill] sm:$0xff] }
 0xd8f   : > { %v5794_v1 = vpop.f32.mrf.mxu1  ;;  %v5991_v12 = vadd.f32 %v5959_v52, %v10478_v39  ;;  %v10510_v13 = vadd.f32 %v7988_v50, %v10445_v19  ;;  %8290 = vtanh.f32 %v6019_v3 }
 0xd90   : > { %v5926_v20 = vmul.f32 %v5894_v46, %v10489_v26  ;;  %v5960_v37 = vmul.f32 0.044715, %v5928_v48  ;;  %v5989_v51 = vadd.f32 %v5957_v2, %v10481_v31  ;;  %8292 = vtanh.f32 %v6017_v6 }
 0xd91   : > { %v7989_v5 = vpop.f32.mrf.mxu1  ;;  %8294 = vtanh.f32 %v6020_v42  ;;  %v6023_v48 = vmul.f32 0.7978846, %v5991_v12  ;;  %v5899_v19 = vmul.f32 %v10510_v13, %v10510_v13  ;;  %v10528_v3 = vadd.f32 %v5794_v1, %v10449_v32  ;;  %v11445_v32 = vld [vmem:[#allocation69_spill] sm:$0xff] }
 0xd92   : > { %v5958_v49 = vmul.f32 0.044715, %v5926_v20  ;;  %v5992_v59 = vadd.f32 %v5960_v37, %v10485_v4  ;;  %v10516_v24 = vadd.f32 %v7989_v5, %v11443_v55  ;;  %8296 = vtanh.f32 %v6018_v62  ;;  %v11446_v62 = vld [vmem:[#allocation60_spill] sm:$0xff] }
 0xd93   : > { %v5797_v23 = vpop.f32.mrf.mxu1  ;;  %v6021_v50 = vmul.f32 0.7978846, %v5989_v51  ;;  %11444 = vst [vmem:[#allocation55_spill] sm:$0xff] %v10528_v3  ;;  %8298 = vtanh.f32 %v6023_v48  ;;  %v5931_v6 = vmul.f32 %v5899_v19, %v10510_v13  ;;  %v5897_v42 = vmul.f32 %v10528_v3, %v10528_v3 }
 0xd94   : > { %v5990_v61 = vadd.f32 %v5958_v49, %v10489_v26  ;;  %v6024_v33 = vmul.f32 0.7978846, %v5992_v59  ;;  %v5900_v5 = vmul.f32 %v10516_v24, %v10516_v24  ;;  %v10543_v1 = vadd.f32 %v5797_v23, %v11445_v32 }
 0xd95   : > { %v7992_v25 = vpop.f32.mrf.mxu1  ;;  %8300 = vtanh.f32 %v6021_v50 }
 0xd96   : > { %v10523_v11 = vadd.f32 %v7992_v25, %v10437_v41  ;;  %v6022_v52 = vmul.f32 0.7978846, %v5990_v61  ;;  %8302 = vtanh.f32 %v6024_v33  ;;  %v5932_v49 = vmul.f32 %v5900_v5, %v10516_v24  ;;  %v11447_v61 = vld [vmem:[#allocation61_spill] sm:$0xff] }
 0xd97   : > { %v5810_v40 = vpop.f32.mrf.mxu1  ;;  %v5898_v19 = vmul.f32 %v10543_v1, %v10543_v1 }
 0xd98   : > { %v10536_v37 = vadd.f32 %v5810_v40, %v10441_v9  ;;  %v5903_v41 = vmul.f32 %v10523_v11, %v10523_v11  ;;  %8304 = vtanh.f32 %v6022_v52  ;;  %v5963_v40 = vmul.f32 0.044715, %v5931_v6 }
 0xd99   : > { %v7993_v16 = vpop.f32.mrf.mxu1  ;;  %v5964_v33 = vmul.f32 0.044715, %v5932_v49  ;;  %v5930_v49 = vmul.f32 %v5898_v19, %v10543_v1 }
 0xd9a   : > { %v10549_v12 = vadd.f32 %v7993_v16, %v11446_v62  ;;  %v5901_v51 = vmul.f32 %v10536_v37, %v10536_v37  ;;  %v5935_v59 = vmul.f32 %v5903_v41, %v10523_v11  ;;  %v5929_v16 = vmul.f32 %v5897_v42, %v10528_v3 }
 0xd9b   : > { %v5813_v46 = vpop.f32.mrf.mxu1  ;;  %v5995_v41 = vadd.f32 %v5963_v40, %v10510_v13  ;;  %v5996_v44 = vadd.f32 %v5964_v33, %v10516_v24  ;;  %v5962_v19 = vmul.f32 0.044715, %v5930_v49 }
 0xd9c   : > { %v10557_v23 = vadd.f32 %v5813_v46, %v11447_v61  ;;  %v8291_v48 = vpop.eup %8290  ;;  %v5904_v52 = vmul.f32 %v10549_v12, %v10549_v12  ;;  %v5933_v46 = vmul.f32 %v5901_v51, %v10536_v37  ;;  %v5967_v61 = vmul.f32 0.044715, %v5935_v59 }
 0xd9d   : > { %v10518_v15 = vpop.f32.mrf.mxu1  ;;  %v8293_v50 = vpop.eup %8292  ;;  %v6083_v62 = vadd.f32 1.0, %v8291_v48  ;;  %v5961_v8 = vmul.f32 0.044715, %v5929_v16  ;;  %v6027_v51 = vmul.f32 0.7978846, %v5995_v41 }
 0xd9e   : > { %v8295_v6 = vpop.eup %8294  ;;  %v5902_v57 = vmul.f32 %v10557_v23, %v10557_v23  ;;  %v6081_v42 = vadd.f32 1.0, %v8293_v50  ;;  %v5936_v27 = vmul.f32 %v5904_v52, %v10549_v12  ;;  %v5965_v47 = vmul.f32 0.044715, %v5933_v46 }
 0xd9f   : > { %v10525_v20 = vpop.f32.mrf.mxu1  ;;  %v8297_v32 = vpop.eup %8296  ;;  %v6084_v58 = vadd.f32 1.0, %v8295_v6  ;;  %v6115_v59 = vmul.f32 0.5, %v6083_v62  ;;  %v5999_v0 = vadd.f32 %v5967_v61, %v10523_v11  ;;  %v10580_v33 = vadd.f32 %v5961_v8, %v10528_v3 }
 0xda0   : > { %v6082_v60 = vadd.f32 1.0, %v8297_v32  ;;  %v8299_v48 = vpop.eup %8298  ;;  %v5934_v7 = vmul.f32 %v5902_v57, %v10557_v23  ;;  %v6113_v54 = vmul.f32 0.5, %v6081_v42  ;;  %v6028_v52 = vmul.f32 0.7978846, %v5996_v44 }
 0xda1   : > { %v10532_v2 = vpop.f32.mrf.mxu1  ;;  %v6116_v16 = vmul.f32 0.5, %v6084_v58  ;;  %v5968_v34 = vmul.f32 0.044715, %v5936_v27  ;;  %v6087_v56 = vadd.f32 1.0, %v8299_v48  ;;  %8306 = vtanh.f32 %v6027_v51  ;;  %v11448_v48 = vld [vmem:[#allocation42_spill] sm:$0xff] }
 0xda2   : > { %v8301_v50 = vpop.eup %8300  ;;  %v6114_v46 = vmul.f32 0.5, %v6082_v60  ;;  %v5997_v62 = vadd.f32 %v5965_v47, %v10536_v37  ;;  %v10584_v57 = vmul.f32 %v6115_v59, %v10460_v30  ;;  %v6031_v61 = vmul.f32 0.7978846, %v5999_v0 }
 0xda3   : > { %v10540_v25 = vpop.f32.mrf.mxu1  ;;  %v8303_v6 = vpop.eup %8302  ;;  %v5966_v42 = vmul.f32 0.044715, %v5934_v7  ;;  %v10588_v58 = vadd.f32 %v10518_v15, %v10455_v17  ;;  %v10591_v44 = vmul.f32 %v6113_v54, %v10462_v53  ;;  %v6085_v27 = vadd.f32 1.0, %v8301_v50 }
 0xda4   : > { %v6088_v49 = vadd.f32 1.0, %v8303_v6  ;;  %v10594_v60 = vadd.f32 %v5962_v19, %v10543_v1  ;;  %v10597_v47 = vmul.f32 %v6116_v16, %v10465_v18  ;;  %8308 = vtanh.f32 %v6028_v52  ;;  %v11449_v6 = vld [vmem:[#allocation71_spill] sm:$0xff] }
 0xda5   : > { %v10551_v9 = vpop.f32.mrf.mxu1  ;;  %v8305_v41 = vpop.eup %8304  ;;  %v6000_v7 = vadd.f32 %v5968_v34, %v10549_v12  ;;  %v10601_v17 = vmul.f32 %v6114_v46, %v10468_v22  ;;  %v6119_v15 = vmul.f32 0.5, %v6087_v56  ;;  %v6029_v51 = vmul.f32 0.7978846, %v5997_v62 }
 0xda6   : > { %v6086_v30 = vadd.f32 1.0, %v8305_v41  ;;  %8310 = vtanh.f32 %v6031_v61  ;;  %v5998_v53 = vadd.f32 %v5966_v42, %v10557_v23  ;;  %v5907_v18 = vmul.f32 %v10588_v58, %v10588_v58  ;;  %v11451_v61 = vld [vmem:[#allocation41_spill] sm:$0xff] }
 0xda7   : > { %v10559_v55 = vpop.f32.mrf.mxu1  ;;  %v10611_v59 = vadd.f32 %v10532_v2, %v11448_v48  ;;  %v6117_v34 = vmul.f32 0.5, %v6085_v27  ;;  %v6120_v50 = vmul.f32 0.5, %v6088_v49  ;;  %v10615_v22 = vadd.f32 %v10525_v20, %v10457_v45  ;;  %v11450_v20 = vld [vmem:[#allocation65_spill] sm:$0xff] }
 0xda8   : > { %v6032_v19 = vmul.f32 0.7978846, %v6000_v7  ;;  %v10627_v2 = vmul.f32 %v6119_v15, %v10478_v39  ;;  %8312 = vtanh.f32 %v6029_v51  ;;  %v6030_v46 = vmul.f32 0.7978846, %v5998_v53  ;;  %v11452_v7 = vld [vmem:[#allocation64_spill] sm:$0xff]  ;;  %v11453_v53 = vld [vmem:[#allocation77_spill] sm:$0xff] }
 0xda9   : > { %v10566_v5 = vpop.f32.mrf.mxu1  ;;  %v10634_v62 = vmul.f32 %v5907_v18, %v10588_v58  ;;  %v10646_v39 = vmul.f32 %v6120_v50, %v10485_v4  ;;  %v10689_v50 = vadd.f32 %v10559_v55, %v10453_v29 }
 0xdaa   : > { %v10621_v16 = vadd.f32 %v10566_v5, %v11449_v6  ;;  %v5908_v5 = vmul.f32 %v10611_v59, %v10611_v59  ;;  %8314 = vtanh.f32 %v6032_v19 }
 0xdab   : > { %v10572_v14 = vpop.f32.mrf.mxu1  ;;  %8316 = vtanh.f32 %v6030_v46 }
 0xdac   : > { %v10679_v18 = vadd.f32 %v10572_v14, %v11453_v53 }
 0xdad   : > { %v8004_v40 = vpop.f32.mrf.mxu1 }
 0xdae   : > { %v10604_v54 = vadd.f32 %v8004_v40, %v10443_v36  ;;  %v6118_v40 = vmul.f32 0.5, %v6086_v30  ;;  %v10668_v15 = vpop.eup %8306  ;;  %v5910_v29 = vmul.f32 %v10679_v18, %v10679_v18 }
 0xdaf   : > { %v5858_v28 = vpop.f32.mrf.mxu1 }
 0xdb0   : > { %v5915_v56 = vmul.f32 %v10604_v54, %v10604_v54  ;;  %v10624_v52 = vadd.f32 %v5858_v28, %v10447_v63  ;;  %v10640_v28 = vadd.f32 %v10540_v25, %v11451_v61  ;;  %v10643_v63 = vmul.f32 %v6117_v34, %v10481_v31 }
 0xdb1   : > { %v8005_v32 = vpop.f32.mrf.mxu1  ;;  %v10655_v49 = vmul.f32 %v6118_v40, %v10489_v26  ;;  %v5912_v25 = vmul.f32 %v10621_v16, %v10621_v16  ;;  %v10671_v26 = vmul.f32 %v5908_v5, %v10611_v59  ;;  %v11454_v40 = vld [vmem:[#allocation59_spill] sm:$0xff]  ;;  %v10698_v6 = vpop.eup %8308 }
 0xdb2   : > { %v5947_v45 = vmul.f32 %v5915_v56, %v10604_v54  ;;  %v10631_v41 = vadd.f32 %v8005_v32, %v11450_v20  ;;  %v10650_v32 = vadd.f32 %v10551_v9, %v10451_v43  ;;  %v5913_v31 = vmul.f32 %v10624_v52, %v10624_v52 }
 0xdb3   : > { %v5861_v8 = vpop.f32.mrf.mxu1  ;;  %v10675_v51 = vmul.f32 %v10640_v28, %v10640_v28  ;;  %v5944_v56 = vmul.f32 %v5912_v25, %v10621_v16 }
 0xdb4   : > { %v5916_v42 = vmul.f32 %v10631_v41, %v10631_v41  ;;  %v5979_v4 = vmul.f32 0.044715, %v5947_v45  ;;  %v10663_v43 = vadd.f32 %v5861_v8, %v11452_v7  ;;  %v5911_v8 = vmul.f32 %v10650_v32, %v10650_v32 }
 0xdb5   : > { %v8008_v0 = vpop.f32.mrf.mxu1  ;;  %v5945_v20 = vmul.f32 %v5913_v31, %v10624_v52 }
 0xdb6   : > { %v5948_v30 = vmul.f32 %v5916_v42, %v10631_v41  ;;  %v10666_v9 = vadd.f32 %v8008_v0, %v10435_v21  ;;  %v5914_v21 = vmul.f32 %v10663_v43, %v10663_v43  ;;  %v6011_v45 = vadd.f32 %v5979_v4, %v10604_v54  ;;  %v10713_v42 = vpop.eup %8310 }
 0xdb7   : > { %v5874_v36 = vpop.f32.mrf.mxu1 }
 0xdb8   : > { %v5980_v48 = vmul.f32 0.044715, %v5948_v30  ;;  %v5919_v0 = vmul.f32 %v10666_v9, %v10666_v9  ;;  %v10693_v14 = vadd.f32 %v5874_v36, %v10439_v38  ;;  %v5946_v46 = vmul.f32 %v5914_v21, %v10663_v43  ;;  %v11455_v36 = vld [vmem:[#allocation58_spill] sm:$0xff] }
 0xdb9   : > { %v8009_v27 = vpop.f32.mrf.mxu1  ;;  %v5909_v30 = vmul.f32 %v10689_v50, %v10689_v50 }
 0xdba   : > { %v10696_v19 = vadd.f32 %v8009_v27, %v11454_v40  ;;  %v5951_v5 = vmul.f32 %v5919_v0, %v10666_v9  ;;  %v5917_v38 = vmul.f32 %v10693_v14, %v10693_v14  ;;  %v5943_v27 = vmul.f32 %v5911_v8, %v10650_v32  ;;  %v10724_v8 = vpop.eup %8312 }
 0xdbb   : > { %v5877_v34 = vpop.f32.mrf.mxu1  ;;  %v6012_v25 = vadd.f32 %v5980_v48, %v10631_v41  ;;  %v5978_v31 = vmul.f32 0.044715, %v5946_v46  ;;  %v5976_v0 = vmul.f32 0.044715, %v5944_v56  ;;  %v5977_v40 = vmul.f32 0.044715, %v5945_v20 }
 0xdbc   : > { %v5920_v55 = vmul.f32 %v10696_v19, %v10696_v19  ;;  %v10711_v61 = vadd.f32 %v5877_v34, %v11455_v36  ;;  %v5983_v4 = vmul.f32 0.044715, %v5951_v5  ;;  %v5949_v7 = vmul.f32 %v5917_v38, %v10693_v14 }
 0xdbd   : > { %v6043_v34 = vmul.f32 0.7978846, %v6011_v45  ;;  %v5942_v48 = vmul.f32 %v5910_v29, %v10679_v18  ;;  %v6044_v10 = vmul.f32 0.7978846, %v6012_v25  ;;  %v6010_v38 = vadd.f32 %v5978_v31, %v10663_v43  ;;  %v8315_v29 = vpop.eup %8314 }
 0xdbe   : > { %v5952_v53 = vmul.f32 %v5920_v55, %v10696_v19  ;;  %v5918_v21 = vmul.f32 %v10711_v61, %v10711_v61  ;;  %v6015_v36 = vadd.f32 %v5983_v4, %v10666_v9  ;;  %v5981_v46 = vmul.f32 0.044715, %v5949_v7  ;;  %v8317_v3 = vpop.eup %8316 }
 0xdbf   : > { %v5975_v7 = vmul.f32 0.044715, %v5943_v27  ;;  %8318 = vtanh.f32 %v6043_v34  ;;  %v6009_v25 = vadd.f32 %v5977_v40, %v10624_v52  ;;  %v5905_v4 = vmul.f32 %v10615_v22, %v10615_v22 }
 0xdc0   : > { %v5984_v5 = vmul.f32 0.044715, %v5952_v53  ;;  %v5950_v35 = vmul.f32 %v5918_v21, %v10711_v61  ;;  %v6047_v55 = vmul.f32 0.7978846, %v6015_v36  ;;  %v6013_v56 = vadd.f32 %v5981_v46, %v10693_v14 }
 0xdc1   : > { %v5941_v53 = vmul.f32 %v5909_v30, %v10689_v50  ;;  %v6008_v46 = vadd.f32 %v5976_v0, %v10621_v16  ;;  %v6194_v30 = vpack.c.bf16 %v10597_v47, %v10584_v57  ;;  %v6007_v34 = vadd.f32 %v5975_v7, %v10650_v32  ;;  %v8206_v57 = vld [vmem:[%s11438_s6 + $0x20] ss:$8 sps:$4 sm:$0xff]   ;;  %v8207_v47 = vld [vmem:[%s11438_s6 + $0x34] ss:$8 sps:$4 sm:$0xff]  }
 0xdc2   : > { %v6016_v45 = vadd.f32 %v5984_v5, %v10696_v19  ;;  %v5982_v20 = vmul.f32 0.044715, %v5950_v35  ;;  %8320 = vtanh.f32 %v6047_v55  ;;  %v6045_v31 = vmul.f32 0.7978846, %v6013_v56 }
 0xdc3   : > { %v5974_v5 = vmul.f32 0.044715, %v5942_v48  ;;  %8322 = vtanh.f32 %v6044_v10  ;;  %v6042_v35 = vmul.f32 0.7978846, %v6010_v38  ;;  %v5973_v40 = vmul.f32 0.044715, %v5941_v53 }
 0xdc4   : > { %v6048_v21 = vmul.f32 0.7978846, %v6016_v45  ;;  %v6014_v36 = vadd.f32 %v5982_v20, %v10711_v61  ;;  %8324 = vtanh.f32 %v6045_v31  ;;  %v6041_v55 = vmul.f32 0.7978846, %v6009_v25 }
 0xdc5   : > { %v6026_v56 = vmul.f32 0.7978846, %v10594_v60  ;;  %v5972_v0 = vmul.f32 0.044715, %v10671_v26  ;;  %v5938_v10 = vmul.f32 %v10675_v51, %v10640_v28  ;;  %v6040_v48 = vmul.f32 0.7978846, %v6008_v46 }
 0xdc6   : > { %v6046_v27 = vmul.f32 0.7978846, %v6014_v36  ;;  %8326 = vtanh.f32 %v6048_v21  ;;  %v6006_v38 = vadd.f32 %v5974_v5, %v10679_v18  ;;  %v6025_v20 = vmul.f32 0.7978846, %v10580_v33 }
 0xdc7   : > { %v5971_v7 = vmul.f32 0.044715, %v10634_v62  ;;  %v5937_v53 = vmul.f32 %v5905_v4, %v10615_v22  ;;  %v6039_v60 = vmul.f32 0.7978846, %v6007_v34  ;;  %v6005_v26 = vadd.f32 %v5973_v40, %v10689_v50 }
 0xdc8   : > { %8328 = vtanh.f32 %v6046_v27  ;;  %v5970_v51 = vmul.f32 0.044715, %v5938_v10  ;;  %v6004_v25 = vadd.f32 %v5972_v0, %v10611_v59  ;;  %v6038_v31 = vmul.f32 0.7978846, %v6006_v38 }
 0xdc9   : > { %8330 = vtanh.f32 %v6042_v35  ;;  %v6003_v21 = vadd.f32 %v5971_v7, %v10588_v58  ;;  %v6092_v36 = vadd.f32 1.0, %v10698_v6  ;;  %v5969_v33 = vmul.f32 0.044715, %v5937_v53 }
 0xdca   : > { %8332 = vtanh.f32 %v6041_v55  ;;  %v6037_v62 = vmul.f32 0.7978846, %v6005_v26  ;;  %v6096_v4 = vadd.f32 1.0, %v8315_v29  ;;  %v6002_v5 = vadd.f32 %v5970_v51, %v10640_v28 }
 0xdcb   : > { %8334 = vtanh.f32 %v6026_v56  ;;  %v6036_v27 = vmul.f32 0.7978846, %v6004_v25  ;;  %v6091_v40 = vadd.f32 1.0, %v10668_v15  ;;  %v6095_v55 = vadd.f32 1.0, %v10713_v42 }
 0xdcc   : > { %8336 = vtanh.f32 %v6040_v48  ;;  %v8319_v46 = vpop.eup %8318  ;;  %v6124_v10 = vmul.f32 0.5, %v6092_v36  ;;  %v6035_v48 = vmul.f32 0.7978846, %v6003_v21  ;;  %v6001_v6 = vadd.f32 %v5969_v33, %v10615_v22 }
 0xdcd   : > { %8338 = vtanh.f32 %v6025_v20  ;;  %v6128_v20 = vmul.f32 0.5, %v6096_v4  ;;  %v6094_v29 = vadd.f32 1.0, %v8317_v3  ;;  %v6034_v7 = vmul.f32 0.7978846, %v6002_v5 }
 0xdce   : > { %8340 = vtanh.f32 %v6039_v60  ;;  %v6093_v42 = vadd.f32 1.0, %v10724_v8  ;;  %v6033_v21 = vmul.f32 0.7978846, %v6001_v6 }
 0xdcf   : > { %v8321_v35 = vpop.eup %8320  ;;  %8342 = vtanh.f32 %v6038_v31  ;;  %v6127_v31 = vmul.f32 0.5, %v6095_v55  ;;  %v6160_v3 = vmul.f32 %v6128_v20, %v10549_v12  ;;  %v6126_v4 = vmul.f32 0.5, %v6094_v29 }
 0xdd0   : > { %v8323_v34 = vpop.eup %8322  ;;  %v6111_v56 = vadd.f32 1.0, %v8321_v35  ;;  %8344 = vtanh.f32 %v6037_v62  ;;  %v6107_v62 = vadd.f32 1.0, %v8319_v46 }
 0xdd1   : > { %v8325_v0 = vpop.eup %8324  ;;  %8346 = vtanh.f32 %v6036_v27  ;;  %v6108_v25 = vadd.f32 1.0, %v8323_v34 }
 0xdd2   : > { %v6109_v53 = vadd.f32 1.0, %v8325_v0  ;;  %v6143_v51 = vmul.f32 0.5, %v6111_v56  ;;  %8348 = vtanh.f32 %v6035_v48  ;;  %v6125_v48 = vmul.f32 0.5, %v6093_v42 }
 0xdd3   : > { %v8327_v38 = vpop.eup %8326  ;;  %8350 = vtanh.f32 %v6034_v7  ;;  %v6140_v55 = vmul.f32 0.5, %v6108_v25  ;;  %v6139_v20 = vmul.f32 0.5, %v6107_v62 }
 0xdd4   : > { %v6112_v26 = vadd.f32 1.0, %v8327_v38  ;;  %v6141_v36 = vmul.f32 0.5, %v6109_v53  ;;  %v6175_v56 = vmul.f32 %v6143_v51, %v10666_v9  ;;  %v6159_v38 = vmul.f32 %v6127_v31, %v10523_v11 }
 0xdd5   : > { %v8329_v60 = vpop.eup %8328  ;;  %8352 = vtanh.f32 %v6033_v21  ;;  %v6158_v9 = vmul.f32 %v6126_v4, %v10557_v23  ;;  %v6172_v51 = vmul.f32 %v6140_v55, %v10631_v41  ;;  %v6156_v23 = vmul.f32 %v6124_v10, %v10516_v24 }
 0xdd6   : > { %v8331_v15 = vpop.eup %8330  ;;  %v6110_v35 = vadd.f32 1.0, %v8329_v60  ;;  %v6144_v33 = vmul.f32 0.5, %v6112_v26  ;;  %v6173_v6 = vmul.f32 %v6141_v36, %v10693_v14  ;;  %v6123_v14 = vmul.f32 0.5, %v6091_v40 }
 0xdd7   : > { %v8333_v45 = vpop.eup %8332  ;;  %v6106_v0 = vadd.f32 1.0, %v8331_v15 }
 0xdd8   : > { %v6142_v5 = vmul.f32 0.5, %v6110_v35  ;;  %v8335_v27 = vpop.eup %8334  ;;  %v6176_v34 = vmul.f32 %v6144_v33, %v10696_v19  ;;  %v6105_v29 = vadd.f32 1.0, %v8333_v45  ;;  %v6200_v19 = vpack.c.bf16 %v6160_v3, %v6159_v38 }
 0xdd9   : > { %v8337_v8 = vpop.eup %8336  ;;  %v6090_v60 = vadd.f32 1.0, %v8335_v27  ;;  %v6138_v11 = vmul.f32 0.5, %v6106_v0  ;;  %v6171_v45 = vmul.f32 %v6139_v20, %v10604_v54 }
 0xdda   : > { %v6174_v46 = vmul.f32 %v6142_v5, %v10711_v61  ;;  %v8339_v53 = vpop.eup %8338  ;;  %v6208_v12 = vpack.c.bf16 %v6176_v34, %v6175_v56  ;;  %v6104_v25 = vadd.f32 1.0, %v8337_v8  ;;  %v6157_v61 = vmul.f32 %v6125_v48, %v10536_v37  ;;  %v11456_v48 = vld [vmem:[#allocation55_spill] sm:$0xff] }
 0xddb   : > { %v8341_v7 = vpop.eup %8340  ;;  %v6089_v31 = vadd.f32 1.0, %v8339_v53  ;;  %v6137_v42 = vmul.f32 0.5, %v6105_v29  ;;  %v6122_v21 = vmul.f32 0.5, %v6090_v60  ;;  %v6206_v62 = vpack.c.bf16 %v6172_v51, %v6171_v45  ;;  %v8221_v45 = vld [vmem:[%s11438_s6 + $0x74] ss:$8 sps:$4 sm:$0xff]  }
 0xddc   : > { %v6207_v26 = vpack.c.bf16 %v6174_v46, %v6173_v6  ;;  %7554 = vmatprep.subr.bf16.mxu0 %v6208_v12  ;;  %v8343_v15 = vpop.eup %8342  ;;  %v6103_v35 = vadd.f32 1.0, %v8341_v7  ;;  %v6199_v33 = vpack.c.bf16 %v6158_v9, %v6157_v61  ;;  %v6170_v41 = vmul.f32 %v6138_v11, %v10663_v43  ;;  %v8216_v61 = vld [vmem:[%s11438_s6 + $0x60] ss:$8 sps:$4 sm:$0xff]  }
 0xddd   : > { %7555 = vmatpush3.bf16.msra.mxu0 %v6200_v19  ;;  %v8345_v36 = vpop.eup %8344  ;;  %v6136_v3 = vmul.f32 0.5, %v6104_v25  ;;  %v6102_v4 = vadd.f32 1.0, %v8343_v15  ;;  %v6155_v5 = vmul.f32 %v6123_v14, %v10510_v13  ;;  %v6121_v37 = vmul.f32 0.5, %v6089_v31  ;;  %v8213_v14 = vld [vmem:[%s11438_s6 + $0x50] ss:$8 sps:$4 sm:$0xff]  }
 0xdde   : > { %7556 = vmatprep.subr.bf16.mxu0 %v6207_v26  ;;  %v8347_v40 = vpop.eup %8346  ;;  %v6169_v54 = vmul.f32 %v6137_v42, %v10624_v52  ;;  %v6135_v27 = vmul.f32 0.5, %v6103_v35  ;;  %v6101_v56 = vadd.f32 1.0, %v8345_v36  ;;  %v6154_v24 = vmul.f32 %v6122_v21, %v10543_v1  ;;  %v8218_v31 = vld [vmem:[%s11438_s6 + $0x64] ss:$8 sps:$4 sm:$0xff]   ;;  %v8219_v42 = vld [vmem:[%s11438_s6 + $0x70] ss:$8 sps:$4 sm:$0xff]   ;;  %v6228_v35 = vpop.permute.xlu0 %6227 }
 0xddf   : > { %v8349_v34 = vpop.eup %8348  ;;  %v6198_v10 = vpack.c.bf16 %v6156_v23, %v6155_v5  ;;  %v6168_v43 = vmul.f32 %v6136_v3, %v10621_v16  ;;  %v6134_v8 = vmul.f32 0.5, %v6102_v4  ;;  %v6100_v38 = vadd.f32 1.0, %v8347_v40 }
 0xde0   : > { %v8351_v55 = vpop.eup %8350  ;;  %v6205_v0 = vpack.c.bf16 %v6170_v41, %v6169_v54  ;;  %v6153_v6 = vmul.f32 %v6121_v37, %v11456_v48  ;;  %v6167_v13 = vmul.f32 %v6135_v27, %v10650_v32  ;;  %v6133_v46 = vmul.f32 0.5, %v6101_v56 }
 0xde1   : > { %7557 = vmatpush3.bf16.msra.mxu0 %v6199_v33  ;;  %v6099_v52 = vadd.f32 1.0, %v8349_v34  ;;  %v6166_v1 = vmul.f32 %v6134_v8, %v10679_v18  ;;  %v6132_v29 = vmul.f32 0.5, %v6100_v38  ;;  %v6098_v7 = vadd.f32 1.0, %v8351_v55  ;;  %v6233_v38 = vpop.permute.xlu1 %6232 }
 0xde2   : > { %7558 = vmatprep.subr.bf16.mxu0 %v6206_v62  ;;  %v8353_v53 = vpop.eup %8352  ;;  %v6197_v12 = vpack.c.bf16 %v6154_v24, %v6153_v6  ;;  %v6204_v20 = vpack.c.bf16 %v6168_v43, %v6167_v13  ;;  %v6165_v16 = vmul.f32 %v6133_v46, %v10689_v50  ;;  %v11457_v51 = vpack.c.bf16 %v10646_v39, %v10627_v2  ;;  %v8203_v39 = vld [vmem:[%s11438_s6 + $0x10] ss:$8 sps:$4 sm:$0xff]   ;;  %v6238_v36 = vpop.permute.xlu0 %6237 }
 0xde3   : > { %v6131_v60 = vmul.f32 0.5, %v6099_v52  ;;  %v6097_v9 = vadd.f32 1.0, %v8353_v53  ;;  %v6164_v26 = vmul.f32 %v6132_v29, %v10611_v59  ;;  %v6130_v32 = vmul.f32 0.5, %v6098_v7 }
 0xde4   : > { %v6203_v19 = vpack.c.bf16 %v6166_v1, %v6165_v16  ;;  %v11458_v15 = vpack.c.bf16 %v10655_v49, %v10643_v63  ;;  %v8201_v63 = vld [vmem:[%s11438_s6 + $0x14] ss:$8 sps:$4 sm:$0xff]   ;;  %v8209_v49 = vld [vmem:[%s11438_s6 + $0x30] ss:$8 sps:$4 sm:$0xff]  }
 0xde5   : > { %7559 = vmatpush3.bf16.msra.mxu0 %v6198_v10  ;;  %v6163_v18 = vmul.f32 %v6131_v60, %v10588_v58  ;;  %v6129_v11 = vmul.f32 0.5, %v6097_v9  ;;  %v6162_v50 = vmul.f32 %v6130_v32, %v10640_v28  ;;  %v8198_v58 = vld [vmem:[%s11438_s6] ss:$8 sps:$4 sm:$0xff]   ;;  %v11459_v28 = vpack.c.bf16 %v10601_v17, %v10591_v44  ;;  %v8212_v44 = vld [vmem:[%s11438_s6 + $0x44] ss:$8 sps:$4 sm:$0xff]   ;;  %v6243_v52 = vpop.permute.xlu1 %6242 }
 0xde6   : > { %7560 = vmatprep.subr.bf16.mxu0 %v6205_v0  ;;  %v8210_v17 = vld [vmem:[%s11438_s6 + $0x40] ss:$8 sps:$4 sm:$0xff]   ;;  %v6248_v23 = vpop.permute.xlu0 %6247 }
 0xde7   : > { %v6202_v25 = vpack.c.bf16 %v6164_v26, %v6163_v18  ;;  %v6161_v59 = vmul.f32 %v6129_v11, %v10615_v22  ;;  %v8204_v22 = vld [vmem:[%s11438_s6 + $0x24] ss:$8 sps:$4 sm:$0xff]  }
 0xde9   : > { %7561 = vmatpush3.bf16.msra.mxu0 %v6197_v12  ;;  %v6201_v2 = vpack.c.bf16 %v6162_v50, %v6161_v59  ;;  %v11460_v50 = vld [vmem:[#allocation53_spill] sm:$0xff] }
 0xdea   : > { %7562 = vmatprep.subr.bf16.mxu0 %v6204_v20  ;;  %v6258_v21 = vpop.permute.xlu0 %6257 }
 0xded   : > { %7563 = vmatpush3.bf16.msra.mxu0 %v11457_v51 }
 0xdee   : > { %7564 = vmatprep.subr.bf16.mxu0 %v6203_v19  ;;  %v10814_v33 = vpop.permute.xlu0 %6267  ;;  %v6253_v19 = vpop.permute.xlu1 %6252 }
 0xdf1   : > { %7565 = vmatpush3.bf16.msra.mxu0 %v11458_v15 }
 0xdf2   : > { %7566 = vmatprep.subr.bf16.mxu0 %v6202_v25  ;;  %v10816_v62 = vpop.permute.xlu0 %6277 }
 0xdf5   : > { %7567 = vmatpush3.bf16.msra.mxu0 %v6194_v30  ;;  %v8215_v30 = vld [vmem:[%s11438_s6 + $0x54] ss:$8 sps:$4 sm:$0xff]   ;;  %s11477_s6 = sshll.u32 %s8710_s22, 4  ;;  %s11478_s22 = sld [smem:[#allocation30_spill]] }
 0xdf6   : > { %7568 = vmatprep.subr.bf16.mxu0 %v6201_v2  ;;  %v10818_v41 = vpop.permute.xlu0 %6287  ;;  %s1152_s7 = scalar_lea.vmem %s8653_s15, %s11477_s6 }
 0xdf9   : > { %7569 = vmatpush3.bf16.msra.mxu0 %v11459_v28 }
 0xdfa   : > { %v10820_v3 = vpop.permute.xlu0 %6297 }
 0xdfb   : > { %s11110_s8 = scalar_lea.hbm %s11478_s22, %s7328_s1 }
 0xdfc   : > { %6418 = vmatmul.mubr.bf16.vlgmr.msra.gmra.mxu0 %v8198_v58  ;;  %v11461_v58 = vld [vmem:[#allocation51_spill] sm:$0xff] }
 0xdfd   : > { %6425 = vmatprep.mubr.bf16.mxu0 %v8201_v63 }
 0xdfe   : > { %v10822_v4 = vpop.permute.xlu0 %6658 }
 0xe02   : > { %v10824_v54 = vpop.permute.xlu0 %6668 }
 0xe04   : > { %6426 = vmatmul.mubr.bf16.gmra.mxu0 %v8203_v39  ;;  %v11462_v39 = vld [vmem:[#allocation80_spill] sm:$0xff] }
 0xe05   : > { %6433 = vmatprep.mubr.bf16.mxu0 %v8204_v22 }
 0xe06   : > { %v10826_v24 = vpop.permute.xlu0 %6678 }
 0xe0a   : > { %v10828_v43 = vpop.permute.xlu0 %6688 }
 0xe0c   : > { %6434 = vmatmul.mubr.bf16.gmra.mxu0 %v8206_v57 }
 0xe0d   : > { %6441 = vmatprep.mubr.bf16.mxu0 %v8207_v47 }
 0xe0e   : > { %v10830_v13 = vpop.permute.xlu0 %6698 }
 0xe12   : > { %v10832_v29 = vpop.permute.xlu0 %6708 }
 0xe14   : > { %6442 = vmatmul.mubr.bf16.gmra.mxu0 %v8209_v49  ;;  %v6263_v49 = vpop.permute.xlu1 %6262 }
 0xe15   : > { %6449 = vmatprep.mubr.bf16.mxu0 %v8212_v44 }
 0xe16   : > { %v10834_v25 = vpop.permute.xlu0 %6718 }
 0xe1c   : > { %6450 = vmatmul.mubr.bf16.gmra.mxu0 %v8210_v17 }
 0xe1d   : > { %6457 = vmatprep.mubr.bf16.mxu0 %v8215_v30  ;;  %v11463_v30 = vld [vmem:[#allocation79_spill] sm:$0xff] }
 0xe24   : > { %6458 = vmatmul.mubr.bf16.gmra.mxu0 %v8213_v14 }
 0xe25   : > { %6465 = vmatprep.mubr.bf16.mxu0 %v8218_v31 }
 0xe2c   : > { %6466 = vmatmul.mubr.bf16.gmra.mxu0 %v8216_v61 }
 0xe2d   : > { %6473 = vmatprep.mubr.bf16.mxu0 %v8221_v45 }
 0xe34   : > { %6474 = vmatmul.mubr.bf16.gmra.mxu0 %v8219_v42 }
 0xebc   : > { %v7570_v40 = vpop.f32.mrf.mxu0 }
 0xebe   : > { %v7571_v5 = vpop.f32.mrf.mxu0 }
 0xebf   : > { %v7572_v20 = vadd.f32 %v7571_v5, %v7570_v40 }
 0xec0   : > { %v7573_v37 = vpop.f32.mrf.mxu0 }
 0xec1   : > { %v6420_v26 = vadd.f32 %v7572_v20, %v6228_v35  ;;  %v10852_v35 = vpop.permute.xlu0 %6754 }
 0xec2   : > { %v7574_v27 = vpop.f32.mrf.mxu0 }
 0xec3   : > { %v7575_v12 = vadd.f32 %v7574_v27, %v7573_v37  ;;  %v10840_v28 = vadd.f32 %v6420_v26, %v11461_v58 }
 0xec4   : > { %v7576_v56 = vpop.f32.mrf.mxu0 }
 0xec5   : > { %v6423_v60 = vadd.f32 %v7575_v12, %v6233_v38  ;;  %v6530_v45 = vsel %vm2291_vm2, %v10840_v28, 0.0  ;;  %v6273_v38 = vpop.permute.xlu1 %6272 }
 0xec6   : > { %v7577_v34 = vpop.f32.mrf.mxu0 }
 0xec7   : > { %v7578_v7 = vadd.f32 %v7577_v34, %v7576_v56  ;;  %v10837_v15 = vadd.f32 %v6423_v60, %v11460_v50  ;;  %v11467_v60 = vld [vmem:[#allocation37_spill] sm:$0xff] }
 0xec8   : > { %v7579_v10 = vpop.f32.mrf.mxu0 }
 0xec9   : > { %v6428_v51 = vadd.f32 %v7578_v7, %v6238_v36  ;;  %v6531_v17 = vsel %vm2291_vm2, %v10837_v15, 0.0  ;;  %v10870_v7 = vpop.permute.xlu0 %6764 }
 0xeca   : > { %v7580_v55 = vpop.f32.mrf.mxu0  ;;  %v6532_v27 = vadd.f32 %v6531_v17, %v6530_v45 }
 0xecb   : > { %v7581_v9 = vadd.f32 %v7580_v55, %v7579_v10  ;;  %v10843_v22 = vadd.f32 %v6428_v51, %v11462_v39  ;;  %v11465_v10 = vld [vmem:[#allocation39_spill] sm:$0xff] }
 0xecc   : > { %v7582_v0 = vpop.f32.mrf.mxu0  ;;  %v11469_v39 = vld [vmem:[#allocation35_spill] sm:$0xff] }
 0xecd   : > { %v6431_v59 = vadd.f32 %v7581_v9, %v6243_v52  ;;  %v6533_v36 = vsel %vm2291_vm2, %v10843_v22, 0.0  ;;  %v11466_v52 = vld [vmem:[#allocation38_spill] sm:$0xff] }
 0xece   : > { %v7583_v8 = vpop.f32.mrf.mxu0 }
 0xecf   : > { %v7584_v18 = vadd.f32 %v7583_v8, %v7582_v0  ;;  %v10848_v14 = vadd.f32 %v6431_v59, %v11463_v30  ;;  %v6283_v59 = vpop.permute.xlu1 %6282  ;;  %v10888_v30 = vpop.permute.xlu0 %6774 }
 0xed0   : > { %v7585_v48 = vpop.f32.mrf.mxu0 }
 0xed1   : > { %v6436_v57 = vadd.f32 %v7584_v18, %v6248_v23  ;;  %v11464_v23 = vld [vmem:[#allocation40_spill] sm:$0xff]  ;;  %v6535_v34 = vsel %vm2291_vm2, %v10848_v14, 0.0 }
 0xed2   : > { %v7586_v6 = vpop.f32.mrf.mxu0 }
 0xed3   : > { %v7587_v2 = vadd.f32 %v7586_v6, %v7585_v48  ;;  %v10857_v40 = vadd.f32 %v6436_v57, %v11464_v23  ;;  %v6534_v48 = vadd.f32 %v6533_v36, %v6532_v27 }
 0xed4   : > { %v7588_v46 = vpop.f32.mrf.mxu0 }
 0xed5   : > { %v6439_v31 = vadd.f32 %v7587_v2, %v6253_v19  ;;  %v6536_v20 = vadd.f32 %v6535_v34, %v6534_v48 }
 0xed6   : > { %v7589_v53 = vpop.f32.mrf.mxu0 }
 0xed7   : > { %v7590_v47 = vadd.f32 %v7589_v53, %v7588_v46  ;;  %v10862_v55 = vadd.f32 %v6439_v31, %v11465_v10  ;;  %v6537_v46 = vsel %vm2291_vm2, %v10857_v40, 0.0 }
 0xed8   : > { %v7591_v1 = vpop.f32.mrf.mxu0 }
 0xed9   : > { %v6444_v5 = vadd.f32 %v7590_v47, %v6258_v21 }
 0xeda   : > { %v7592_v16 = vpop.f32.mrf.mxu0 }
 0xedb   : > { %v7593_v61 = vadd.f32 %v7592_v16, %v7591_v1  ;;  %v10867_v53 = vadd.f32 %v6444_v5, %v11466_v52  ;;  %v6539_v16 = vsel %vm2291_vm2, %v10862_v55, 0.0  ;;  %v11471_v5 = vld [vmem:[#allocation33_spill] sm:$0xff] }
 0xedc   : > { %v7594_v32 = vpop.f32.mrf.mxu0 }
 0xedd   : > { %v6447_v0 = vadd.f32 %v7593_v61, %v6263_v49  ;;  %v6541_v18 = vsel %vm2291_vm2, %v10867_v53, 0.0  ;;  %v11470_v61 = vld [vmem:[#allocation34_spill] sm:$0xff] }
 0xede   : > { %v7595_v11 = vpop.f32.mrf.mxu0 }
 0xedf   : > { %v7596_v37 = vadd.f32 %v7595_v11, %v7594_v32  ;;  %v10875_v9 = vadd.f32 %v6447_v0, %v11467_v60  ;;  %v6538_v32 = vadd.f32 %v6537_v46, %v6536_v20  ;;  %v11468_v11 = vld [vmem:[#allocation36_spill] sm:$0xff]  ;;  %v10906_v46 = vpop.permute.xlu0 %6784 }
 0xee0   : > { %v7597_v63 = vpop.f32.mrf.mxu0 }
 0xee1   : > { %v6452_v21 = vadd.f32 %v7596_v37, %v10814_v33  ;;  %v6540_v2 = vadd.f32 %v6539_v16, %v6538_v32 }
 0xee2   : > { %v7598_v44 = vpop.f32.mrf.mxu0 }
 0xee3   : > { %v7599_v8 = vadd.f32 %v7598_v44, %v7597_v63  ;;  %v10880_v33 = vadd.f32 %v6452_v21, %v11468_v11  ;;  %v6543_v63 = vsel %vm2291_vm2, %v10875_v9, 0.0  ;;  %v6542_v44 = vadd.f32 %v6541_v18, %v6540_v2  ;;  %v11473_v21 = vld [vmem:[#allocation48_spill] sm:$0xff]  ;;  %v11474_v18 = vld [vmem:[#allocation46_spill] sm:$0xff] }
 0xee4   : > { %v7600_v42 = vpop.f32.mrf.mxu0 }
 0xee5   : > { %v6455_v19 = vadd.f32 %v7599_v8, %v6273_v38  ;;  %v6545_v31 = vsel %vm2291_vm2, %v10880_v33, 0.0  ;;  %v11472_v8 = vld [vmem:[#allocation45_spill] sm:$0xff] }
 0xee6   : > { %v7601_v56 = vpop.f32.mrf.mxu0 }
 0xee7   : > { %v7602_v12 = vadd.f32 %v7601_v56, %v7600_v42  ;;  %v10886_v57 = vadd.f32 %v6455_v19, %v11469_v39  ;;  %v6544_v42 = vadd.f32 %v6543_v63, %v6542_v44  ;;  %v6293_v56 = vpop.permute.xlu1 %6292 }
 0xee8   : > { %v7603_v6 = vpop.f32.mrf.mxu0 }
 0xee9   : > { %v6460_v50 = vadd.f32 %v7602_v12, %v10816_v62  ;;  %v6547_v23 = vsel %vm2291_vm2, %v10886_v57, 0.0  ;;  %v6546_v34 = vadd.f32 %v6545_v31, %v6544_v42 }
 0xeea   : > { %v7604_v1 = vpop.f32.mrf.mxu0 }
 0xeeb   : > { %v7605_v26 = vadd.f32 %v7604_v1, %v7603_v6  ;;  %v10893_v62 = vadd.f32 %v6460_v50, %v11470_v61 }
 0xeec   : > { %v7606_v51 = vpop.f32.mrf.mxu0 }
 0xeed   : > { %v6463_v47 = vadd.f32 %v7605_v26, %v6283_v59  ;;  %v6549_v0 = vsel %vm2291_vm2, %v10893_v62, 0.0  ;;  %v6303_v59 = vpop.permute.xlu1 %6302 }
 0xeee   : > { %v7607_v58 = vpop.f32.mrf.mxu0 }
 0xeef   : > { %v7608_v49 = vadd.f32 %v7607_v58, %v7606_v51  ;;  %v10899_v37 = vadd.f32 %v6463_v47, %v11471_v5  ;;  %v10921_v58 = vpop.permute.xlu0 %6794 }
 0xef0   : > { %v7609_v17 = vpop.f32.mrf.mxu0 }
 0xef1   : > { %v6468_v45 = vadd.f32 %v7608_v49, %v10818_v41  ;;  %v6548_v41 = vadd.f32 %v6547_v23, %v6546_v34  ;;  %v6551_v52 = vsel %vm2291_vm2, %v10899_v37, 0.0  ;;  %v11475_v49 = vld [vmem:[#allocation47_spill] sm:$0xff] }
 0xef2   : > { %v7610_v36 = vpop.f32.mrf.mxu0 }
 0xef3   : > { %v7611_v27 = vadd.f32 %v7610_v36, %v7609_v17  ;;  %v10904_v38 = vadd.f32 %v6468_v45, %v11472_v8  ;;  %v6550_v1 = vadd.f32 %v6549_v0, %v6548_v41  ;;  %v10930_v61 = vpop.permute.xlu0 %6804 }
 0xef4   : > { %v7612_v10 = vpop.f32.mrf.mxu0 }
 0xef5   : > { %v6471_v48 = vadd.f32 %v7611_v27, %v6293_v56  ;;  %v6553_v60 = vsel %vm2291_vm2, %v10904_v38, 0.0  ;;  %v6552_v26 = vadd.f32 %v6551_v52, %v6550_v1 }
 0xef6   : > { %v7613_v6 = vpop.f32.mrf.mxu0 }
 0xef7   : > { %v10911_v12 = vadd.f32 %v6471_v48, %v11473_v21  ;;  %v7614_v20 = vadd.f32 %v7613_v6, %v7612_v10  ;;  %v6554_v2 = vadd.f32 %v6553_v60, %v6552_v26  ;;  %v10932_v23 = vpop.permute.xlu0 %6814 }
 0xef8   : > { %v7615_v16 = vpop.f32.mrf.mxu0 }
 0xef9   : > { %v6476_v19 = vadd.f32 %v7614_v20, %v10820_v3  ;;  %v6555_v51 = vsel %vm2291_vm2, %v10911_v12, 0.0 }
 0xefa   : > { %v7616_v32 = vpop.f32.mrf.mxu0  ;;  %v6556_v47 = vadd.f32 %v6555_v51, %v6554_v2 }
 0xefb   : > { %v10919_v11 = vadd.f32 %v6476_v19, %v11474_v18  ;;  %v7617_v50 = vadd.f32 %v7616_v32, %v7615_v16  ;;  %v10934_v34 = vpop.permute.xlu0 %6819 }
 0xefd   : > { %v6557_v63 = vsel %vm2291_vm2, %v10919_v11, 0.0  ;;  %v6479_v39 = vadd.f32 %v7617_v50, %v6303_v59 }
 0xefe   : > { %v6558_v44 = vadd.f32 %v6557_v63, %v6556_v47 }
 0xeff   : > { %v10926_v3 = vadd.f32 %v6479_v39, %v11475_v49  ;;  %v10950_v41 = vpop.permute.xlu0 %6824 }
 0xf01   : > { %v6559_v17 = vsel %vm2291_vm2, %v10926_v3, 0.0 }
 0xf02   : > { %v6560_v31 = vadd.f32 %v6559_v17, %v6558_v44 }
 0xf03   : > { %v2857_v21 = vpop.trf.xlu0 }
 0xf04   : > { %v6561_v45 = vrot.slane %v6560_v31, 4  ;;  %v7226_v59 = vcombine.low %v2857_v21, %v2857_v21 }
 0xf06   : > { %v6562_v42 = vadd.f32 %v6561_v45, %v6560_v31  ;;  %2872 = vst [vmem:[%s1142_s3] sm:$0xf] %v7226_v59 }
 0xf07   : > { %v4974_v51 = vpop.trf.xlu0 }
 0xf08   : > { %v6563_v36 = vrot.slane %v6562_v42, 2  ;;  %v7276_v63 = vcombine.low %v4974_v51, %v4974_v51  ;;  %v7277_v39 = vcombine.high %v4974_v51, %v4974_v51 }
 0xf0a   : > { %v6564_v5 = vadd.f32 %v6563_v36, %v6562_v42  ;;  %4996 = vst [vmem:[%s1152_s7] sm:$0xf] %v7276_v63  ;;  %4997 = vst [vmem:[%s1152_s7 + $0x4] sm:$0xf] %v7277_v39 }
 0xf0b   : > { %v4975_v31 = vpop.trf.xlu0 }
 0xf0c   : > { %v6565_v27 = vrot.slane %v6564_v5, 1  ;;  %v7278_v42 = vcombine.low %v4975_v31, %v4975_v31  ;;  %v7279_v36 = vcombine.high %v4975_v31, %v4975_v31  ;;  %v6664_v31 = vpop.permute.xlu1 %6663 }
 0xf0e   : > { %v6566_v56 = vadd.f32 %v6565_v27, %v6564_v5  ;;  %4998 = vst [vmem:[%s1152_s7 + $0x8] sm:$0xf] %v7278_v42  ;;  %4999 = vst [vmem:[%s1152_s7 + $0xc] sm:$0xf] %v7279_v36  ;;  %s7165_s7 = sshll.u32 %s1087_s5, 4 }
 0xf10   : > { %v10936_v10 = vmul.f32 0.0078125, %v6566_v56  ;;  %v6674_v36 = vpop.permute.xlu1 %6673 }
 0xf12   : > { %v10940_v0 = vsub.f32 %v10840_v28, %v10936_v10  ;;  %v10944_v8 = vsub.f32 %v10837_v15, %v10936_v10  ;;  %v10948_v48 = vsub.f32 %v10843_v22, %v10936_v10  ;;  %v10954_v6 = vsub.f32 %v10848_v14, %v10936_v10 }
 0xf13   : > { %v10962_v15 = vsub.f32 %v10857_v40, %v10936_v10  ;;  %v10968_v14 = vsub.f32 %v10862_v55, %v10936_v10  ;;  %v10976_v40 = vsub.f32 %v10867_v53, %v10936_v10  ;;  %v10983_v26 = vsub.f32 %v10875_v9, %v10936_v10 }
 0xf14   : > { %v6584_v28 = vmul.f32 %v10940_v0, %v10940_v0  ;;  %v6585_v52 = vmul.f32 %v10944_v8, %v10944_v8  ;;  %v6586_v22 = vmul.f32 %v10948_v48, %v10948_v48  ;;  %v6587_v20 = vmul.f32 %v10954_v6, %v10954_v6 }
 0xf15   : > { %v6588_v19 = vmul.f32 %v10962_v15, %v10962_v15  ;;  %v6589_v18 = vmul.f32 %v10968_v14, %v10968_v14  ;;  %v7227_v53 = vcombine.high %v2857_v21, %v2857_v21  ;;  %v10995_v47 = vsub.f32 %v10880_v33, %v10936_v10 }
 0xf16   : > { %v6600_v1 = vsel %vm2291_vm2, %v6584_v28, 0.0  ;;  %v6601_v16 = vsel %vm2291_vm2, %v6585_v52, 0.0  ;;  %v6603_v55 = vsel %vm2291_vm2, %v6586_v22, 0.0  ;;  %v6605_v50 = vsel %vm2291_vm2, %v6587_v20, 0.0 }
 0xf17   : > { %v6602_v60 = vadd.f32 %v6601_v16, %v6600_v1  ;;  %v6590_v9 = vmul.f32 %v10976_v40, %v10976_v40  ;;  %v6607_v49 = vsel %vm2291_vm2, %v6588_v19, 0.0  ;;  %2873 = vst [vmem:[%s1142_s3 + $0x4] sm:$0xf] %v7227_v53  ;;  %v11002_v44 = vsub.f32 %v10886_v57, %v10936_v10  ;;  %s1089_s3 = scalar_lea.vmem [#allocation4], %s7165_s7  ;;  %s8471_s7 = smov [#allocation4]  }
 0xf18   : > { %v6591_v45 = vmul.f32 %v10983_v26, %v10983_v26  ;;  %v6609_v33 = vsel %vm2291_vm2, %v6589_v18, 0.0  ;;  %v11009_v27 = vsub.f32 %v10893_v62, %v10936_v10  ;;  %v6592_v57 = vmul.f32 %v10995_v47, %v10995_v47  ;;  %s6916_s6 = sshll.u32 %s1089_s3, 4  ;;  %s8372_s12 = sshll.u32 %s8471_s7, 4  ;;  %s11107_s6 = int_to_ptr.vmem [resolvable:$true] %s6916_s6  ;;  %s8373_s12 = int_to_ptr.vmem [resolvable:$false] %s8372_s12 }
 0xf19   : > { %v6604_v32 = vadd.f32 %v6603_v55, %v6602_v60  ;;  %v6611_v56 = vsel %vm2291_vm2, %v6590_v9, 0.0  ;;  %v11016_v52 = vsub.f32 %v10899_v37, %v10936_v10  ;;  %v6593_v22 = vmul.f32 %v11002_v44, %v11002_v44  ;;  %s8368_s10 = scalar_lea.vmem %s11107_s6, 256  ;;  %s8374_s4 = scalar_lea.vmem %s8373_s12, 512 }
 0xf1a   : > { %v6613_v21 = vsel %vm2291_vm2, %v6591_v45, 0.0  ;;  %v11023_v62 = vsub.f32 %v10904_v38, %v10936_v10  ;;  %v6594_v1 = vmul.f32 %v11009_v27, %v11009_v27  ;;  %v6615_v16 = vsel %vm2291_vm2, %v6592_v57, 0.0  ;;  %p8369_p2 = scmp.ne.s32.totalorder %s11107_s6, %s8368_s10  ;;  %p8375_p5 = scmp.lt.s32.totalorder %s11107_s6, %s8373_s12 }
 0xf1b   : > { %v6606_v2 = vadd.f32 %v6605_v50, %v6604_v32  ;;  %v11030_v37 = vsub.f32 %v10911_v12, %v10936_v10  ;;  %v6595_v19 = vmul.f32 %v11016_v52, %v11016_v52  ;;  %v6617_v55 = vsel %vm2291_vm2, %v6593_v22, 0.0  ;;  %p8376_p6 = scmp.lt.s32.totalorder %s8374_s4, %s8368_s10 }
 0xf1c   : > { %v11037_v38 = vsub.f32 %v10919_v11, %v10936_v10  ;;  %v6596_v51 = vmul.f32 %v11023_v62, %v11023_v62  ;;  %v6619_v18 = vsel %vm2291_vm2, %v6594_v1, 0.0  ;;  %v6583_v12 = vsub.f32 %v10926_v3, %v10936_v10  ;;  %p8370_p3 = pnand %p8369_p2, %p8698_p10 }
 0xf1d   : > { %v6608_v17 = vadd.f32 %v6607_v49, %v6606_v2  ;;  %v6597_v59 = vmul.f32 %v11030_v37, %v11030_v37  ;;  %v6621_v53 = vsel %vm2291_vm2, %v6595_v19, 0.0  ;;  %p8377_p7 = por %p8376_p6, %p8375_p5 }
 0xf1e   : > { %v6598_v63 = vmul.f32 %v11037_v38, %v11037_v38  ;;  %v6623_v11 = vsel %vm2291_vm2, %v6596_v51, 0.0  ;;  %v6599_v9 = vmul.f32 %v6583_v12, %v6583_v12  ;;  %p8371_p4 = pneg %p8370_p3 }
 0xf1f   : > { %v6610_v5 = vadd.f32 %v6609_v33, %v6608_v17  ;;  %v6625_v49 = vsel %vm2291_vm2, %v6597_v59, 0.0 }
 0xf20   : > { %v6627_v45 = vsel %vm2291_vm2, %v6598_v63, 0.0  ;;  %v6629_v10 = vsel %vm2291_vm2, %v6599_v9, 0.0  ;;  %p8378_p8 = pnand %p8377_p7, %p8371_p4 }
 0xf21   : > { %v6612_v28 = vadd.f32 %v6611_v56, %v6610_v5 }
 0xf23   : > { %v6614_v20 = vadd.f32 %v6613_v21, %v6612_v28  ;;  %v6684_v28 = vpop.permute.xlu1 %6683 }
 0xf25   : > { %v6616_v60 = vadd.f32 %v6615_v16, %v6614_v20 }
 0xf27   : > { %v6618_v32 = vadd.f32 %v6617_v55, %v6616_v60  ;;  %v6694_v1 = vpop.permute.xlu1 %6693 }
 0xf29   : > { %v6620_v50 = vadd.f32 %v6619_v18, %v6618_v32 }
 0xf2b   : > { %v6622_v2 = vadd.f32 %v6621_v53, %v6620_v50  ;;  %v6704_v60 = vpop.permute.xlu1 %6703 }
 0xf2d   : > { %v6624_v39 = vadd.f32 %v6623_v11, %v6622_v2 }
 0xf2f   : > { %v6626_v17 = vadd.f32 %v6625_v49, %v6624_v39  ;;  %v6714_v19 = vpop.permute.xlu1 %6713 }
 0xf31   : > { %v6628_v3 = vadd.f32 %v6627_v45, %v6626_v17 }
 0xf33   : > { %v6630_v33 = vadd.f32 %v6629_v10, %v6628_v3  ;;  %v6724_v50 = vpop.permute.xlu1 %6723 }
 0xf35   : > { %v6631_v42 = vrot.slane %v6630_v33, 4 }
 0xf37   : > { %v6632_v5 = vadd.f32 %v6631_v42, %v6630_v33  ;;  %v6760_v11 = vpop.permute.xlu1 %6759 }
 0xf39   : > { %v6633_v57 = vrot.slane %v6632_v5, 2 }
 0xf3b   : > { %v6634_v56 = vadd.f32 %v6633_v57, %v6632_v5 }
 0xf3d   : > { %v6635_v22 = vrot.slane %v6634_v56, 1 }
 0xf3f   : > { %v6636_v21 = vadd.f32 %v6635_v22, %v6634_v56 }
 0xf41   : > { %v6637_v20 = vmul.f32 0.0078125, %v6636_v21 }
 0xf43   : > { %v6638_v16 = vadd.f32 1e-05, %v6637_v20 }
 0xf45   : > { %8354 = vrsqrt.f32 %v6638_v16 }
 0xf52   : > { %v11053_v55 = vpop.eup %8354 }
 0xf53   : > { %v11056_v32 = vmul.f32 %v11053_v55, %v6583_v12  ;;  %v6640_v51 = vmul.f32 %v11053_v55, %v10940_v0  ;;  %v6641_v18 = vmul.f32 %v11053_v55, %v10944_v8  ;;  %v6642_v63 = vmul.f32 %v11053_v55, %v10948_v48 }
 0xf54   : > { %v6643_v0 = vmul.f32 %v11053_v55, %v10954_v6  ;;  %v6645_v17 = vmul.f32 %v11053_v55, %v10968_v14  ;;  %v6646_v6 = vmul.f32 %v11053_v55, %v10976_v40  ;;  %v6647_v3 = vmul.f32 %v11053_v55, %v10983_v26 }
 0xf55   : > { %v6736_v59 = vmul.f32 %v10822_v4, %v6640_v51  ;;  %v6737_v2 = vmul.f32 %v6664_v31, %v6641_v18  ;;  %v6738_v12 = vmul.f32 %v10824_v54, %v6642_v63  ;;  %v6644_v4 = vmul.f32 %v11053_v55, %v10962_v15 }
 0xf56   : > { %v6739_v9 = vmul.f32 %v6674_v36, %v6643_v0  ;;  %v6741_v31 = vmul.f32 %v6684_v28, %v6645_v17  ;;  %v6742_v15 = vmul.f32 %v10828_v43, %v6646_v6  ;;  %v6743_v10 = vmul.f32 %v6694_v1, %v6647_v3 }
 0xf57   : > { %v6832_v53 = vadd.f32 %v10852_v35, %v6736_v59  ;;  %v6833_v39 = vadd.f32 %v6760_v11, %v6737_v2  ;;  %v6834_v8 = vadd.f32 %v10870_v7, %v6738_v12  ;;  %v6770_v35 = vpop.permute.xlu1 %6769  ;;  %v6740_v48 = vmul.f32 %v10826_v24, %v6644_v4 }
 0xf58   : > { %v6835_v49 = vadd.f32 %v6770_v35, %v6739_v9  ;;  %v6838_v24 = vadd.f32 %v10906_v46, %v6742_v15  ;;  %v6648_v14 = vmul.f32 %v11053_v55, %v10995_v47  ;;  %v6649_v42 = vmul.f32 %v11053_v55, %v11002_v44 }
 0xf59   : > { %6848 = vxpose.xlu0.b32.start [1/16] (narrow) %v6832_v53, 16  ;;  %v6836_v54 = vadd.f32 %v10888_v30, %v6740_v48  ;;  %v6650_v26 = vmul.f32 %v11053_v55, %v11009_v27  ;;  %v6651_v57 = vmul.f32 %v11053_v55, %v11016_v52  ;;  %v6652_v44 = vmul.f32 %v11053_v55, %v11023_v62 }
 0xf5a   : > { %v6744_v40 = vmul.f32 %v10830_v13, %v6648_v14  ;;  %v6745_v36 = vmul.f32 %v6704_v60, %v6649_v42  ;;  %v6653_v22 = vmul.f32 %v11053_v55, %v11030_v37 }
 0xf5b   : > { %v6780_v7 = vpop.permute.xlu1 %6779  ;;  %v6746_v47 = vmul.f32 %v10832_v29, %v6650_v26  ;;  %v6747_v56 = vmul.f32 %v6714_v19, %v6651_v57  ;;  %v6748_v27 = vmul.f32 %v10834_v25, %v6652_v44 }
 0xf5c   : > { %v6837_v45 = vadd.f32 %v6780_v7, %v6741_v31  ;;  %v6840_v43 = vadd.f32 %v10921_v58, %v6744_v40  ;;  %v6749_v21 = vmul.f32 %v6724_v50, %v6653_v22 }
 0xf5d   : > { %6849 = vxpose.xlu0.b32.cont [2/16] (narrow) %v6833_v39, 16  ;;  %v6842_v13 = vadd.f32 %v10930_v61, %v6746_v47  ;;  %v6844_v52 = vadd.f32 %v10932_v23, %v6748_v27  ;;  %v6654_v61 = vmul.f32 %v11053_v55, %v11037_v38 }
 0xf5e   : > { %v6845_v62 = vadd.f32 %v10934_v34, %v6749_v21 }
 0xf5f   : > { %v6790_v30 = vpop.permute.xlu1 %6789 }
 0xf60   : > { %v6839_v33 = vadd.f32 %v6790_v30, %v6743_v10 }
 0xf61   : > { %6850 = vxpose.xlu0.b32.cont [3/16] (narrow) %v6834_v8, 16 }
 0xf63   : > { %v6800_v46 = vpop.permute.xlu1 %6799 }
 0xf64   : > { %v6841_v5 = vadd.f32 %v6800_v46, %v6745_v36 }
 0xf65   : > { %6851 = vxpose.xlu0.b32.cont [4/16] (narrow) %v6835_v49, 16 }
 0xf67   : > { %v6810_v58 = vpop.permute.xlu1 %6809 }
 0xf68   : > { %v6843_v28 = vadd.f32 %v6810_v58, %v6747_v56 }
 0xf69   : > { %6852 = vxpose.xlu0.b32.cont [5/16] (narrow) %v6836_v54, 16 }
 0xf6b   : > { %v6729_v29 = vpop.permute.xlu1 %6728 }
 0xf6c   : > { %v6750_v20 = vmul.f32 %v6729_v29, %v6654_v61 }
 0xf6d   : > { %6853 = vxpose.xlu0.b32.cont [6/16] (narrow) %v6837_v45, 16 }
 0xf6e   : > { %v6846_v25 = vadd.f32 %v10950_v41, %v6750_v20 }
 0xf6f   : > { %v6734_v1 = vpop.permute.xlu1 %6733 }
 0xf70   : > { %v6751_v37 = vmul.f32 %v6734_v1, %v11056_v32 }
 0xf71   : > { %6854 = vxpose.xlu0.b32.cont [7/16] (narrow) %v6838_v24, 16 }
 0xf73   : > { %v6830_v16 = vpop.permute.xlu1 %6829 }
 0xf74   : > { %v6847_v60 = vadd.f32 %v6830_v16, %v6751_v37 }
 0xf75   : > { %6855 = vxpose.xlu0.b32.cont [8/16] (narrow) %v6839_v33, 16 }
 0xf79   : > { %6856 = vxpose.xlu0.b32.cont [9/16] (narrow) %v6840_v43, 16 }
 0xf7d   : > { %6857 = vxpose.xlu0.b32.cont [10/16] (narrow) %v6841_v5, 16 }
 0xf81   : > { %6858 = vxpose.xlu0.b32.cont [11/16] (narrow) %v6842_v13, 16 }
 0xf85   : > { %6859 = vxpose.xlu0.b32.cont [12/16] (narrow) %v6843_v28, 16 }
 0xf89   : > { %6860 = vxpose.xlu0.b32.cont [13/16] (narrow) %v6844_v52, 16 }
 0xf8d   : > { %6861 = vxpose.xlu0.b32.cont [14/16] (narrow) %v6845_v62, 16 }
 0xf91   : > { %6862 = vxpose.xlu0.b32.cont [15/16] (narrow) %v6846_v25, 16 }
 0xf95   : > { %6863 = vxpose.xlu0.b32.end [16/16] (narrow) %v6847_v60, 16 }
 0xfd5   : > { %v6864_v23 = vpop.trf.xlu0 }
 0xfd6   : > { %6880 = vst [vmem:[%s1089_s3] sm:$0xff] %v6864_v23 }
 0xfd9   : > { %v6865_v34 = vpop.trf.xlu0 }
 0xfda   : > { %6881 = vst [vmem:[%s1089_s3 + $0x8] sm:$0xff] %v6865_v34 }
 0xfdb   : > { %8381 = shalt.err (!%p8378_p8)
}
 0xfdc   : > { %s8382_s1 = scalar_lea.hbm %s11110_s8, 256  ;;  %s8386_s5 = scalar_lea.hbm %s11478_s22, 512 }
 0xfdd   : > { %p8383_p9 = scmp.ne.s32.totalorder %s11110_s8, %s8382_s1  ;;  %p8387_p0 = scmp.lt.s32.totalorder %s11110_s8, %s11478_s22 }
 0xfde   : > { %p8388_p1 = scmp.lt.s32.totalorder %s8386_s5, %s8382_s1 }
 0xfdf   : > { %p8384_p12 = pnand %p8383_p9, %p8698_p10 }
 0xfe0   : > { %p8389_p2 = por %p8388_p1, %p8387_p0 }
 0xfe1   : > { %p8385_p13 = pneg %p8384_p12 }
 0xfe3   : > { %p8390_p3 = pnand %p8389_p2, %p8385_p13 }
 0xfe5   : > { %8393 = shalt.err (!%p8390_p3)
}
 0xfe6   : > { %s8472_s12 = smov 128   ;;  %s8473_s10 = smov 8  }
 0xfe7   : > { %8035 = dma.vmem_to_hbm [thread:$0]  (%p8698_p10), %s11107_s6, 256, %s11110_s8, %s11112_s9, %s8472_s12, %s8472_s12, %s8473_s10  }
 0xfe8 PF: > { %p8041_p4 = scmp.ge.s32.totalorder %s8430_s23, 2  ;;  %s6943_s3 = sand.u32 1, %s8418_s24  }
 0xfe9   : > { %s6944_s7 = scalar_lea.sflag [#allocation5], %s6943_s3 }
 0xfea   : > { %p8038_p5 = pnand %p8041_p4, %p8702_p11 }
 0xfec   : > { %p8039_p6 = pneg %p8038_p5 }
 0xfee   : > { %8413 = dma.done.wait (%p8039_p6), %s6944_s7, 256  }
 0xfef   : > { %8415 = vsyncadd (%p8039_p6), %s6944_s7, 4294967040  ;;  %p88_p7 = scmp.ge.s32.totalorder %s8685_s2, 4   ;;  %s11479_s24 = smov %s8422_s26 }
 0xff0   : > { %s11480_s26 = smov %s8426_s0  ;;  %s11481_s0 = smov %s8696_s11 }
 0xff1   : > { %s11482_s23 = smov %s8685_s2  ;;  %90 = sbr.rel (!%p88_p7) target bundleno = 72 (0x48), region = 267 }
 0xff6   :  { %6981 = vsyncpa [#allocation5], 1 }
 0xff7   :  { %6983 = vsyncpa [#allocation5 + $0x1], 1 }

</bundles_post_ra>
